<compile_context>
chip_gen: v5e
topology: v5e:2x2
jax: 0.10.0
libtpu: 0.0.40
codegen_flags: <defaults>
</compile_context>

<pallas_src>
import jax
import jax.numpy as jnp
from jax.experimental import pallas as pl
from jax.experimental.pallas import tpu as pltpu


def _round_up(n: int, m: int) -> int:
    return ((n + m - 1) // m) * m


# --------------------- fused conv + LeakyReLU + MaxPool kernel ---------------------

def _conv_lrelu_pool_kernel(a_ref, w_ref, b_ref, o_ref):
    """One lane tile of: maxpool2x2(leaky_relu(conv3x3_s2(x))).

    a_ref: (K, 4*RT) bf16  corner-interleaved im2col patches for this tile
    w_ref: (Cout, K) bf16  conv weight, column order (ky, kx, cin)
    b_ref: (Cout, 1) f32   conv bias
    o_ref: (Cout, RT) f32  pooled activation (lane axis = batch*spatial, dense store)
    """
    rt = o_ref.shape[-1]
    # single long MXU stream over all four pool-window corners, f32 accumulation
    acc = jnp.dot(w_ref[...], a_ref[...],
                  preferred_element_type=jnp.float32)        # (Cout, 4*RT)
    # max over the four corner lane-blocks (RT is a multiple of 128 -> aligned slices)
    m = acc[:, 0 * rt:1 * rt]
    m = jnp.maximum(m, acc[:, 1 * rt:2 * rt])
    m = jnp.maximum(m, acc[:, 2 * rt:3 * rt])
    m = jnp.maximum(m, acc[:, 3 * rt:4 * rt])
    # fused epilogue: bias + LeakyReLU commute with the max (monotonic), one pass
    m = m + b_ref[...]
    m = jnp.maximum(m, 0.01 * m)                              # LeakyReLU(0.01)
    o_ref[...] = m.astype(o_ref.dtype)


def conv3x3s2_lrelu_pool(x, w_oihw, b, *, lane_tile=512):
    """Fused Conv2d(k=3, s=2, p=1) + LeakyReLU + MaxPool2d(2, 2).  NCHW in/out."""
    B, Cin, H, W = x.shape
    Cout = w_oihw.shape[0]
    Ho, Wo = (H + 2 - 3) // 2 + 1, (W + 2 - 3) // 2 + 1       # conv output (pad=1, s=2)
    Hp, Wp = Ho // 2, Wo // 2                                  # floor-mode 2x2 max pool
    if Hp < 1 or Wp < 1:
        raise ValueError("spatial size too small for a conv(stride2)+pool stage")
    K, R = 9 * Cin, Hp * Wp
    N = B * R                                                  # real output columns
    RT = min(lane_tile, _round_up(N, 128))                     # lane tile, mult. of 128
    G = -(-N // RT)                                            # grid steps
    Np = G * RT

    # ---- XLA glue (pure layout work), all in bf16 ------------------------------
    # Pool window (hp, wp), corner (dy, dx), tap (ky, kx) reads padded input row
    # 4*hp + 2*dy + ky, col 4*wp + 2*dx + kx  =>  stride-4 slices of the padded input.
    xp = jnp.pad(x.astype(jnp.bfloat16), ((0, 0), (0, 0), (1, 1), (1, 1)))
    corners = []
    for dy in (0, 1):
        for dx in (0, 1):
            taps = []
            for ky in range(3):
                for kx in range(3):
                    r0, c0 = 2 * dy + ky, 2 * dx + kx
                    taps.append(xp[:, :, r0:r0 + 4 * Hp - 3:4,
                                        c0:c0 + 4 * Wp - 3:4])
            corners.append(jnp.concatenate(taps, axis=1))      # (B, K, Hp, Wp)
    pk = jnp.stack(corners, axis=0).reshape(4, B, K, R)        # (4, B, K, R)
    pk = pk.transpose(0, 2, 1, 3).reshape(4, K, N)             # columns ordered (b, r)
    if Np != N:
        pk = jnp.pad(pk, ((0, 0), (0, 0), (0, Np - N)))        # zero-pad tail columns
    # corner-interleave per lane tile: final column index = g*4*RT + corner*RT + t
    pk = pk.reshape(4, K, G, RT).transpose(1, 2, 0, 3).reshape(K, G * 4 * RT)

    w_k = jnp.transpose(w_oihw, (0, 2, 3, 1)).reshape(Cout, K).astype(jnp.bfloat16)
    b_k = b.reshape(Cout, 1).astype(jnp.float32)

    out = pl.pallas_call(
        _conv_lrelu_pool_kernel,
        out_shape=jax.ShapeDtypeStruct((Cout, Np), jnp.float32),
        grid=(G,),
        in_specs=[
            pl.BlockSpec((K, 4 * RT), lambda g: (0, g)),
            pl.BlockSpec((Cout, K), lambda g: (0, 0)),
            pl.BlockSpec((Cout, 1), lambda g: (0, 0)),
        ],
        out_specs=pl.BlockSpec((Cout, RT), lambda g: (0, g)),
        compiler_params=pltpu.CompilerParams(
            dimension_semantics=("parallel",),                 # megacore / v7x 2-TC
            vmem_limit_bytes=32 * 1024 * 1024),                # blocks are ~1.5 MiB max
    )(pk, w_k, b_k)

    # drop padded columns, back to NCHW (same ordering as PyTorch)
    out = out[:, :N].reshape(Cout, B, R).transpose(1, 0, 2)
    return out.reshape(B, Cout, Hp, Wp)


# -------------------------------- ConvBlock forward --------------------------------

def convblock_forward(params, x):
    """ConvBlock.forward: 4 fused conv/lrelu/pool stages, then x.view(B, -1)."""
    x = conv3x3s2_lrelu_pool(x, params["conv1_w"], params["conv1_b"])
    x = conv3x3s2_lrelu_pool(x, params["conv2_w"], params["conv2_b"])
    x = conv3x3s2_lrelu_pool(x, params["conv3_w"], params["conv3_b"])
    x = conv3x3s2_lrelu_pool(x, params["conv4_w"], params["conv4_b"])
    return x.reshape(x.shape[0], -1)          # NCHW kept throughout == .view(B, -1)


def init_params(key, ch_in, nf=32):
    ks = jax.random.split(key, 4)
    cins = (ch_in, nf, nf, nf)
    params = {}
    for i, (k, cin) in enumerate(zip(ks, cins), start=1):
        # TODO(synk): the reference uses orthogonal init with leaky_relu gain; a
        # scaled normal is used here — the forward-pass math is unaffected.
        params[f"conv{i}_w"] = (0.1 * jax.random.normal(k, (nf, cin, 3, 3))
                                ).astype(jnp.float32)                 # OIHW like PyTorch
        params[f"conv{i}_b"] = jnp.zeros((nf,), jnp.float32)
    return params


# ------------------------------ pure-JAX reference ---------------------------------

def reference_forward(params, x):
    for i in range(1, 5):
        x = jax.lax.conv_general_dilated(
            x, params[f"conv{i}_w"], window_strides=(2, 2),
            padding=((1, 1), (1, 1)),
            dimension_numbers=("NCHW", "OIHW", "NCHW"))
        x = x + params[f"conv{i}_b"][None, :, None, None]
        x = jnp.where(x >= 0, x, 0.01 * x)
        x = jax.lax.reduce_window(x, -jnp.inf, jax.lax.max,
                                  (1, 1, 2, 2), (1, 1, 2, 2), "VALID")
    return x.reshape(x.shape[0], -1)


# ---------------------------------------- main --------------------------------------

if __name__ == "__main__":
    # Spatial size must be >= 171 to survive four conv(stride2)+pool stages;
    # 176 gives a clean chain 176 -> 44 -> 11 -> 3 -> 1 (feature = 32*1*1).
    B, ch_in, H, W = 2, 4, 176, 176
    key = jax.random.PRNGKey(0)
    k_x, k_p = jax.random.split(key)
    x = jax.random.normal(k_x, (B, ch_in, H, W), dtype=jnp.float32)
    params = init_params(k_p, ch_in)

    fwd = jax.jit(convblock_forward)
    out = fwd(params, x)
    jax.block_until_ready(out)

    ref = jax.jit(reference_forward)(params, x)
    jax.block_until_ready(ref)

    assert out.shape == (B, 32)
    # bf16 operands (f32 accumulation) across 4 stages -> loosened tolerance vs. the
    # pure-f32 reference; values are O(1), observed error is well inside this bound.
    assert jnp.allclose(out, ref, rtol=5e-2, atol=5e-2), \
        ("max abs diff", float(jnp.max(jnp.abs(out - ref))))
    print("KERNEL_OK")
</pallas_src>

<mosaic_0001>
module attributes {stable_mosaic.version = 11 : i64} {
  func.func @_conv_lrelu_pool_kernel(%arg0: i32, %arg1: memref<36x2048xbf16, #tpu.memory_space<vmem>>, %arg2: memref<32x36xbf16, #tpu.memory_space<vmem>>, %arg3: memref<32x1xf32, #tpu.memory_space<vmem>>, %arg4: memref<32x512xf32, #tpu.memory_space<vmem>>) attributes {dimension_semantics = [#tpu.dimension_semantics<parallel>], iteration_bounds = array<i64: 8>, scalar_prefetch = 0 : i64, scratch_operands = 0 : i64, tpu.core_type = #tpu.core_type<tc>, window_params = [{transform_indices = @transform_0, window_bounds = array<i64: 36, 2048>}, {pipeline_mode = #tpu.pipeline_mode<synchronous>, transform_indices = @transform_1, window_bounds = array<i64: 32, 36>}, {pipeline_mode = #tpu.pipeline_mode<synchronous>, transform_indices = @transform_2, window_bounds = array<i64: 32, 1>}, {transform_indices = @transform_3, window_bounds = array<i64: 32, 512>}]} {
    %c0 = arith.constant 0 : index
    %c0_0 = arith.constant 0 : index
    %0 = vector.load %arg2[%c0, %c0_0] : memref<32x36xbf16, #tpu.memory_space<vmem>>, vector<32x36xbf16>
    %c0_1 = arith.constant 0 : index
    %c0_2 = arith.constant 0 : index
    %1 = vector.load %arg1[%c0_1, %c0_2] : memref<36x2048xbf16, #tpu.memory_space<vmem>>, vector<36x2048xbf16>
    %cst = arith.constant dense<0.000000e+00> : vector<32x2048xf32>
    %2 = tpu.matmul %0, %1, %cst {dimension_numbers = #tpu.dot_dimension_numbers<[1], [0], [0], [1], [0, 0, 1, 1], [], []>} : vector<32x36xbf16>, vector<36x2048xbf16>, vector<32x2048xf32> -> vector<32x2048xf32>
    %3 = vector.extract_strided_slice %2 {offsets = [0, 0], sizes = [32, 512], strides = [1, 1]} : vector<32x2048xf32> to vector<32x512xf32>
    %4 = vector.extract_strided_slice %2 {offsets = [0, 512], sizes = [32, 512], strides = [1, 1]} : vector<32x2048xf32> to vector<32x512xf32>
    %5 = arith.maximumf %3, %4 : vector<32x512xf32>
    %6 = vector.extract_strided_slice %2 {offsets = [0, 1024], sizes = [32, 512], strides = [1, 1]} : vector<32x2048xf32> to vector<32x512xf32>
    %7 = arith.maximumf %5, %6 : vector<32x512xf32>
    %8 = vector.extract_strided_slice %2 {offsets = [0, 1536], sizes = [32, 512], strides = [1, 1]} : vector<32x2048xf32> to vector<32x512xf32>
    %9 = arith.maximumf %7, %8 : vector<32x512xf32>
    %c0_3 = arith.constant 0 : index
    %c0_4 = arith.constant 0 : index
    %10 = vector.load %arg3[%c0_3, %c0_4] : memref<32x1xf32, #tpu.memory_space<vmem>>, vector<32x1xf32>
    %11 = vector.broadcast %10 : vector<32x1xf32> to vector<32x512xf32>
    %12 = arith.addf %9, %11 : vector<32x512xf32>
    %cst_5 = arith.constant 0.00999999977 : f32
    %13 = vector.broadcast %cst_5 : f32 to vector<32x512xf32>
    %14 = arith.mulf %13, %12 : vector<32x512xf32>
    %15 = arith.maximumf %12, %14 : vector<32x512xf32>
    %c0_6 = arith.constant 0 : index
    %c0_7 = arith.constant 0 : index
    %16 = vector.load %arg4[%c0_6, %c0_7] : memref<32x512xf32, #tpu.memory_space<vmem>>, vector<32x512xf32>
    tpu.vector_store %arg4[%c0_6, %c0_7], %15 {strides = array<i32>} : memref<32x512xf32, #tpu.memory_space<vmem>>, vector<32x512xf32>,
    return
  }
  func.func @transform_0(%arg0: i32) -> (i32, i32) {
    %c0_i32 = arith.constant 0 : i32
    %c0_i32_0 = arith.constant 0 : i32
    return %c0_i32, %arg0 : i32, i32
  }
  func.func @transform_1(%arg0: i32) -> (i32, i32) {
    %c0_i32 = arith.constant 0 : i32
    %c0_i32_0 = arith.constant 0 : i32
    %c0_i32_1 = arith.constant 0 : i32
    return %c0_i32, %c0_i32_0 : i32, i32
  }
  func.func @transform_2(%arg0: i32) -> (i32, i32) {
    %c0_i32 = arith.constant 0 : i32
    %c0_i32_0 = arith.constant 0 : i32
    %c0_i32_1 = arith.constant 0 : i32
    return %c0_i32, %c0_i32_0 : i32, i32
  }
  func.func @transform_3(%arg0: i32) -> (i32, i32) {
    %c0_i32 = arith.constant 0 : i32
    %c0_i32_0 = arith.constant 0 : i32
    return %c0_i32, %arg0 : i32, i32
  }
}

module attributes {stable_mosaic.version = 11 : i64} {
  func.func @_conv_lrelu_pool_kernel(%arg0: i32, %arg1: memref<288x1024xbf16, #tpu.memory_space<vmem>>, %arg2: memref<32x288xbf16, #tpu.memory_space<vmem>>, %arg3: memref<32x1xf32, #tpu.memory_space<vmem>>, %arg4: memref<32x256xf32, #tpu.memory_space<vmem>>) attributes {dimension_semantics = [#tpu.dimension_semantics<parallel>], iteration_bounds = array<i64: 1>, scalar_prefetch = 0 : i64, scratch_operands = 0 : i64, tpu.core_type = #tpu.core_type<tc>, window_params = [{transform_indices = @transform_0, window_bounds = array<i64: 288, 1024>}, {pipeline_mode = #tpu.pipeline_mode<synchronous>, transform_indices = @transform_1, window_bounds = array<i64: 32, 288>}, {pipeline_mode = #tpu.pipeline_mode<synchronous>, transform_indices = @transform_2, window_bounds = array<i64: 32, 1>}, {transform_indices = @transform_3, window_bounds = array<i64: 32, 256>}]} {
    %c0 = arith.constant 0 : index
    %c0_0 = arith.constant 0 : index
    %0 = vector.load %arg2[%c0, %c0_0] : memref<32x288xbf16, #tpu.memory_space<vmem>>, vector<32x288xbf16>
    %c0_1 = arith.constant 0 : index
    %c0_2 = arith.constant 0 : index
    %1 = vector.load %arg1[%c0_1, %c0_2] : memref<288x1024xbf16, #tpu.memory_space<vmem>>, vector<288x1024xbf16>
    %cst = arith.constant dense<0.000000e+00> : vector<32x1024xf32>
    %2 = tpu.matmul %0, %1, %cst {dimension_numbers = #tpu.dot_dimension_numbers<[1], [0], [0], [1], [0, 0, 1, 1], [], []>} : vector<32x288xbf16>, vector<288x1024xbf16>, vector<32x1024xf32> -> vector<32x1024xf32>
    %3 = vector.extract_strided_slice %2 {offsets = [0, 0], sizes = [32, 256], strides = [1, 1]} : vector<32x1024xf32> to vector<32x256xf32>
    %4 = vector.extract_strided_slice %2 {offsets = [0, 256], sizes = [32, 256], strides = [1, 1]} : vector<32x1024xf32> to vector<32x256xf32>
    %5 = arith.maximumf %3, %4 : vector<32x256xf32>
    %6 = vector.extract_strided_slice %2 {offsets = [0, 512], sizes = [32, 256], strides = [1, 1]} : vector<32x1024xf32> to vector<32x256xf32>
    %7 = arith.maximumf %5, %6 : vector<32x256xf32>
    %8 = vector.extract_strided_slice %2 {offsets = [0, 768], sizes = [32, 256], strides = [1, 1]} : vector<32x1024xf32> to vector<32x256xf32>
    %9 = arith.maximumf %7, %8 : vector<32x256xf32>
    %c0_3 = arith.constant 0 : index
    %c0_4 = arith.constant 0 : index
    %10 = vector.load %arg3[%c0_3, %c0_4] : memref<32x1xf32, #tpu.memory_space<vmem>>, vector<32x1xf32>
    %11 = vector.broadcast %10 : vector<32x1xf32> to vector<32x256xf32>
    %12 = arith.addf %9, %11 : vector<32x256xf32>
    %cst_5 = arith.constant 0.00999999977 : f32
    %13 = vector.broadcast %cst_5 : f32 to vector<32x256xf32>
    %14 = arith.mulf %13, %12 : vector<32x256xf32>
    %15 = arith.maximumf %12, %14 : vector<32x256xf32>
    %c0_6 = arith.constant 0 : index
    %c0_7 = arith.constant 0 : index
    %16 = vector.load %arg4[%c0_6, %c0_7] : memref<32x256xf32, #tpu.memory_space<vmem>>, vector<32x256xf32>
    tpu.vector_store %arg4[%c0_6, %c0_7], %15 {strides = array<i32>} : memref<32x256xf32, #tpu.memory_space<vmem>>, vector<32x256xf32>,
    return
  }
  func.func @transform_0(%arg0: i32) -> (i32, i32) {
    %c0_i32 = arith.constant 0 : i32
    %c0_i32_0 = arith.constant 0 : i32
    return %c0_i32, %arg0 : i32, i32
  }
  func.func @transform_1(%arg0: i32) -> (i32, i32) {
    %c0_i32 = arith.constant 0 : i32
    %c0_i32_0 = arith.constant 0 : i32
    %c0_i32_1 = arith.constant 0 : i32
    return %c0_i32, %c0_i32_0 : i32, i32
  }
  func.func @transform_2(%arg0: i32) -> (i32, i32) {
    %c0_i32 = arith.constant 0 : i32
    %c0_i32_0 = arith.constant 0 : i32
    %c0_i32_1 = arith.constant 0 : i32
    return %c0_i32, %c0_i32_0 : i32, i32
  }
  func.func @transform_3(%arg0: i32) -> (i32, i32) {
    %c0_i32 = arith.constant 0 : i32
    %c0_i32_0 = arith.constant 0 : i32
    return %c0_i32, %arg0 : i32, i32
  }
}

module attributes {stable_mosaic.version = 11 : i64} {
  func.func @_conv_lrelu_pool_kernel(%arg0: i32, %arg1: memref<288x512xbf16, #tpu.memory_space<vmem>>, %arg2: memref<32x288xbf16, #tpu.memory_space<vmem>>, %arg3: memref<32x1xf32, #tpu.memory_space<vmem>>, %arg4: memref<32x128xf32, #tpu.memory_space<vmem>>) attributes {dimension_semantics = [#tpu.dimension_semantics<parallel>], iteration_bounds = array<i64: 1>, scalar_prefetch = 0 : i64, scratch_operands = 0 : i64, tpu.core_type = #tpu.core_type<tc>, window_params = [{transform_indices = @transform_0, window_bounds = array<i64: 288, 512>}, {pipeline_mode = #tpu.pipeline_mode<synchronous>, transform_indices = @transform_1, window_bounds = array<i64: 32, 288>}, {pipeline_mode = #tpu.pipeline_mode<synchronous>, transform_indices = @transform_2, window_bounds = array<i64: 32, 1>}, {transform_indices = @transform_3, window_bounds = array<i64: 32, 128>}]} {
    %c0 = arith.constant 0 : index
    %c0_0 = arith.constant 0 : index
    %0 = vector.load %arg2[%c0, %c0_0] : memref<32x288xbf16, #tpu.memory_space<vmem>>, vector<32x288xbf16>
    %c0_1 = arith.constant 0 : index
    %c0_2 = arith.constant 0 : index
    %1 = vector.load %arg1[%c0_1, %c0_2] : memref<288x512xbf16, #tpu.memory_space<vmem>>, vector<288x512xbf16>
    %cst = arith.constant dense<0.000000e+00> : vector<32x512xf32>
    %2 = tpu.matmul %0, %1, %cst {dimension_numbers = #tpu.dot_dimension_numbers<[1], [0], [0], [1], [0, 0, 1, 1], [], []>} : vector<32x288xbf16>, vector<288x512xbf16>, vector<32x512xf32> -> vector<32x512xf32>
    %3 = vector.extract_strided_slice %2 {offsets = [0, 0], sizes = [32, 128], strides = [1, 1]} : vector<32x512xf32> to vector<32x128xf32>
    %4 = vector.extract_strided_slice %2 {offsets = [0, 128], sizes = [32, 128], strides = [1, 1]} : vector<32x512xf32> to vector<32x128xf32>
    %5 = arith.maximumf %3, %4 : vector<32x128xf32>
    %6 = vector.extract_strided_slice %2 {offsets = [0, 256], sizes = [32, 128], strides = [1, 1]} : vector<32x512xf32> to vector<32x128xf32>
    %7 = arith.maximumf %5, %6 : vector<32x128xf32>
    %8 = vector.extract_strided_slice %2 {offsets = [0, 384], sizes = [32, 128], strides = [1, 1]} : vector<32x512xf32> to vector<32x128xf32>
    %9 = arith.maximumf %7, %8 : vector<32x128xf32>
    %c0_3 = arith.constant 0 : index
    %c0_4 = arith.constant 0 : index
    %10 = vector.load %arg3[%c0_3, %c0_4] : memref<32x1xf32, #tpu.memory_space<vmem>>, vector<32x1xf32>
    %11 = vector.broadcast %10 : vector<32x1xf32> to vector<32x128xf32>
    %12 = arith.addf %9, %11 : vector<32x128xf32>
    %cst_5 = arith.constant 0.00999999977 : f32
    %13 = vector.broadcast %cst_5 : f32 to vector<32x128xf32>
    %14 = arith.mulf %13, %12 : vector<32x128xf32>
    %15 = arith.maximumf %12, %14 : vector<32x128xf32>
    %c0_6 = arith.constant 0 : index
    %c0_7 = arith.constant 0 : index
    %16 = vector.load %arg4[%c0_6, %c0_7] : memref<32x128xf32, #tpu.memory_space<vmem>>, vector<32x128xf32>
    tpu.vector_store %arg4[%c0_6, %c0_7], %15 {strides = array<i32>} : memref<32x128xf32, #tpu.memory_space<vmem>>, vector<32x128xf32>,
    return
  }
  func.func @transform_0(%arg0: i32) -> (i32, i32) {
    %c0_i32 = arith.constant 0 : i32
    %c0_i32_0 = arith.constant 0 : i32
    return %c0_i32, %arg0 : i32, i32
  }
  func.func @transform_1(%arg0: i32) -> (i32, i32) {
    %c0_i32 = arith.constant 0 : i32
    %c0_i32_0 = arith.constant 0 : i32
    %c0_i32_1 = arith.constant 0 : i32
    return %c0_i32, %c0_i32_0 : i32, i32
  }
  func.func @transform_2(%arg0: i32) -> (i32, i32) {
    %c0_i32 = arith.constant 0 : i32
    %c0_i32_0 = arith.constant 0 : i32
    %c0_i32_1 = arith.constant 0 : i32
    return %c0_i32, %c0_i32_0 : i32, i32
  }
  func.func @transform_3(%arg0: i32) -> (i32, i32) {
    %c0_i32 = arith.constant 0 : i32
    %c0_i32_0 = arith.constant 0 : i32
    return %c0_i32, %arg0 : i32, i32
  }
}

</mosaic_0001>

<bundles_post_ra>
// kernel: convblock_forward.4
= control target key start
LH: loop header
LB: loop body
LE: loop exit
PB: predicated region body
PF: predicated region fallthrough
CT: control target
= control target key end

     0   :  { %s1420_s12 = smov 0   ;;  %s1422_s13 = smov 0   ;;  %s1868_s0 = inlined_call_operand.vmem [shape: bf16[36,16384], index: 0, kind: input, shape index: {}]   ;;  %s1869_s1 = inlined_call_operand.vmem [shape: bf16[32,36], index: 1, kind: input, shape index: {}]   ;;  %s1870_s2 = inlined_call_operand.vmem [shape: f32[32,1], index: 2, kind: input, shape index: {}]   ;;  %s1871_s3 = inlined_call_operand.vmem [shape: f32[32,4096], index: 3, kind: output, shape index: {}]  }
   0x1   :  { %s1424_s14 = smov 0  }
   0x2 LB: > { %s1129_s15 = sadd.s32 4294967295, %s1397_s14   ;;  %s1437_s16 = sadd.s32 1, %s1397_s14   ;;  %s1397_s14 = sphi %s1424_s14, %s1875_s14   ;;  %s1393_s13 = sphi %s1422_s13, %s1874_s13   ;;  %s1389_s12 = sphi %s1420_s12, %s1873_s12  }
   0x3   : > { %s17_s17 = ssub.s32 %s1397_s14, %s1437_s16  ;;  %s20_s18 = sadd.s32 1, %s1393_s13 }
   0x4   : > { %p18_p0 = scmp.eq.s32.totalorder %s17_s17, 0  ;;  %p27_p1 = scmp.ne.s32.totalorder %s1393_s13, %s1389_s12 }
   0x5   : > { %p28_p2 = scmp.eq.s32.totalorder %s1397_s14, 0  ;;  %p99_p3 = scmp.eq.s32.totalorder %s1129_s15, 7 }
   0x6   : > { %s1448_s19 = scalar_select %p18_p0, %s1393_s13, %s20_s18  }
   0x7   : > { %p29_p4 = por %p28_p2, %p27_p1  ;;  %p1450_p5 = por %p99_p3, %p27_p1 }
   0x8   : > { %p1132_p6 = scmp.ge.s32.totalorder %s1397_s14, 8 }
   0xa   : > { %127 = sbr.rel (%p1132_p6) target bundleno = 59 (0x3b), region = 24 }
   0xf   : > { %130 = sbr.rel (!%p29_p4) target bundleno = 59 (0x3b), region = 28  ;;  %s132_s21 = sand.u32 (%p29_p4), 1, %s1393_s13  }
  0x10   : > { %s1310_s22 = sshll.u32 (%p29_p4), %s1397_s14, 6  ;;  %s1346_s23 = smul.u32 (%p29_p4), 320, %s132_s21 }
  0x11   : > { %s1460_s26 = scalar_lea.vmem (%p29_p4), %s1868_s0, %s1310_s22 }
  0x12   : > { %v150_v0 = vld [vmem:[%s1460_s26] sm:$0xff] (%p29_p4)  ;;  %v152_v1 = vld [vmem:[%s1460_s26 + $0x8] sm:$0xff] (%p29_p4)  ;;  %v154_v2 = vld [vmem:[%s1460_s26 + $0x10] sm:$0xff] (%p29_p4)  ;;  %s1465_s27 = scalar_lea.vmem (%p29_p4), [#allocation2], %s1346_s23 }
  0x13   : > { %151 = vst [vmem:[%s1465_s27] sm:$0xff] (%p29_p4), %v150_v0  ;;  %v156_v3 = vld [vmem:[%s1460_s26 + $0x18] sm:$0xff] (%p29_p4)  ;;  %v158_v4 = vld [vmem:[%s1460_s26 + $0x20] sm:$0xff] (%p29_p4)  ;;  %v160_v5 = vld [vmem:[%s1460_s26 + $0x28] sm:$0xff] (%p29_p4) }
  0x14   : > { %153 = vst [vmem:[%s1465_s27 + $0x8] sm:$0xff] %v152_v1  ;;  %v162_v6 = vld [vmem:[%s1460_s26 + $0x30] sm:$0xff]  ;;  %v164_v7 = vld [vmem:[%s1460_s26 + $0x38] sm:$0xff]  ;;  %v166_v8 = vld [vmem:[%s1460_s26 + $0x200] sm:$0xff] }
  0x15   : > { %155 = vst [vmem:[%s1465_s27 + $0x10] sm:$0xff] %v154_v2  ;;  %v168_v9 = vld [vmem:[%s1460_s26 + $0x208] sm:$0xff]  ;;  %v170_v10 = vld [vmem:[%s1460_s26 + $0x210] sm:$0xff]  ;;  %v172_v11 = vld [vmem:[%s1460_s26 + $0x218] sm:$0xff] }
  0x16   : > { %157 = vst [vmem:[%s1465_s27 + $0x18] sm:$0xff] %v156_v3  ;;  %v174_v12 = vld [vmem:[%s1460_s26 + $0x220] sm:$0xff]  ;;  %v176_v13 = vld [vmem:[%s1460_s26 + $0x228] sm:$0xff]  ;;  %v178_v14 = vld [vmem:[%s1460_s26 + $0x230] sm:$0xff] }
  0x17   : > { %159 = vst [vmem:[%s1465_s27 + $0x20] sm:$0xff] %v158_v4  ;;  %v180_v15 = vld [vmem:[%s1460_s26 + $0x238] sm:$0xff]  ;;  %v182_v16 = vld [vmem:[%s1460_s26 + $0x400] sm:$0xff]  ;;  %v184_v17 = vld [vmem:[%s1460_s26 + $0x408] sm:$0xff] }
  0x18   : > { %161 = vst [vmem:[%s1465_s27 + $0x28] sm:$0xff] %v160_v5  ;;  %v186_v18 = vld [vmem:[%s1460_s26 + $0x410] sm:$0xff]  ;;  %v188_v19 = vld [vmem:[%s1460_s26 + $0x418] sm:$0xff]  ;;  %v190_v20 = vld [vmem:[%s1460_s26 + $0x420] sm:$0xff] }
  0x19   : > { %163 = vst [vmem:[%s1465_s27 + $0x30] sm:$0xff] %v162_v6  ;;  %v192_v21 = vld [vmem:[%s1460_s26 + $0x428] sm:$0xff]  ;;  %v194_v22 = vld [vmem:[%s1460_s26 + $0x430] sm:$0xff]  ;;  %v196_v23 = vld [vmem:[%s1460_s26 + $0x438] sm:$0xff] }
  0x1a   : > { %165 = vst [vmem:[%s1465_s27 + $0x38] sm:$0xff] %v164_v7  ;;  %v198_v24 = vld [vmem:[%s1460_s26 + $0x600] sm:$0xff]  ;;  %v200_v25 = vld [vmem:[%s1460_s26 + $0x608] sm:$0xff]  ;;  %v202_v26 = vld [vmem:[%s1460_s26 + $0x610] sm:$0xff] }
  0x1b   : > { %167 = vst [vmem:[%s1465_s27 + $0x40] sm:$0xff] %v166_v8  ;;  %v204_v27 = vld [vmem:[%s1460_s26 + $0x618] sm:$0xff]  ;;  %v206_v28 = vld [vmem:[%s1460_s26 + $0x620] sm:$0xff]  ;;  %v208_v29 = vld [vmem:[%s1460_s26 + $0x628] sm:$0xff] }
  0x1c   : > { %169 = vst [vmem:[%s1465_s27 + $0x48] sm:$0xff] %v168_v9  ;;  %v210_v30 = vld [vmem:[%s1460_s26 + $0x630] sm:$0xff]  ;;  %v212_v31 = vld [vmem:[%s1460_s26 + $0x638] sm:$0xff]  ;;  %v214_v32 = vld [vmem:[%s1460_s26 + $0x800] sm:$0xff] }
  0x1d   : > { %171 = vst [vmem:[%s1465_s27 + $0x50] sm:$0xff] %v170_v10  ;;  %v216_v33 = vld [vmem:[%s1460_s26 + $0x808] sm:$0xff]  ;;  %v218_v34 = vld [vmem:[%s1460_s26 + $0x810] sm:$0xff]  ;;  %v220_v35 = vld [vmem:[%s1460_s26 + $0x818] sm:$0xff] }
  0x1e   : > { %173 = vst [vmem:[%s1465_s27 + $0x58] sm:$0xff] %v172_v11  ;;  %v222_v36 = vld [vmem:[%s1460_s26 + $0x820] sm:$0xff]  ;;  %v224_v37 = vld [vmem:[%s1460_s26 + $0x828] sm:$0xff]  ;;  %v226_v38 = vld [vmem:[%s1460_s26 + $0x830] sm:$0xff] }
  0x1f   : > { %175 = vst [vmem:[%s1465_s27 + $0x60] sm:$0xff] %v174_v12  ;;  %v228_v39 = vld [vmem:[%s1460_s26 + $0x838] sm:$0xff] }
  0x20   : > { %177 = vst [vmem:[%s1465_s27 + $0x68] sm:$0xff] %v176_v13 }
  0x21   : > { %179 = vst [vmem:[%s1465_s27 + $0x70] sm:$0xff] %v178_v14 }
  0x22   : > { %181 = vst [vmem:[%s1465_s27 + $0x78] sm:$0xff] %v180_v15 }
  0x23   : > { %183 = vst [vmem:[%s1465_s27 + $0x80] sm:$0xff] %v182_v16 }
  0x24   : > { %185 = vst [vmem:[%s1465_s27 + $0x88] sm:$0xff] %v184_v17 }
  0x25   : > { %187 = vst [vmem:[%s1465_s27 + $0x90] sm:$0xff] %v186_v18 }
  0x26   : > { %189 = vst [vmem:[%s1465_s27 + $0x98] sm:$0xff] %v188_v19 }
  0x27   : > { %191 = vst [vmem:[%s1465_s27 + $0xa0] sm:$0xff] %v190_v20 }
  0x28   : > { %193 = vst [vmem:[%s1465_s27 + $0xa8] sm:$0xff] %v192_v21 }
  0x29   : > { %195 = vst [vmem:[%s1465_s27 + $0xb0] sm:$0xff] %v194_v22 }
  0x2a   : > { %197 = vst [vmem:[%s1465_s27 + $0xb8] sm:$0xff] %v196_v23 }
  0x2b   : > { %199 = vst [vmem:[%s1465_s27 + $0xc0] sm:$0xff] %v198_v24 }
  0x2c   : > { %201 = vst [vmem:[%s1465_s27 + $0xc8] sm:$0xff] %v200_v25 }
  0x2d   : > { %203 = vst [vmem:[%s1465_s27 + $0xd0] sm:$0xff] %v202_v26 }
  0x2e   : > { %205 = vst [vmem:[%s1465_s27 + $0xd8] sm:$0xff] %v204_v27 }
  0x2f   : > { %207 = vst [vmem:[%s1465_s27 + $0xe0] sm:$0xff] %v206_v28 }
  0x30   : > { %209 = vst [vmem:[%s1465_s27 + $0xe8] sm:$0xff] %v208_v29 }
  0x31   : > { %211 = vst [vmem:[%s1465_s27 + $0xf0] sm:$0xff] %v210_v30 }
  0x32   : > { %213 = vst [vmem:[%s1465_s27 + $0xf8] sm:$0xff] %v212_v31 }
  0x33   : > { %215 = vst [vmem:[%s1465_s27 + $0x100] sm:$0xff] %v214_v32 }
  0x34   : > { %217 = vst [vmem:[%s1465_s27 + $0x108] sm:$0xff] %v216_v33 }
  0x35   : > { %219 = vst [vmem:[%s1465_s27 + $0x110] sm:$0xff] %v218_v34 }
  0x36   : > { %221 = vst [vmem:[%s1465_s27 + $0x118] sm:$0xff] %v220_v35 }
  0x37   : > { %223 = vst [vmem:[%s1465_s27 + $0x120] sm:$0xff] %v222_v36 }
  0x38   : > { %225 = vst [vmem:[%s1465_s27 + $0x128] sm:$0xff] %v224_v37 }
  0x39   : > { %227 = vst [vmem:[%s1465_s27 + $0x130] sm:$0xff] %v226_v38 }
  0x3a   : > { %229 = vst [vmem:[%s1465_s27 + $0x138] sm:$0xff] %v228_v39 }
  0x3b PF: > { %p1135_p7 = scmp.ge.s32.totalorder %s1397_s14, 1  ;;  %p234_p8 = scmp.lt.s32.totalorder %s1397_s14, 9 }
  0x3d   : > { %p235_p9 = pnand %p1135_p7, %p234_p8 }
  0x3e   : > { %s241_s28 = sand.u32 (!%p235_p9), 1, %s1389_s12  }
  0x3f   : > { %238 = sbr.rel (%p235_p9) target bundleno = 356 (0x164), region = 51  ;;  %s1136_s23 = sshll.u32 (!%p235_p9), %s241_s28, 7 }
  0x40   : > { %s1347_s29 = smul.u32 (!%p235_p9), 320, %s241_s28  ;;  %s1791_s12 = scalar_lea.vmem (!%p235_p9), [#allocation3], %s1136_s23 }
  0x42   : > { %s1549_s30 = scalar_lea.vmem (!%p235_p9), [#allocation2], %s1347_s29 }
  0x44   : > { %v302_v40 = vld [vmem:[%s1549_s30 + $0x100] sm:$0x33]  ;;  %v303_v41 = vld [vmem:[%s1549_s30 + $0x108] sm:$0x33]  ;;  %vm527_vm0 = vcmask 1041408   ;;  %vm520_vm1 = vcmask 293888  }
  0x45   : > { %v424_v42 = vunpack.c.l.b16 %v302_v40  ;;  %v425_v43 = vunpack.c.h.b16 %v302_v40  ;;  %v426_v44 = vunpack.c.l.b16 %v303_v41  ;;  %v427_v45 = vunpack.c.h.b16 %v303_v41  ;;  %v1211_v46 = vld [vmem:[%s1549_s30 + $0x80] sm:$0xf]  ;;  %v1329_v52 = vld [vmem:[%s1549_s30 + $0x84] sm:$0xf]  ;;  %v1219_v54 = vld [vmem:[%s1549_s30 + $0x88] sm:$0xf] }
  0x46   : > { %v1337_v47 = vld [vmem:[%s1549_s30 + $0xbc] sm:$0xf0]  ;;  %v1213_v53 = vld [vmem:[%s1549_s30 + $0xc0] sm:$0xf0]  ;;  %v1338_v55 = vld [vmem:[%s1549_s30 + $0xc4] sm:$0xf0] }
  0x47   : > { %v472_v48 = vpack.c.b16 %v424_v42, %v424_v42  ;;  %v473_v49 = vpack.c.b16 %v425_v43, %v425_v43  ;;  %v474_v50 = vpack.c.b16 %v426_v44, %v426_v44  ;;  %v475_v51 = vpack.c.b16 %v427_v45, %v427_v45  ;;  %v1330_v56 = vld [vmem:[%s1549_s30 + $0x8c] sm:$0xf]  ;;  %v1147_v62 = vld [vmem:[%s1549_s30] sm:$0xf]  ;;  %v1313_v2 = vld [vmem:[%s1549_s30 + $0x4] sm:$0xf] }
  0x48   : > { %v1221_v57 = vld [vmem:[%s1549_s30 + $0xc8] sm:$0xf0]  ;;  %v1212_v63 = vor.u32 %v1337_v47, %v1211_v46  ;;  %v1216_v0 = vor.u32 %v1329_v52, %v1213_v53  ;;  %v1321_v1 = vld [vmem:[%s1549_s30 + $0x3c] sm:$0xf0]  ;;  %v305_v3 = vld [vmem:[%s1549_s30 + $0x118] sm:$0x33]  ;;  %v1220_v4 = vor.u32 %v1338_v55, %v1219_v54 }
  0x49   : > { %v529_v58 = vsel %vm527_vm0, %v472_v48, 0  ;;  %v532_v59 = vsel %vm527_vm0, %v473_v49, 0  ;;  %v535_v60 = vsel %vm527_vm0, %v474_v50, 0  ;;  %v538_v61 = vsel %vm527_vm0, %v475_v51, 0  ;;  %v1149_v6 = vld [vmem:[%s1549_s30 + $0x40] sm:$0xf0] }
  0x4a   : > { %581 = vmatpush.bf16.msra.mxu0 %v529_v58  ;;  %600 = vmatpush.bf16.msra.mxu1 %v532_v59  ;;  %v1224_v5 = vor.u32 %v1330_v56, %v1221_v57  ;;  %v1155_v7 = vld [vmem:[%s1549_s30 + $0x8] sm:$0xf]  ;;  %v430_v8 = vunpack.c.l.b16 %v305_v3  ;;  %v431_v9 = vunpack.c.h.b16 %v305_v3  ;;  %v304_v10 = vld [vmem:[%s1549_s30 + $0x110] sm:$0x33]  ;;  %v1314_v12 = vld [vmem:[%s1549_s30 + $0xc] sm:$0xf]  ;;  %v1148_v18 = vor.u32 %v1321_v1, %v1147_v62 }
  0x4b   : > { %619 = vmatpush.bf16.msra.mxu2 %v535_v60  ;;  %638 = vmatpush.bf16.msra.mxu3 %v538_v61  ;;  %v1322_v11 = vld [vmem:[%s1549_s30 + $0x44] sm:$0xf0]  ;;  %v1157_v13 = vld [vmem:[%s1549_s30 + $0x48] sm:$0xf0]  ;;  %v428_v14 = vunpack.c.l.b16 %v304_v10  ;;  %v429_v15 = vunpack.c.h.b16 %v304_v10  ;;  %v1152_v19 = vor.u32 %v1313_v2, %v1149_v6  ;;  %v1578_v22 = vld [vmem:[%s1869_s1] sm:$0xff]  ;;  %s1345_s24 = sshll.u32 (%p1450_p5), %s1129_s15, 5 }
  0x4c   : > { %v478_v16 = vpack.c.b16 %v430_v8, %v430_v8  ;;  %v479_v17 = vpack.c.b16 %v431_v9, %v431_v9  ;;  %v1156_v20 = vor.u32 %v1322_v11, %v1155_v7  ;;  %v1160_v21 = vor.u32 %v1314_v12, %v1157_v13  ;;  %v1235_v25 = vld [vmem:[%s1549_s30 + $0x98] sm:$0xf]  ;;  %v1332_v29 = vld [vmem:[%s1549_s30 + $0x9c] sm:$0xf]  ;;  %v1227_v31 = vld [vmem:[%s1549_s30 + $0x90] sm:$0xf]  ;;  %s1025_s20 = scalar_lea.vmem (%p1450_p5), %s1871_s3, %s1345_s24 }
  0x4d   : > { %v476_v23 = vpack.c.b16 %v428_v14, %v428_v14  ;;  %v477_v24 = vpack.c.b16 %v429_v15, %v429_v15  ;;  %v1340_v26 = vld [vmem:[%s1549_s30 + $0xd4] sm:$0xf0]  ;;  %v1237_v30 = vld [vmem:[%s1549_s30 + $0xd8] sm:$0xf0]  ;;  %v1339_v32 = vld [vmem:[%s1549_s30 + $0xcc] sm:$0xf0] }
  0x4e   : > { %582 = vmatpush.bf16.msra.mxu0 %v1212_v63  ;;  %601 = vmatpush.bf16.msra.mxu1 %v1216_v0  ;;  %v547_v27 = vsel %vm527_vm0, %v478_v16, 0  ;;  %v550_v28 = vsel %vm527_vm0, %v479_v17, 0  ;;  %v1331_v33 = vld [vmem:[%s1549_s30 + $0x94] sm:$0xf]  ;;  %v1236_v37 = vor.u32 %v1340_v26, %v1235_v25  ;;  %v1240_v38 = vor.u32 %v1332_v29, %v1237_v30  ;;  %v1171_v39 = vld [vmem:[%s1549_s30 + $0x18] sm:$0xf] }
  0x4f   : > { %620 = vmatpush.bf16.msra.mxu2 %v1220_v4  ;;  %639 = vmatpush.bf16.msra.mxu3 %v1224_v5  ;;  %v1229_v34 = vld [vmem:[%s1549_s30 + $0xd0] sm:$0xf0]  ;;  %v541_v35 = vsel %vm527_vm0, %v476_v23, 0  ;;  %v544_v36 = vsel %vm527_vm0, %v477_v24, 0  ;;  %v1324_v40 = vld [vmem:[%s1549_s30 + $0x54] sm:$0xf0]  ;;  %v1228_v43 = vor.u32 %v1339_v32, %v1227_v31 }
  0x50   : > { %v1316_v41 = vld [vmem:[%s1549_s30 + $0x1c] sm:$0xf]  ;;  %v1232_v44 = vor.u32 %v1331_v33, %v1229_v34  ;;  %v307_v45 = vld [vmem:[%s1549_s30 + $0x128] sm:$0x33]  ;;  %v306_v46 = vld [vmem:[%s1549_s30 + $0x120] sm:$0x33]  ;;  %v1172_v52 = vor.u32 %v1324_v40, %v1171_v39 }
  0x51   : > { %v1173_v42 = vld [vmem:[%s1549_s30 + $0x58] sm:$0xf0]  ;;  %v1163_v47 = vld [vmem:[%s1549_s30 + $0x10] sm:$0xf]  ;;  %v434_v48 = vunpack.c.l.b16 %v307_v45  ;;  %v435_v49 = vunpack.c.h.b16 %v307_v45  ;;  %v432_v50 = vunpack.c.l.b16 %v306_v46  ;;  %v433_v51 = vunpack.c.h.b16 %v306_v46  ;;  %v1315_v55 = vld [vmem:[%s1549_s30 + $0x14] sm:$0xf] }
  0x52   : > { %583 = vmatpush.bf16.msra.mxu0 %v1148_v18  ;;  %602 = vmatpush.bf16.msra.mxu1 %v1152_v19  ;;  %v1176_v53 = vor.u32 %v1316_v41, %v1173_v42  ;;  %v1323_v54 = vld [vmem:[%s1549_s30 + $0x4c] sm:$0xf0]  ;;  %v1165_v56 = vld [vmem:[%s1549_s30 + $0x50] sm:$0xf0]  ;;  %v1251_v61 = vld [vmem:[%s1549_s30 + $0xa8] sm:$0xf] }
  0x53   : > { %621 = vmatpush.bf16.msra.mxu2 %v1156_v20  ;;  %640 = vmatpush.bf16.msra.mxu3 %v1160_v21  ;;  %v482_v57 = vpack.c.b16 %v434_v48, %v434_v48  ;;  %v483_v58 = vpack.c.b16 %v435_v49, %v435_v49  ;;  %v480_v59 = vpack.c.b16 %v432_v50, %v432_v50  ;;  %v1342_v62 = vld [vmem:[%s1549_s30 + $0xe4] sm:$0xf0]  ;;  %v1334_v63 = vld [vmem:[%s1549_s30 + $0xac] sm:$0xf]  ;;  %v1243_v10 = vld [vmem:[%s1549_s30 + $0xa0] sm:$0xf] }
  0x54   : > { %v481_v60 = vpack.c.b16 %v433_v51, %v433_v51  ;;  %v1253_v0 = vld [vmem:[%s1549_s30 + $0xe8] sm:$0xf0]  ;;  %v1164_v1 = vor.u32 %v1323_v54, %v1163_v47  ;;  %v1168_v2 = vor.u32 %v1315_v55, %v1165_v56  ;;  %v1252_v7 = vor.u32 %v1342_v62, %v1251_v61  ;;  %v1341_v11 = vld [vmem:[%s1549_s30 + $0xdc] sm:$0xf0]  ;;  %v1333_v12 = vld [vmem:[%s1549_s30 + $0xa4] sm:$0xf] }
  0x55   : > { %1273 = vmatmul.msk.bf16.vlgmr.msra.gmra.mxu0 %vm520_vm1, %v1578_v22  ;;  %1275 = vmatmul.msk.bf16.vlgmr.msra.gmra.mxu1 %vm520_vm1, %v1578_v22  ;;  %v559_v3 = vsel %vm527_vm0, %v482_v57, 0  ;;  %v562_v4 = vsel %vm527_vm0, %v483_v58, 0  ;;  %v553_v5 = vsel %vm527_vm0, %v480_v59, 0  ;;  %v1256_v8 = vor.u32 %v1334_v63, %v1253_v0  ;;  %v1621_v9 = vld [vmem:[%s1869_s1 + $0x8] sm:$0xff]  ;;  %v1245_v14 = vld [vmem:[%s1549_s30 + $0xe0] sm:$0xf0] }
  0x56   : > { %1277 = vmatmul.msk.bf16.vlgmr.msra.gmra.mxu2 %vm520_vm1, %v1578_v22  ;;  %1279 = vmatmul.msk.bf16.vlgmr.msra.gmra.mxu3 %vm520_vm1, %v1578_v22  ;;  %v556_v6 = vsel %vm527_vm0, %v481_v60, 0  ;;  %v1244_v13 = vor.u32 %v1341_v11, %v1243_v10  ;;  %v1187_v15 = vld [vmem:[%s1549_s30 + $0x28] sm:$0xf]  ;;  %v1248_v17 = vor.u32 %v1333_v12, %v1245_v14  ;;  %v1318_v19 = vld [vmem:[%s1549_s30 + $0x2c] sm:$0xf] }
  0x57   : > { %695 = vmatpush.bf16.msrb.mxu2 %v547_v27  ;;  %714 = vmatpush.bf16.msrb.mxu3 %v550_v28  ;;  %v1326_v16 = vld [vmem:[%s1549_s30 + $0x64] sm:$0xf0]  ;;  %v1189_v20 = vld [vmem:[%s1549_s30 + $0x68] sm:$0xf0]  ;;  %v1179_v21 = vld [vmem:[%s1549_s30 + $0x20] sm:$0xf] }
  0x58   : > { %657 = vmatpush.bf16.msrb.mxu0 %v541_v35  ;;  %676 = vmatpush.bf16.msrb.mxu1 %v544_v36  ;;  %v1188_v18 = vor.u32 %v1326_v16, %v1187_v15  ;;  %v1192_v23 = vor.u32 %v1318_v19, %v1189_v20  ;;  %v1325_v24 = vld [vmem:[%s1549_s30 + $0x5c] sm:$0xf0]  ;;  %v1317_v25 = vld [vmem:[%s1549_s30 + $0x24] sm:$0xf]  ;;  %v309_v29 = vld [vmem:[%s1549_s30 + $0x138] sm:$0x33] }
  0x59   : > { %v1181_v26 = vld [vmem:[%s1549_s30 + $0x60] sm:$0xf0]  ;;  %v1180_v27 = vor.u32 %v1325_v24, %v1179_v21  ;;  %v308_v30 = vld [vmem:[%s1549_s30 + $0x130] sm:$0x33]  ;;  %v438_v31 = vunpack.c.l.b16 %v309_v29  ;;  %v439_v32 = vunpack.c.h.b16 %v309_v29  ;;  %v1267_v35 = vld [vmem:[%s1549_s30 + $0xb8] sm:$0xf] }
  0x5a   : > { %v1184_v28 = vor.u32 %v1317_v25, %v1181_v26  ;;  %v436_v33 = vunpack.c.l.b16 %v308_v30  ;;  %v437_v34 = vunpack.c.h.b16 %v308_v30  ;;  %v1344_v40 = vld [vmem:[%s1549_s30 + $0xf4] sm:$0xf0]  ;;  %v1336_v41 = vld [vmem:[%s1549_s30 + $0xbc] sm:$0xf]  ;;  %v1259_v49 = vld [vmem:[%s1549_s30 + $0xb0] sm:$0xf] }
  0x5b   : > { %696 = vmatpush.bf16.msrb.mxu2 %v1236_v37  ;;  %715 = vmatpush.bf16.msrb.mxu3 %v1240_v38  ;;  %v486_v36 = vpack.c.b16 %v438_v31, %v438_v31  ;;  %v487_v37 = vpack.c.b16 %v439_v32, %v439_v32  ;;  %v1269_v42 = vld [vmem:[%s1549_s30 + $0xf8] sm:$0xf0]  ;;  %v1268_v47 = vor.u32 %v1344_v40, %v1267_v35  ;;  %v1343_v50 = vld [vmem:[%s1549_s30 + $0xec] sm:$0xf0]  ;;  %v1335_v51 = vld [vmem:[%s1549_s30 + $0xb4] sm:$0xf] }
  0x5c   : > { %658 = vmatpush.bf16.msrb.mxu0 %v1228_v43  ;;  %677 = vmatpush.bf16.msrb.mxu1 %v1232_v44  ;;  %v484_v38 = vpack.c.b16 %v436_v33, %v436_v33  ;;  %v485_v39 = vpack.c.b16 %v437_v34, %v437_v34  ;;  %v1272_v48 = vor.u32 %v1336_v41, %v1269_v42  ;;  %v1203_v54 = vld [vmem:[%s1549_s30 + $0x38] sm:$0xf]  ;;  %v1320_v58 = vld [vmem:[%s1549_s30 + $0x3c] sm:$0xf]  ;;  %v1195_v60 = vld [vmem:[%s1549_s30 + $0x30] sm:$0xf] }
  0x5d   : > { %v571_v43 = vsel %vm527_vm0, %v486_v36, 0  ;;  %v574_v44 = vsel %vm527_vm0, %v487_v37, 0  ;;  %v1328_v55 = vld [vmem:[%s1549_s30 + $0x74] sm:$0xf0]  ;;  %v1205_v59 = vld [vmem:[%s1549_s30 + $0x78] sm:$0xf0] }
  0x5e   : > { %v565_v45 = vsel %vm527_vm0, %v484_v38, 0  ;;  %v568_v46 = vsel %vm527_vm0, %v485_v39, 0  ;;  %v1204_v57 = vor.u32 %v1328_v55, %v1203_v54  ;;  %v1208_v61 = vor.u32 %v1320_v58, %v1205_v59  ;;  %v1327_v62 = vld [vmem:[%s1549_s30 + $0x6c] sm:$0xf0]  ;;  %v1319_v63 = vld [vmem:[%s1549_s30 + $0x34] sm:$0xf] }
  0x5f   : > { %697 = vmatpush.bf16.msrb.mxu2 %v1172_v52  ;;  %716 = vmatpush.bf16.msrb.mxu3 %v1176_v53  ;;  %v1260_v52 = vor.u32 %v1343_v50, %v1259_v49  ;;  %v1261_v53 = vld [vmem:[%s1549_s30 + $0xf0] sm:$0xf0] }
  0x60   : > { %659 = vmatpush.bf16.msrb.mxu0 %v1164_v1  ;;  %678 = vmatpush.bf16.msrb.mxu1 %v1168_v2  ;;  %v1264_v56 = vor.u32 %v1335_v51, %v1261_v53  ;;  %v1197_v0 = vld [vmem:[%s1549_s30 + $0x70] sm:$0xf0]  ;;  %v1196_v1 = vor.u32 %v1327_v62, %v1195_v60 }
  0x61   : > { %v1200_v2 = vor.u32 %v1319_v63, %v1197_v0 }
  0x63   : > { %771 = vmatpush.bf16.msra.mxu2 %v559_v3  ;;  %790 = vmatpush.bf16.msra.mxu3 %v562_v4  ;;  %v928_v3 = vld [vmem:[%s1870_s2] sm:$0xff]  ;;  %v1399_v4 = vmov 0  }
  0x64   : > { %733 = vmatpush.bf16.msra.mxu0 %v553_v5  ;;  %752 = vmatpush.bf16.msra.mxu1 %v556_v6  ;;  %v929_v5 = vld [vmem:[%s1870_s2 + $0x8] sm:$0xff]  ;;  %v930_v6 = vld [vmem:[%s1870_s2 + $0x10] sm:$0xff] }
  0x65   : > { %1274 = vmatmul.msk.bf16.gmra.mxu0 %vm520_vm1, %v1621_v9  ;;  %1276 = vmatmul.msk.bf16.gmra.mxu1 %vm520_vm1, %v1621_v9 }
  0x66   : > { %1278 = vmatmul.msk.bf16.gmra.mxu2 %vm520_vm1, %v1621_v9  ;;  %1280 = vmatmul.msk.bf16.gmra.mxu3 %vm520_vm1, %v1621_v9 }
  0x67   : > { %772 = vmatpush.bf16.msra.mxu2 %v1252_v7  ;;  %791 = vmatpush.bf16.msra.mxu3 %v1256_v8  ;;  %v931_v7 = vld [vmem:[%s1870_s2 + $0x18] sm:$0xff] }
  0x68   : > { %734 = vmatpush.bf16.msra.mxu0 %v1244_v13  ;;  %753 = vmatpush.bf16.msra.mxu1 %v1248_v17 }
  0x69   : > { %1373 = vset.pattern.permute.xlu0 %v1399_v4  ;;  %1374 = vset.pattern.permute.xlu1 %v1399_v4 }
  0x6a   : > { %934 = vperm.xlu0 %1373, %v928_v3   ;;  %944 = vperm.xlu1 %1374, %v930_v6  }
  0x6b   : > { %773 = vmatpush.bf16.msra.mxu2 %v1188_v18  ;;  %792 = vmatpush.bf16.msra.mxu3 %v1192_v23 }
  0x6c   : > { %735 = vmatpush.bf16.msra.mxu0 %v1180_v27  ;;  %754 = vmatpush.bf16.msra.mxu1 %v1184_v28 }
  0x72   : > { %939 = vperm.xlu0 %1373, %v929_v5   ;;  %949 = vperm.xlu1 %1374, %v931_v7  }
  0x75   : > { %1281 = vmatmul.msk.bf16.vlgmr.msrb.gmra.mxu0 %vm520_vm1, %v1578_v22  ;;  %1283 = vmatmul.msk.bf16.vlgmr.msrb.gmra.mxu1 %vm520_vm1, %v1578_v22 }
  0x76   : > { %1285 = vmatmul.msk.bf16.vlgmr.msrb.gmra.mxu2 %vm520_vm1, %v1578_v22  ;;  %1287 = vmatmul.msk.bf16.vlgmr.msrb.gmra.mxu3 %vm520_vm1, %v1578_v22 }
  0x77   : > { %847 = vmatpush.bf16.msrb.mxu2 %v571_v43  ;;  %866 = vmatpush.bf16.msrb.mxu3 %v574_v44 }
  0x78   : > { %809 = vmatpush.bf16.msrb.mxu0 %v565_v45  ;;  %828 = vmatpush.bf16.msrb.mxu1 %v568_v46 }
  0x7b   : > { %848 = vmatpush.bf16.msrb.mxu2 %v1268_v47  ;;  %867 = vmatpush.bf16.msrb.mxu3 %v1272_v48 }
  0x7c   : > { %810 = vmatpush.bf16.msrb.mxu0 %v1260_v52  ;;  %829 = vmatpush.bf16.msrb.mxu1 %v1264_v56 }
  0x7f   : > { %849 = vmatpush.bf16.msrb.mxu2 %v1204_v57  ;;  %868 = vmatpush.bf16.msrb.mxu3 %v1208_v61 }
  0x80   : > { %811 = vmatpush.bf16.msrb.mxu0 %v1196_v1  ;;  %830 = vmatpush.bf16.msrb.mxu1 %v1200_v2 }
  0x85   : > { %1282 = vmatmul.msk.bf16.gmra.mxu0 %vm520_vm1, %v1621_v9  ;;  %1284 = vmatmul.msk.bf16.gmra.mxu1 %vm520_vm1, %v1621_v9 }
  0x86   : > { %1286 = vmatmul.msk.bf16.gmra.mxu2 %vm520_vm1, %v1621_v9  ;;  %1288 = vmatmul.msk.bf16.gmra.mxu3 %vm520_vm1, %v1621_v9 }
  0x95   : > { %1289 = vmatmul.msk.bf16.vlgmr.msra.gmra.mxu0 %vm520_vm1, %v1578_v22  ;;  %1291 = vmatmul.msk.bf16.vlgmr.msra.gmra.mxu1 %vm520_vm1, %v1578_v22 }
  0x96   : > { %1293 = vmatmul.msk.bf16.vlgmr.msra.gmra.mxu2 %vm520_vm1, %v1578_v22  ;;  %1295 = vmatmul.msk.bf16.vlgmr.msra.gmra.mxu3 %vm520_vm1, %v1578_v22 }
  0xa5   : > { %1290 = vmatmul.msk.bf16.gmra.mxu0 %vm520_vm1, %v1621_v9  ;;  %1292 = vmatmul.msk.bf16.gmra.mxu1 %vm520_vm1, %v1621_v9 }
  0xa6   : > { %1294 = vmatmul.msk.bf16.gmra.mxu2 %vm520_vm1, %v1621_v9  ;;  %1296 = vmatmul.msk.bf16.gmra.mxu3 %vm520_vm1, %v1621_v9 }
  0xb5   : > { %1297 = vmatmul.msk.bf16.vlgmr.msrb.gmra.mxu0 %vm520_vm1, %v1578_v22  ;;  %1299 = vmatmul.msk.bf16.vlgmr.msrb.gmra.mxu1 %vm520_vm1, %v1578_v22 }
  0xb6   : > { %1301 = vmatmul.msk.bf16.vlgmr.msrb.gmra.mxu2 %vm520_vm1, %v1578_v22  ;;  %1303 = vmatmul.msk.bf16.vlgmr.msrb.gmra.mxu3 %vm520_vm1, %v1578_v22 }
  0xc5   : > { %1298 = vmatmul.msk.bf16.gmra.mxu0 %vm520_vm1, %v1621_v9  ;;  %1300 = vmatmul.msk.bf16.gmra.mxu1 %vm520_vm1, %v1621_v9 }
  0xc6   : > { %1302 = vmatmul.msk.bf16.gmra.mxu2 %vm520_vm1, %v1621_v9  ;;  %1304 = vmatmul.msk.bf16.gmra.mxu3 %vm520_vm1, %v1621_v9 }
  0xd2   : > { %v585_v8 = vpop.f32.mrf.mxu0  ;;  %v604_v10 = vpop.f32.mrf.mxu1 }
  0xd9   : > { %v1725_v11 = vpop.f32.mrf.mxu2  ;;  %v1727_v12 = vpop.f32.mrf.mxu3 }
  0xda   : > { %v1729_v13 = vpop.f32.mrf.mxu0  ;;  %v1731_v22 = vpop.f32.mrf.mxu1 }
  0xdc   : > { %v935_v54 = vpop.permute.xlu0 %934 }
  0xe1   : > { %v1733_v14 = vpop.f32.mrf.mxu2  ;;  %v1735_v15 = vpop.f32.mrf.mxu3 }
  0xe2   : > { %v1737_v16 = vpop.f32.mrf.mxu0  ;;  %v1739_v17 = vpop.f32.mrf.mxu1 }
  0xe9   : > { %v1741_v18 = vpop.f32.mrf.mxu2  ;;  %v1743_v9 = vpop.f32.mrf.mxu3 }
  0xea   : > { %v1745_v19 = vpop.f32.mrf.mxu0  ;;  %v1747_v20 = vpop.f32.mrf.mxu1 }
  0xf1   : > { %v1749_v21 = vpop.f32.mrf.mxu2  ;;  %v1751_v23 = vpop.f32.mrf.mxu3 }
  0xf2   : > { %v661_v24 = vpop.f32.mrf.mxu0  ;;  %v680_v25 = vpop.f32.mrf.mxu1 }
  0xf3   : > { %v880_v55 = vmax.f32 %v585_v8, %v661_v24  ;;  %v881_v56 = vmax.f32 %v604_v10, %v680_v25  ;;  %v940_v25 = vpop.permute.xlu0 %939 }
  0xf9   : > { %v699_v26 = vpop.f32.mrf.mxu2  ;;  %v718_v27 = vpop.f32.mrf.mxu3 }
  0xfa   : > { %v663_v28 = vpop.f32.mrf.mxu0  ;;  %v682_v29 = vpop.f32.mrf.mxu1  ;;  %v882_v3 = vmax.f32 %v1725_v11, %v699_v26  ;;  %v883_v4 = vmax.f32 %v1727_v12, %v718_v27 }
  0xfb   : > { %v884_v5 = vmax.f32 %v1729_v13, %v663_v28  ;;  %v885_v6 = vmax.f32 %v1731_v22, %v682_v29 }
 0x101   : > { %v1753_v30 = vpop.f32.mrf.mxu2  ;;  %v1755_v31 = vpop.f32.mrf.mxu3 }
 0x102   : > { %v1757_v32 = vpop.f32.mrf.mxu0  ;;  %v1759_v33 = vpop.f32.mrf.mxu1 }
 0x109   : > { %v1761_v34 = vpop.f32.mrf.mxu2  ;;  %v1763_v35 = vpop.f32.mrf.mxu3 }
 0x10a   : > { %v1765_v36 = vpop.f32.mrf.mxu0  ;;  %v1767_v37 = vpop.f32.mrf.mxu1 }
 0x111   : > { %v1769_v38 = vpop.f32.mrf.mxu2  ;;  %v1771_v39 = vpop.f32.mrf.mxu3 }
 0x112   : > { %v737_v40 = vpop.f32.mrf.mxu0  ;;  %v756_v41 = vpop.f32.mrf.mxu1 }
 0x113   : > { %v896_v57 = vmax.f32 %v880_v55, %v737_v40  ;;  %v897_v58 = vmax.f32 %v881_v56, %v756_v41 }
 0x119   : > { %v775_v42 = vpop.f32.mrf.mxu2  ;;  %v794_v43 = vpop.f32.mrf.mxu3 }
 0x11a   : > { %v739_v44 = vpop.f32.mrf.mxu0  ;;  %v758_v45 = vpop.f32.mrf.mxu1  ;;  %v898_v10 = vmax.f32 %v882_v3, %v775_v42  ;;  %v899_v24 = vmax.f32 %v883_v4, %v794_v43  ;;  %v886_v42 = vmax.f32 %v1733_v14, %v1753_v30  ;;  %v887_v43 = vmax.f32 %v1735_v15, %v1755_v31 }
 0x11b   : > { %v900_v40 = vmax.f32 %v884_v5, %v739_v44  ;;  %v901_v41 = vmax.f32 %v885_v6, %v758_v45  ;;  %v945_v14 = vpop.permute.xlu1 %944 }
 0x121   : > { %v777_v46 = vpop.f32.mrf.mxu2  ;;  %v796_v47 = vpop.f32.mrf.mxu3 }
 0x122   : > { %v742_v48 = vpop.f32.mrf.mxu0  ;;  %v761_v49 = vpop.f32.mrf.mxu1  ;;  %v903_v3 = vmax.f32 %v887_v43, %v796_v47  ;;  %v895_v43 = vmax.f32 %v1751_v23, %v1771_v39 }
 0x129   : > { %v1773_v50 = vpop.f32.mrf.mxu2  ;;  %v1775_v51 = vpop.f32.mrf.mxu3 }
 0x12a   : > { %v1777_v52 = vpop.f32.mrf.mxu0  ;;  %v1779_v53 = vpop.f32.mrf.mxu1 }
 0x131   : > { %v1781_v59 = vpop.f32.mrf.mxu2  ;;  %v1783_v60 = vpop.f32.mrf.mxu3 }
 0x132   : > { %v813_v61 = vpop.f32.mrf.mxu0  ;;  %v832_v62 = vpop.f32.mrf.mxu1 }
 0x133   : > { %v912_v63 = vmax.f32 %v896_v57, %v813_v61  ;;  %v913_v0 = vmax.f32 %v897_v58, %v832_v62 }
 0x135   : > { %v952_v1 = vadd.f32 %v935_v54, %v912_v63  ;;  %v953_v2 = vadd.f32 %v935_v54, %v913_v0  ;;  %v888_v63 = vmax.f32 %v1737_v16, %v1757_v32  ;;  %v889_v0 = vmax.f32 %v1739_v17, %v1759_v33 }
 0x137   : > { %v968_v7 = vmul.f32 0.01, %v952_v1  ;;  %v969_v8 = vmul.f32 0.01, %v953_v2  ;;  %v904_v30 = vmax.f32 %v888_v63, %v742_v48  ;;  %v905_v15 = vmax.f32 %v889_v0, %v761_v49 }
 0x138   : > { %v890_v49 = vmax.f32 %v1741_v18, %v1761_v34 }
 0x139   : > { %v984_v55 = vmax.f32 %v952_v1, %v968_v7  ;;  %v985_v56 = vmax.f32 %v953_v2, %v969_v8  ;;  %v851_v57 = vpop.f32.mrf.mxu2  ;;  %v870_v58 = vpop.f32.mrf.mxu3 }
 0x13a   : > { %v914_v61 = vmax.f32 %v898_v10, %v851_v57  ;;  %v915_v62 = vmax.f32 %v899_v24, %v870_v58  ;;  %v815_v11 = vpop.f32.mrf.mxu0  ;;  %v834_v26 = vpop.f32.mrf.mxu1  ;;  %v892_v57 = vmax.f32 %v1745_v19, %v1765_v36  ;;  %v893_v58 = vmax.f32 %v1747_v20, %v1767_v37 }
 0x13b   : > { %1000 = vst [vmem:[%s1791_s12] sm:$0xff] %v984_v55  ;;  %v916_v12 = vmax.f32 %v900_v40, %v815_v11  ;;  %v917_v13 = vmax.f32 %v901_v41, %v834_v26  ;;  %v891_v41 = vmax.f32 %v1743_v9, %v1763_v35 }
 0x13c   : > { %1001 = vst [vmem:[%s1791_s12 + $0x8] sm:$0xff] %v985_v56  ;;  %v954_v22 = vadd.f32 %v935_v54, %v914_v61  ;;  %v955_v27 = vadd.f32 %v935_v54, %v915_v62  ;;  %v902_v54 = vmax.f32 %v886_v42, %v777_v46  ;;  %v906_v62 = vmax.f32 %v890_v49, %v1773_v50 }
 0x13d   : > { %v956_v28 = vadd.f32 %v940_v25, %v916_v12  ;;  %v957_v29 = vadd.f32 %v940_v25, %v917_v13  ;;  %v907_v11 = vmax.f32 %v891_v41, %v1775_v51  ;;  %v908_v9 = vmax.f32 %v892_v57, %v1777_v52 }
 0x13e   : > { %v970_v44 = vmul.f32 0.01, %v954_v22  ;;  %v971_v45 = vmul.f32 0.01, %v955_v27  ;;  %v909_v35 = vmax.f32 %v893_v58, %v1779_v53  ;;  %v894_v42 = vmax.f32 %v1749_v21, %v1769_v38 }
 0x13f   : > { %v972_v1 = vmul.f32 0.01, %v956_v28  ;;  %v973_v2 = vmul.f32 0.01, %v957_v29 }
 0x140   : > { %v986_v4 = vmax.f32 %v954_v22, %v970_v44  ;;  %v987_v5 = vmax.f32 %v955_v27, %v971_v45 }
 0x141   : > { %v988_v31 = vmax.f32 %v956_v28, %v972_v1  ;;  %v989_v6 = vmax.f32 %v957_v29, %v973_v2  ;;  %v853_v7 = vpop.f32.mrf.mxu2  ;;  %v872_v8 = vpop.f32.mrf.mxu3  ;;  %v910_v1 = vmax.f32 %v894_v42, %v1781_v59  ;;  %v911_v2 = vmax.f32 %v895_v43, %v1783_v60 }
 0x142   : > { %1002 = vst [vmem:[%s1791_s12 + $0x10] sm:$0xff] %v986_v4  ;;  %v918_v16 = vmax.f32 %v902_v54, %v853_v7  ;;  %v919_v32 = vmax.f32 %v903_v3, %v872_v8  ;;  %v818_v17 = vpop.f32.mrf.mxu0  ;;  %v837_v33 = vpop.f32.mrf.mxu1 }
 0x143   : > { %1003 = vst [vmem:[%s1791_s12 + $0x18] sm:$0xff] %v987_v5  ;;  %v920_v46 = vmax.f32 %v904_v30, %v818_v17  ;;  %v921_v10 = vmax.f32 %v905_v15, %v837_v33  ;;  %v950_v29 = vpop.permute.xlu1 %949  ;;  %v1040_v7 = vld [vmem:[%s1791_s12 + $0x8] sm:$0xff] (%p1450_p5) }
 0x144   : > { %1004 = vst [vmem:[%s1791_s12 + $0x20] sm:$0xff] %v988_v31  ;;  %v958_v47 = vadd.f32 %v940_v25, %v918_v16  ;;  %v959_v24 = vadd.f32 %v940_v25, %v919_v32 }
 0x145   : > { %1005 = vst [vmem:[%s1791_s12 + $0x28] sm:$0xff] %v989_v6  ;;  %v960_v40 = vadd.f32 %v945_v14, %v920_v46  ;;  %v961_v48 = vadd.f32 %v945_v14, %v921_v10  ;;  %v1038_v6 = vld [vmem:[%s1791_s12] sm:$0xff] (%p1450_p5) }
 0x146   : > { %v974_v55 = vmul.f32 0.01, %v958_v47  ;;  %v975_v56 = vmul.f32 0.01, %v959_v24  ;;  %1039 = vst [vmem:[%s1025_s20] sm:$0xff] (%p1450_p5), %v1038_v6 }
 0x147   : > { %v976_v61 = vmul.f32 0.01, %v960_v40  ;;  %v977_v25 = vmul.f32 0.01, %v961_v48  ;;  %1041 = vst [vmem:[%s1025_s20 + $0x8] sm:$0xff] (%p1450_p5), %v1040_v7 }
 0x148   : > { %v990_v18 = vmax.f32 %v958_v47, %v974_v55  ;;  %v991_v34 = vmax.f32 %v959_v24, %v975_v56 }
 0x149   : > { %v992_v26 = vmax.f32 %v960_v40, %v976_v61  ;;  %v993_v19 = vmax.f32 %v961_v48, %v977_v25  ;;  %v856_v36 = vpop.f32.mrf.mxu2  ;;  %v875_v12 = vpop.f32.mrf.mxu3  ;;  %v1042_v8 = vld [vmem:[%s1791_s12 + $0x10] sm:$0xff] (%p1450_p5) }
 0x14a   : > { %1006 = vst [vmem:[%s1791_s12 + $0x30] sm:$0xff] %v990_v18  ;;  %v922_v20 = vmax.f32 %v906_v62, %v856_v36  ;;  %v923_v37 = vmax.f32 %v907_v11, %v875_v12  ;;  %v820_v13 = vpop.f32.mrf.mxu0  ;;  %v839_v22 = vpop.f32.mrf.mxu1  ;;  %v1044_v16 = vld [vmem:[%s1791_s12 + $0x18] sm:$0xff] (%p1450_p5) }
 0x14b   : > { %1007 = vst [vmem:[%s1791_s12 + $0x38] sm:$0xff] %v991_v34  ;;  %v924_v50 = vmax.f32 %v908_v9, %v820_v13  ;;  %v925_v51 = vmax.f32 %v909_v35, %v839_v22  ;;  %v1046_v32 = vld [vmem:[%s1791_s12 + $0x20] sm:$0xff] (%p1450_p5) }
 0x14c   : > { %1008 = vst [vmem:[%s1791_s12 + $0x40] sm:$0xff] %v992_v26  ;;  %v962_v27 = vadd.f32 %v945_v14, %v922_v20  ;;  %v963_v28 = vadd.f32 %v945_v14, %v923_v37  ;;  %v1048_v17 = vld [vmem:[%s1791_s12 + $0x28] sm:$0xff] (%p1450_p5) }
 0x14d   : > { %1009 = vst [vmem:[%s1791_s12 + $0x48] sm:$0xff] %v993_v19  ;;  %v964_v52 = vadd.f32 %v950_v29, %v924_v50  ;;  %v965_v53 = vadd.f32 %v950_v29, %v925_v51 }
 0x14e   : > { %v978_v44 = vmul.f32 0.01, %v962_v27  ;;  %v979_v45 = vmul.f32 0.01, %v963_v28  ;;  %1043 = vst [vmem:[%s1025_s20 + $0x10] sm:$0xff] (%p1450_p5), %v1042_v8 }
 0x14f   : > { %v980_v63 = vmul.f32 0.01, %v964_v52  ;;  %v981_v0 = vmul.f32 0.01, %v965_v53  ;;  %1045 = vst [vmem:[%s1025_s20 + $0x18] sm:$0xff] (%p1450_p5), %v1044_v16 }
 0x150   : > { %v994_v54 = vmax.f32 %v962_v27, %v978_v44  ;;  %v995_v3 = vmax.f32 %v963_v28, %v979_v45  ;;  %1047 = vst [vmem:[%s1025_s20 + $0x100] sm:$0xff] (%p1450_p5), %v1046_v32 }
 0x151   : > { %v996_v4 = vmax.f32 %v964_v52, %v980_v63  ;;  %v997_v5 = vmax.f32 %v965_v53, %v981_v0  ;;  %v858_v21 = vpop.f32.mrf.mxu2  ;;  %v877_v38 = vpop.f32.mrf.mxu3  ;;  %v1050_v33 = vld [vmem:[%s1791_s12 + $0x30] sm:$0xff] (%p1450_p5)  ;;  %1049 = vst [vmem:[%s1025_s20 + $0x108] sm:$0xff] (%p1450_p5), %v1048_v17 }
 0x152   : > { %1010 = vst [vmem:[%s1791_s12 + $0x50] sm:$0xff] %v994_v54  ;;  %v926_v23 = vmax.f32 %v910_v1, %v858_v21  ;;  %v927_v39 = vmax.f32 %v911_v2, %v877_v38  ;;  %v1052_v46 = vld [vmem:[%s1791_s12 + $0x38] sm:$0xff] (%p1450_p5) }
 0x153   : > { %1011 = vst [vmem:[%s1791_s12 + $0x58] sm:$0xff] %v995_v3  ;;  %v1054_v10 = vld [vmem:[%s1791_s12 + $0x40] sm:$0xff] (%p1450_p5) }
 0x154   : > { %1012 = vst [vmem:[%s1791_s12 + $0x60] sm:$0xff] %v996_v4  ;;  %v966_v14 = vadd.f32 %v950_v29, %v926_v23  ;;  %v967_v30 = vadd.f32 %v950_v29, %v927_v39  ;;  %v1056_v47 = vld [vmem:[%s1791_s12 + $0x48] sm:$0xff] (%p1450_p5) }
 0x155   : > { %1013 = vst [vmem:[%s1791_s12 + $0x68] sm:$0xff] %v997_v5 }
 0x156   : > { %v982_v15 = vmul.f32 0.01, %v966_v14  ;;  %v983_v59 = vmul.f32 0.01, %v967_v30  ;;  %1051 = vst [vmem:[%s1025_s20 + $0x110] sm:$0xff] (%p1450_p5), %v1050_v33 }
 0x157   : > { %1022 = sbr.rel (!%p1450_p5) target bundleno = 356 (0x164), region = 59  ;;  %1053 = vst [vmem:[%s1025_s20 + $0x118] sm:$0xff] (%p1450_p5), %v1052_v46 }
 0x158   : > { %v998_v31 = vmax.f32 %v966_v14, %v982_v15  ;;  %v999_v60 = vmax.f32 %v967_v30, %v983_v59  ;;  %1055 = vst [vmem:[%s1025_s20 + $0x200] sm:$0xff] (%p1450_p5), %v1054_v10 }
 0x159   : > { %v1058_v24 = vld [vmem:[%s1791_s12 + $0x50] sm:$0xff] (%p1450_p5)  ;;  %1057 = vst [vmem:[%s1025_s20 + $0x208] sm:$0xff] (%p1450_p5), %v1056_v47 }
 0x15a   : > { %1014 = vst [vmem:[%s1791_s12 + $0x70] sm:$0xff] %v998_v31  ;;  %v1060_v40 = vld [vmem:[%s1791_s12 + $0x58] sm:$0xff] (%p1450_p5) }
 0x15b   : > { %1015 = vst [vmem:[%s1791_s12 + $0x78] sm:$0xff] %v999_v60  ;;  %v1062_v48 = vld [vmem:[%s1791_s12 + $0x60] sm:$0xff] (%p1450_p5) }
 0x15c   : > { %1059 = vst [vmem:[%s1025_s20 + $0x210] sm:$0xff] %v1058_v24  ;;  %v1064_v49 = vld [vmem:[%s1791_s12 + $0x68] sm:$0xff] }
 0x15d   : > { %1061 = vst [vmem:[%s1025_s20 + $0x218] sm:$0xff] %v1060_v40 }
 0x15e   : > { %1063 = vst [vmem:[%s1025_s20 + $0x300] sm:$0xff] %v1062_v48 }
 0x15f   : > { %1065 = vst [vmem:[%s1025_s20 + $0x308] sm:$0xff] %v1064_v49 }
 0x161   : > { %v1066_v41 = vld [vmem:[%s1791_s12 + $0x70] sm:$0xff] }
 0x162   : > { %v1068_v55 = vld [vmem:[%s1791_s12 + $0x78] sm:$0xff]  ;;  %1067 = vst [vmem:[%s1025_s20 + $0x310] sm:$0xff] %v1066_v41 }
 0x163   : > { %1069 = vst [vmem:[%s1025_s20 + $0x318] sm:$0xff] %v1068_v55 }
 0x164 PF: > { %p10_p10 = scmp.ge.s32.totalorder %s1437_s16, 10   ;;  %s1873_s12 = smov %s1393_s13 }
 0x165   : > { %s1874_s13 = smov %s1448_s19  ;;  %s1875_s14 = smov %s1437_s16 }
 0x166   :  { %12 = sbr.rel (!%p10_p10) target bundleno = 2 (0x2), region = 113 }

// kernel: convblock_forward.5
= control target key start
LH: loop header
LB: loop body
LE: loop exit
PB: predicated region body
PF: predicated region fallthrough
CT: control target
= control target key end

     0   :  { %vm917_vm0 = vcmask 261120   ;;  %s3376_s0 = inlined_call_operand.vmem [shape: bf16[288,1024], index: 0, kind: input, shape index: {}]   ;;  %s3377_s1 = inlined_call_operand.vmem [shape: bf16[32,288], index: 1, kind: input, shape index: {}]   ;;  %s3378_s2 = inlined_call_operand.vmem [shape: f32[32,1], index: 2, kind: input, shape index: {}]   ;;  %s3379_s3 = inlined_call_operand.vmem [shape: f32[32,256], index: 3, kind: output, shape index: {}]  }
   0x1   :  { %v1714_v0 = vld [vmem:[%s3376_s0 + $0x1c0] sm:$0xf]  ;;  %v2142_v9 = vld [vmem:[%s3376_s0 + $0x1c4] sm:$0xf]  ;;  %v1474_v23 = vld [vmem:[%s3377_s1 + $0x8] sm:$0xf] }
   0x2   :  { %v2146_v1 = vld [vmem:[%s3376_s0 + $0x1dc] sm:$0xf0]  ;;  %v1716_v10 = vld [vmem:[%s3376_s0 + $0x1e0] sm:$0xf0]  ;;  %v2082_v24 = vld [vmem:[%s3377_s1 + $0x10] sm:$0xf0] }
   0x3   :  { %v1970_v2 = vld [vmem:[%s3376_s0 + $0x3c0] sm:$0xf]  ;;  %v1715_v3 = vor.u32 %v2146_v1, %v1714_v0  ;;  %v1719_v12 = vor.u32 %v2142_v9, %v1716_v10  ;;  %v2134_v20 = vld [vmem:[%s3376_s0 + $0x184] sm:$0xf]  ;;  %v2325_v29 = vor.u32 %v2082_v24, %v1474_v23  ;;  %v2085_v9 = vld [vmem:[%s3377_s1 + $0x28] sm:$0xf0] }
   0x4   :  { %v2210_v4 = vld [vmem:[%s3376_s0 + $0x3dc] sm:$0xf0]  ;;  %v1684_v22 = vld [vmem:[%s3376_s0 + $0x1a0] sm:$0xf0] }
   0x5   :  { %v2034_v5 = vld [vmem:[%s3376_s0 + $0x440] sm:$0xf]  ;;  %v1971_v7 = vor.u32 %v2210_v4, %v1970_v2  ;;  %924 = vmatpush.bf16.msra.mxu0 %v1715_v3  ;;  %981 = vmatpush.bf16.msra.mxu3 %v1719_v12  ;;  %v1687_v25 = vor.u32 %v2134_v20, %v1684_v22  ;;  %v2126_v32 = vld [vmem:[%s3376_s0 + $0x144] sm:$0xf] }
   0x6   :  { %v2226_v6 = vld [vmem:[%s3376_s0 + $0x45c] sm:$0xf0]  ;;  %v1652_v33 = vld [vmem:[%s3376_s0 + $0x160] sm:$0xf0] }
   0x7   :  { %v2035_v8 = vor.u32 %v2226_v6, %v2034_v5  ;;  %v1682_v11 = vld [vmem:[%s3376_s0 + $0x180] sm:$0xf]  ;;  %943 = vmatpush.bf16.msra.mxu1 %v1971_v7  ;;  %v2206_v35 = vld [vmem:[%s3376_s0 + $0x3c4] sm:$0xf]  ;;  %v1655_v38 = vor.u32 %v2126_v32, %v1652_v33 }
   0x8   :  { %v2138_v13 = vld [vmem:[%s3376_s0 + $0x19c] sm:$0xf0]  ;;  %v1972_v36 = vld [vmem:[%s3376_s0 + $0x3e0] sm:$0xf0] }
   0x9   :  { %v1938_v14 = vld [vmem:[%s3376_s0 + $0x380] sm:$0xf]  ;;  %968 = vmatpush.bf16.msra.mxu2 %v2035_v8  ;;  %v1683_v16 = vor.u32 %v2138_v13, %v1682_v11  ;;  %982 = vmatpush.bf16.msra.mxu3 %v1687_v25  ;;  %v1975_v39 = vor.u32 %v2206_v35, %v1972_v36  ;;  %v2118_v43 = vld [vmem:[%s3376_s0 + $0x104] sm:$0xf]  ;;  %v1722_v36 = vld [vmem:[%s3376_s0 + $0x1c8] sm:$0xf] }
   0xa   :  { %v2202_v15 = vld [vmem:[%s3376_s0 + $0x39c] sm:$0xf0]  ;;  %v1620_v44 = vld [vmem:[%s3376_s0 + $0x120] sm:$0xf0] }
   0xb   :  { %v1939_v17 = vor.u32 %v2202_v15, %v1938_v14  ;;  %v2002_v18 = vld [vmem:[%s3376_s0 + $0x400] sm:$0xf]  ;;  %925 = vmatpush.bf16.msra.mxu0 %v1683_v16  ;;  %v2198_v45 = vld [vmem:[%s3376_s0 + $0x384] sm:$0xf]  ;;  %v1623_v53 = vor.u32 %v2118_v43, %v1620_v44 }
   0xc   :  { %v2218_v19 = vld [vmem:[%s3376_s0 + $0x41c] sm:$0xf0]  ;;  %v1940_v47 = vld [vmem:[%s3376_s0 + $0x3a0] sm:$0xf0] }
   0xd   :  { %v2003_v21 = vor.u32 %v2218_v19, %v2002_v18  ;;  %v1650_v26 = vld [vmem:[%s3376_s0 + $0x140] sm:$0xf]  ;;  %944 = vmatpush.bf16.msra.mxu1 %v1939_v17  ;;  %v1943_v49 = vor.u32 %v2198_v45, %v1940_v47  ;;  %983 = vmatpush.bf16.msra.mxu3 %v1655_v38  ;;  %v2190_v55 = vld [vmem:[%s3376_s0 + $0x344] sm:$0xf]  ;;  %v1468_v45 = vld [vmem:[%s3377_s1 + $0xc] sm:$0xf0] }
   0xe   :  { %v2130_v27 = vld [vmem:[%s3376_s0 + $0x15c] sm:$0xf0]  ;;  %v1908_v56 = vld [vmem:[%s3376_s0 + $0x360] sm:$0xf0] }
   0xf   :  { %v1906_v28 = vld [vmem:[%s3376_s0 + $0x340] sm:$0xf]  ;;  %v1651_v30 = vor.u32 %v2130_v27, %v1650_v26  ;;  %969 = vmatpush.bf16.msra.mxu2 %v2003_v21  ;;  %v2110_v57 = vld [vmem:[%s3376_s0 + $0xc4] sm:$0xf]  ;;  %v1911_v61 = vor.u32 %v2190_v55, %v1908_v56  ;;  %v1946_v55 = vld [vmem:[%s3376_s0 + $0x388] sm:$0xf] }
  0x10   :  { %v2194_v31 = vld [vmem:[%s3376_s0 + $0x35c] sm:$0xf0]  ;;  %v1588_v58 = vld [vmem:[%s3376_s0 + $0xe0] sm:$0xf0]  ;;  %v2203_v56 = vld [vmem:[%s3376_s0 + $0x3a4] sm:$0xf0] }
  0x11   :  { %v1907_v34 = vor.u32 %v2194_v31, %v1906_v28  ;;  %v1618_v37 = vld [vmem:[%s3376_s0 + $0x100] sm:$0xf]  ;;  %926 = vmatpush.bf16.msra.mxu0 %v1651_v30  ;;  %984 = vmatpush.bf16.msra.mxu3 %v1623_v53  ;;  %v1591_v1 = vor.u32 %v2110_v57, %v1588_v58  ;;  %v2182_v3 = vld [vmem:[%s3376_s0 + $0x304] sm:$0xf]  ;;  %v2139_v53 = vld [vmem:[%s3376_s0 + $0x1a4] sm:$0xf0] }
  0x12   :  { %v2122_v40 = vld [vmem:[%s3376_s0 + $0x11c] sm:$0xf0]  ;;  %2064 = vmatmul.msk.bf16.vlgmr.msra.gmra.mxu2 %vm917_vm0, %v2325_v29  ;;  %v1876_v4 = vld [vmem:[%s3376_s0 + $0x320] sm:$0xf0] }
  0x13   :  { %v1874_v41 = vld [vmem:[%s3376_s0 + $0x300] sm:$0xf]  ;;  %v1619_v46 = vor.u32 %v2122_v40, %v1618_v37  ;;  %945 = vmatpush.bf16.msra.mxu1 %v1907_v34  ;;  %1000 = vmatpush.bf16.msrb.mxu2 %v1975_v39  ;;  %v2102_v5 = vld [vmem:[%s3376_s0 + $0x84] sm:$0xf]  ;;  %v1879_v11 = vor.u32 %v2182_v3, %v1876_v4  ;;  %v2147_v37 = vld [vmem:[%s3376_s0 + $0x1e4] sm:$0xf0] }
  0x14   :  { %v2186_v42 = vld [vmem:[%s3376_s0 + $0x31c] sm:$0xf0]  ;;  %v1556_v6 = vld [vmem:[%s3376_s0 + $0xa0] sm:$0xf0]  ;;  %v2081_v39 = vld [vmem:[%s3377_s1 + $0x8] sm:$0xf0] }
  0x15   :  { %v1875_v48 = vor.u32 %v2186_v42, %v1874_v41  ;;  %v1586_v50 = vld [vmem:[%s3376_s0 + $0xc0] sm:$0xf]  ;;  %927 = vmatpush.bf16.msra.mxu0 %v1619_v46  ;;  %985 = vmatpush.bf16.msra.mxu3 %v1591_v1  ;;  %v1559_v15 = vor.u32 %v2102_v5, %v1556_v6  ;;  %v2174_v17 = vld [vmem:[%s3376_s0 + $0x2c4] sm:$0xf]  ;;  %v1978_v40 = vld [vmem:[%s3376_s0 + $0x3c8] sm:$0xf] }
  0x16   :  { %v2114_v51 = vld [vmem:[%s3376_s0 + $0xdc] sm:$0xf0]  ;;  %v1844_v18 = vld [vmem:[%s3376_s0 + $0x2e0] sm:$0xf0]  ;;  %v2211_v41 = vld [vmem:[%s3376_s0 + $0x3e4] sm:$0xf0] }
  0x17   :  { %v1842_v52 = vld [vmem:[%s3376_s0 + $0x2c0] sm:$0xf]  ;;  %v1587_v59 = vor.u32 %v2114_v51, %v1586_v50  ;;  %946 = vmatpush.bf16.msra.mxu1 %v1875_v48  ;;  %1001 = vmatpush.bf16.msrb.mxu2 %v1943_v49  ;;  %v2094_v19 = vld [vmem:[%s3376_s0 + $0x44] sm:$0xf]  ;;  %v1847_v26 = vor.u32 %v2174_v17, %v1844_v18  ;;  %v1723_v49 = vor.u32 %v2147_v37, %v1722_v36  ;;  %v2227_v1 = vld [vmem:[%s3376_s0 + $0x464] sm:$0xf0] }
  0x18   :  { %v2178_v54 = vld [vmem:[%s3376_s0 + $0x2dc] sm:$0xf0]  ;;  %v1524_v20 = vld [vmem:[%s3376_s0 + $0x60] sm:$0xf0]  ;;  %v1979_v51 = vor.u32 %v2211_v41, %v1978_v40  ;;  %v1914_v4 = vld [vmem:[%s3376_s0 + $0x348] sm:$0xf] }
  0x19   :  { %v1843_v60 = vor.u32 %v2178_v54, %v1842_v52  ;;  %v1554_v62 = vld [vmem:[%s3376_s0 + $0x80] sm:$0xf]  ;;  %928 = vmatpush.bf16.msra.mxu0 %v1587_v59  ;;  %v2086_v30 = vld [vmem:[%s3376_s0 + $0x4] sm:$0xf]  ;;  %986 = vmatpush.bf16.msra.mxu3 %v1559_v15  ;;  %v1527_v31 = vor.u32 %v2094_v19, %v1524_v20  ;;  %v1690_v52 = vld [vmem:[%s3376_s0 + $0x188] sm:$0xf] }
  0x1a   :  { %v2106_v63 = vld [vmem:[%s3376_s0 + $0x9c] sm:$0xf0]  ;;  %v1492_v32 = vld [vmem:[%s3376_s0 + $0x20] sm:$0xf0]  ;;  %v2195_v5 = vld [vmem:[%s3376_s0 + $0x364] sm:$0xf0] }
  0x1b   :  { %v1810_v0 = vld [vmem:[%s3376_s0 + $0x280] sm:$0xf]  ;;  %v1555_v7 = vor.u32 %v2106_v63, %v1554_v62  ;;  %947 = vmatpush.bf16.msra.mxu1 %v1843_v60  ;;  %1002 = vmatpush.bf16.msrb.mxu2 %v1911_v61  ;;  %v2166_v33 = vld [vmem:[%s3376_s0 + $0x284] sm:$0xf]  ;;  %v1495_v46 = vor.u32 %v2086_v30, %v1492_v32  ;;  %v1691_v60 = vor.u32 %v2139_v53, %v1690_v52  ;;  %v1658_v61 = vld [vmem:[%s3376_s0 + $0x148] sm:$0xf] }
  0x1c   :  { %v2170_v2 = vld [vmem:[%s3376_s0 + $0x29c] sm:$0xf0]  ;;  %v1812_v34 = vld [vmem:[%s3376_s0 + $0x2a0] sm:$0xf0]  ;;  %v2131_v62 = vld [vmem:[%s3376_s0 + $0x164] sm:$0xf0] }
  0x1d   :  { %v1486_v8 = vld [vmem:[%s3377_s1 + $0x20] sm:$0xf]  ;;  %v1811_v10 = vor.u32 %v2170_v2, %v1810_v0  ;;  %929 = vmatpush.bf16.msra.mxu0 %v1555_v7  ;;  %v1815_v43 = vor.u32 %v2166_v33, %v1812_v34  ;;  %v2080_v44 = vld [vmem:[%s3377_s1 + $0x4] sm:$0xf]  ;;  %987 = vmatpush.bf16.msra.mxu3 %v1527_v31  ;;  %v2042_v63 = vld [vmem:[%s3376_s0 + $0x448] sm:$0xf]  ;;  %v1947_v0 = vor.u32 %v2203_v56, %v1946_v55 }
  0x1e   :  { %v1522_v12 = vld [vmem:[%s3376_s0 + $0x40] sm:$0xf]  ;;  %v2446_v21 = vor.u32 %v2085_v9, %v1486_v8  ;;  %v2158_v47 = vld [vmem:[%s3376_s0 + $0x244] sm:$0xf]  ;;  %v2512_v54 = vor.u32 %v2080_v44, %v1468_v45  ;;  %v1659_v8 = vor.u32 %v2131_v62, %v1658_v61  ;;  %v1882_v9 = vld [vmem:[%s3376_s0 + $0x308] sm:$0xf] }
  0x1f   :  { %v2098_v13 = vld [vmem:[%s3376_s0 + $0x5c] sm:$0xf0]  ;;  %948 = vmatpush.bf16.msra.mxu1 %v1811_v10  ;;  %1003 = vmatpush.bf16.msrb.mxu2 %v1879_v11  ;;  %v1780_v48 = vld [vmem:[%s3376_s0 + $0x260] sm:$0xf0]  ;;  %v1626_v10 = vld [vmem:[%s3376_s0 + $0x108] sm:$0xf]  ;;  %v2043_v11 = vor.u32 %v2227_v1, %v2042_v63 }
  0x20   :  { %v1778_v14 = vld [vmem:[%s3376_s0 + $0x240] sm:$0xf]  ;;  %v1523_v22 = vor.u32 %v2098_v13, %v1522_v12  ;;  %v1783_v57 = vor.u32 %v2158_v47, %v1780_v48  ;;  %v2150_v58 = vld [vmem:[%s3376_s0 + $0x204] sm:$0xf]  ;;  %v1915_v12 = vor.u32 %v2195_v5, %v1914_v4  ;;  %v2123_v13 = vld [vmem:[%s3376_s0 + $0x124] sm:$0xf0] }
  0x21   :  { %v2162_v16 = vld [vmem:[%s3376_s0 + $0x25c] sm:$0xf0]  ;;  %v1748_v59 = vld [vmem:[%s3376_s0 + $0x220] sm:$0xf0]  ;;  %988 = vmatpush.bf16.msra.mxu3 %v1495_v46  ;;  %v2010_v18 = vld [vmem:[%s3376_s0 + $0x408] sm:$0xf] }
  0x22   :  { %v1490_v23 = vld [vmem:[%s3376_s0] sm:$0xf]  ;;  %v1779_v25 = vor.u32 %v2162_v16, %v1778_v14  ;;  %2065 = vmatmul.msk.bf16.gmra.mxu2 %vm917_vm0, %v2446_v21  ;;  %930 = vmatpush.bf16.msra.mxu0 %v1523_v22  ;;  %v2222_v2 = vld [vmem:[%s3376_s0 + $0x444] sm:$0xf]  ;;  %v1751_v7 = vor.u32 %v2150_v58, %v1748_v59  ;;  %v2187_v16 = vld [vmem:[%s3376_s0 + $0x324] sm:$0xf0]  ;;  %v1627_v22 = vor.u32 %v2123_v13, %v1626_v10 }
  0x23   :  { %v2090_v24 = vld [vmem:[%s3376_s0 + $0x1c] sm:$0xf0]  ;;  %1004 = vmatpush.bf16.msrb.mxu2 %v1847_v26  ;;  %v2036_v3 = vld [vmem:[%s3376_s0 + $0x460] sm:$0xf0]  ;;  %v2219_v19 = vld [vmem:[%s3376_s0 + $0x424] sm:$0xf0] }
  0x24   :  { %v1746_v27 = vld [vmem:[%s3376_s0 + $0x200] sm:$0xf]  ;;  %v1491_v38 = vor.u32 %v2090_v24, %v1490_v23  ;;  %949 = vmatpush.bf16.msra.mxu1 %v1779_v25  ;;  %v2039_v6 = vor.u32 %v2222_v2, %v2036_v3  ;;  %v2214_v14 = vld [vmem:[%s3376_s0 + $0x404] sm:$0xf]  ;;  %v2143_v20 = vld [vmem:[%s3376_s0 + $0x1cc] sm:$0xf]  ;;  %v2011_v25 = vor.u32 %v2219_v19, %v2010_v18 }
  0x25   :  { %v2154_v28 = vld [vmem:[%s3376_s0 + $0x21c] sm:$0xf0]  ;;  %1057 = vmatpush.bf16.msrb.mxu3 %v1979_v51  ;;  %v2004_v15 = vld [vmem:[%s3376_s0 + $0x420] sm:$0xf0]  ;;  %v1478_v23 = vld [vmem:[%s3377_s1 + $0x18] sm:$0xf] }
  0x26   :  { %v1466_v35 = vld [vmem:[%s3377_s1] sm:$0xf]  ;;  %v1747_v42 = vor.u32 %v2154_v28, %v1746_v27  ;;  %931 = vmatpush.bf16.msra.mxu0 %v1491_v38  ;;  %v2007_v17 = vor.u32 %v2214_v14, %v2004_v15  ;;  %v1594_v24 = vld [vmem:[%s3376_s0 + $0xc8] sm:$0xf]  ;;  %v1724_v26 = vld [vmem:[%s3376_s0 + $0x1e8] sm:$0xf0]  ;;  %v1883_v27 = vor.u32 %v2187_v16, %v1882_v9 }
  0x27   :  { %v2504_v50 = vor.u32 %v2081_v39, %v1466_v35  ;;  %1005 = vmatpush.bf16.msrb.mxu2 %v1815_v43  ;;  %v2115_v28 = vld [vmem:[%s3376_s0 + $0xe4] sm:$0xf0]  ;;  %v1727_v30 = vor.u32 %v2143_v20, %v1724_v26  ;;  %v2135_v31 = vld [vmem:[%s3376_s0 + $0x18c] sm:$0xf]  ;;  %v2084_v33 = vld [vmem:[%s3377_s1 + $0x20] sm:$0xf0] }
  0x28   :  { %950 = vmatpush.bf16.msra.mxu1 %v1747_v42  ;;  %v1692_v32 = vld [vmem:[%s3376_s0 + $0x1a8] sm:$0xf0]  ;;  %v1850_v34 = vld [vmem:[%s3376_s0 + $0x2c8] sm:$0xf]  ;;  %v2083_v36 = vld [vmem:[%s3377_s1 + $0x1c] sm:$0xf]  ;;  %v1595_v40 = vor.u32 %v2115_v28, %v1594_v24  ;;  %v2626_v44 = vor.u32 %v2084_v33, %v1478_v23 }
  0x29   :  { %932 = vmatmul.bf16.vlgmr.msra.gmra.mxu0 %v2504_v50  ;;  %989 = vmatmul.bf16.vlgmr.msra.gmra.mxu3 %v2504_v50  ;;  %v2179_v35 = vld [vmem:[%s3376_s0 + $0x2e4] sm:$0xf0]  ;;  %v1695_v38 = vor.u32 %v2135_v31, %v1692_v32  ;;  %v1730_v39 = vld [vmem:[%s3376_s0 + $0x1d0] sm:$0xf]  ;;  %v2127_v41 = vld [vmem:[%s3376_s0 + $0x14c] sm:$0xf] }
  0x2a   :  { %1025 = vmatpush.bf16.msrb.mxu0 %v2039_v6  ;;  %1058 = vmatpush.bf16.msrb.mxu3 %v1947_v0  ;;  %v1480_v37 = vld [vmem:[%s3377_s1 + $0x24] sm:$0xf0]  ;;  %v1660_v42 = vld [vmem:[%s3376_s0 + $0x168] sm:$0xf0]  ;;  %v2148_v43 = vld [vmem:[%s3376_s0 + $0x1ec] sm:$0xf0]  ;;  %v1851_v45 = vor.u32 %v2179_v35, %v1850_v34 }
  0x2b   :  { %951 = vmatmul.bf16.vlgmr.msra.gmra.mxu1 %v2512_v54  ;;  %1006 = vmatpush.bf16.msrb.mxu2 %v1783_v57  ;;  %v1562_v46 = vld [vmem:[%s3376_s0 + $0x88] sm:$0xf]  ;;  %v1731_v48 = vor.u32 %v2148_v43, %v1730_v39  ;;  %v2637_v51 = vor.u32 %v2083_v36, %v1480_v37  ;;  %v2140_v55 = vld [vmem:[%s3376_s0 + $0x1ac] sm:$0xf0]  ;;  %v1663_v56 = vor.u32 %v2127_v41, %v1660_v42  ;;  %v2119_v58 = vld [vmem:[%s3376_s0 + $0x10c] sm:$0xf] }
  0x2c   :  { %1038 = vmatpush.bf16.msrb.mxu1 %v1723_v49  ;;  %v2107_v47 = vld [vmem:[%s3376_s0 + $0xa4] sm:$0xf0]  ;;  %v1698_v49 = vld [vmem:[%s3376_s0 + $0x190] sm:$0xf]  ;;  %v1628_v59 = vld [vmem:[%s3376_s0 + $0x128] sm:$0xf0] }
  0x2d   :  { %v1818_v52 = vld [vmem:[%s3376_s0 + $0x288] sm:$0xf]  ;;  %v1563_v57 = vor.u32 %v2107_v47, %v1562_v46  ;;  %v1666_v2 = vld [vmem:[%s3376_s0 + $0x150] sm:$0xf]  ;;  %v1631_v4 = vor.u32 %v2119_v58, %v1628_v59  ;;  %v1596_v9 = vld [vmem:[%s3376_s0 + $0xe8] sm:$0xf0] }
  0x2e   :  { %1059 = vmatpush.bf16.msrb.mxu3 %v1915_v12  ;;  %1026 = vmatpush.bf16.msrb.mxu0 %v2007_v17  ;;  %v2171_v53 = vld [vmem:[%s3376_s0 + $0x2a4] sm:$0xf0]  ;;  %v2132_v3 = vld [vmem:[%s3376_s0 + $0x16c] sm:$0xf0]  ;;  %v2207_v16 = vld [vmem:[%s3376_s0 + $0x3cc] sm:$0xf] }
  0x2f   :  { %1007 = vmatpush.bf16.msrb.mxu2 %v1751_v7  ;;  %v1819_v61 = vor.u32 %v2171_v53, %v1818_v52  ;;  %v1786_v62 = vld [vmem:[%s3376_s0 + $0x248] sm:$0xf]  ;;  %v1667_v10 = vor.u32 %v2132_v3, %v1666_v2  ;;  %v1634_v13 = vld [vmem:[%s3376_s0 + $0x110] sm:$0xf]  ;;  %v1980_v17 = vld [vmem:[%s3376_s0 + $0x3e8] sm:$0xf0] }
  0x30   :  { %1039 = vmatpush.bf16.msrb.mxu1 %v1691_v60  ;;  %v1699_v60 = vor.u32 %v2140_v55, %v1698_v49  ;;  %v1530_v63 = vld [vmem:[%s3376_s0 + $0x48] sm:$0xf]  ;;  %v2124_v14 = vld [vmem:[%s3376_s0 + $0x12c] sm:$0xf0]  ;;  %v2223_v18 = vld [vmem:[%s3376_s0 + $0x44c] sm:$0xf] }
  0x31   :  { %v2099_v0 = vld [vmem:[%s3376_s0 + $0x64] sm:$0xf0]  ;;  %v2044_v19 = vld [vmem:[%s3376_s0 + $0x468] sm:$0xf0]  ;;  %v1602_v32 = vld [vmem:[%s3376_s0 + $0xd0] sm:$0xf] }
  0x32   :  { %1008 = vmatmul.bf16.vlgmr.msrb.gmra.mxu2 %v2512_v54  ;;  %1095 = vmatpush.bf16.msra.mxu0 %v1727_v30  ;;  %v2163_v1 = vld [vmem:[%s3376_s0 + $0x264] sm:$0xf0]  ;;  %v1531_v5 = vor.u32 %v2099_v0, %v1530_v63  ;;  %v2103_v23 = vld [vmem:[%s3376_s0 + $0x8c] sm:$0xf]  ;;  %v2047_v30 = vor.u32 %v2223_v18, %v2044_v19  ;;  %v2116_v33 = vld [vmem:[%s3376_s0 + $0xec] sm:$0xf0] }
  0x33   :  { %1082 = vmatpush.bf16.msra.mxu2 %v2043_v11  ;;  %1060 = vmatpush.bf16.msrb.mxu3 %v1883_v27  ;;  %v1754_v6 = vld [vmem:[%s3376_s0 + $0x208] sm:$0xf]  ;;  %v1787_v11 = vor.u32 %v2163_v1, %v1786_v62  ;;  %v1564_v24 = vld [vmem:[%s3376_s0 + $0xa8] sm:$0xf0]  ;;  %v1983_v27 = vor.u32 %v2207_v16, %v1980_v17  ;;  %v1603_v39 = vor.u32 %v2116_v33, %v1602_v32  ;;  %v1570_v41 = vld [vmem:[%s3376_s0 + $0x90] sm:$0xf] }
  0x34   :  { %1040 = vmatpush.bf16.msrb.mxu1 %v1659_v8  ;;  %v1498_v7 = vld [vmem:[%s3376_s0 + $0x8] sm:$0xf]  ;;  %v2111_v8 = vld [vmem:[%s3376_s0 + $0xcc] sm:$0xf]  ;;  %v1567_v36 = vor.u32 %v2103_v23, %v1564_v24  ;;  %v2108_v42 = vld [vmem:[%s3376_s0 + $0xac] sm:$0xf0] }
  0x35   :  { %v2091_v12 = vld [vmem:[%s3376_s0 + $0x24] sm:$0xf0]  ;;  %v1599_v20 = vor.u32 %v2111_v8, %v1596_v9  ;;  %v2199_v28 = vld [vmem:[%s3376_s0 + $0x38c] sm:$0xf]  ;;  %v1571_v55 = vor.u32 %v2108_v42, %v1570_v41  ;;  %v1732_v58 = vld [vmem:[%s3376_s0 + $0x1f0] sm:$0xf0] }
  0x36   :  { %1096 = vmatpush.bf16.msra.mxu0 %v1695_v38  ;;  %v2155_v15 = vld [vmem:[%s3376_s0 + $0x224] sm:$0xf0]  ;;  %v1948_v31 = vld [vmem:[%s3376_s0 + $0x3a8] sm:$0xf0]  ;;  %v1538_v59 = vld [vmem:[%s3376_s0 + $0x50] sm:$0xf] }
  0x37   :  { %1083 = vmatpush.bf16.msra.mxu2 %v2011_v25  ;;  %1061 = vmatpush.bf16.msrb.mxu3 %v1851_v45  ;;  %v1635_v25 = vor.u32 %v2124_v14, %v1634_v13  ;;  %v1755_v26 = vor.u32 %v2155_v15, %v1754_v6  ;;  %v2215_v34 = vld [vmem:[%s3376_s0 + $0x40c] sm:$0xf]  ;;  %v1986_v62 = vld [vmem:[%s3376_s0 + $0x3d0] sm:$0xf]  ;;  %v2136_v1 = vld [vmem:[%s3376_s0 + $0x194] sm:$0xf] }
  0x38   :  { %1041 = vmatpush.bf16.msrb.mxu1 %v1627_v22  ;;  %v1499_v22 = vor.u32 %v2091_v12, %v1498_v7  ;;  %v2012_v35 = vld [vmem:[%s3376_s0 + $0x428] sm:$0xf0]  ;;  %v2212_v63 = vld [vmem:[%s3376_s0 + $0x3ec] sm:$0xf0]  ;;  %v2128_v18 = vld [vmem:[%s3376_s0 + $0x154] sm:$0xf] }
  0x39   :  { %937 = vmatmul.bf16.gmra.mxu0 %v2626_v44  ;;  %994 = vmatmul.bf16.gmra.mxu3 %v2626_v44  ;;  %v2095_v37 = vld [vmem:[%s3376_s0 + $0x4c] sm:$0xf]  ;;  %v2015_v46 = vor.u32 %v2215_v34, %v2012_v35  ;;  %v1987_v3 = vor.u32 %v2212_v63, %v1986_v62  ;;  %v2092_v8 = vld [vmem:[%s3376_s0 + $0x2c] sm:$0xf0]  ;;  %v1668_v19 = vld [vmem:[%s3376_s0 + $0x170] sm:$0xf0] }
  0x3a   :  { %1097 = vmatpush.bf16.msra.mxu0 %v1663_v56  ;;  %v1532_v38 = vld [vmem:[%s3376_s0 + $0x68] sm:$0xf0]  ;;  %v1954_v9 = vld [vmem:[%s3376_s0 + $0x390] sm:$0xf]  ;;  %v2208_v24 = vld [vmem:[%s3376_s0 + $0x3d4] sm:$0xf] }
  0x3b   :  { %1152 = vmatpush.bf16.msrb.mxu2 %v1731_v48  ;;  %956 = vmatmul.bf16.gmra.mxu1 %v2637_v51  ;;  %v2191_v43 = vld [vmem:[%s3376_s0 + $0x34c] sm:$0xf]  ;;  %v1535_v47 = vor.u32 %v2095_v37, %v1532_v38  ;;  %v2196_v23 = vld [vmem:[%s3376_s0 + $0x36c] sm:$0xf0]  ;;  %v1956_v32 = vld [vmem:[%s3376_s0 + $0x3b0] sm:$0xf0] }
  0x3c   :  { %1042 = vmatpush.bf16.msrb.mxu1 %v1595_v40  ;;  %1062 = vmatpush.bf16.msrb.mxu3 %v1819_v61  ;;  %v1951_v40 = vor.u32 %v2199_v28, %v1948_v31  ;;  %v1916_v45 = vld [vmem:[%s3376_s0 + $0x368] sm:$0xf0]  ;;  %v2100_v61 = vld [vmem:[%s3376_s0 + $0x6c] sm:$0xf0]  ;;  %v1636_v28 = vld [vmem:[%s3376_s0 + $0x130] sm:$0xf0] }
  0x3d   :  { %v2183_v48 = vld [vmem:[%s3376_s0 + $0x30c] sm:$0xf]  ;;  %v1919_v56 = vor.u32 %v2191_v43, %v1916_v45  ;;  %v1539_v2 = vor.u32 %v2100_v61, %v1538_v59  ;;  %v2200_v31 = vld [vmem:[%s3376_s0 + $0x394] sm:$0xf]  ;;  %v1890_v34 = vld [vmem:[%s3376_s0 + $0x310] sm:$0xf] }
  0x3e   :  { %1098 = vmatpush.bf16.msra.mxu0 %v1631_v4  ;;  %v1884_v49 = vld [vmem:[%s3376_s0 + $0x328] sm:$0xf0]  ;;  %v1700_v4 = vld [vmem:[%s3376_s0 + $0x1b0] sm:$0xf0]  ;;  %v2188_v35 = vld [vmem:[%s3376_s0 + $0x32c] sm:$0xf0] }
  0x3f   :  { %1153 = vmatpush.bf16.msrb.mxu2 %v1699_v60  ;;  %v2087_v52 = vld [vmem:[%s3376_s0 + $0xc] sm:$0xf]  ;;  %v1887_v6 = vor.u32 %v2183_v48, %v1884_v49  ;;  %v1703_v7 = vor.u32 %v2136_v1, %v1700_v4  ;;  %v1891_v42 = vor.u32 %v2188_v35, %v1890_v34  ;;  %v2112_v45 = vld [vmem:[%s3376_s0 + $0xd4] sm:$0xf]  ;;  %v2180_v49 = vld [vmem:[%s3376_s0 + $0x2ec] sm:$0xf0] }
  0x40   :  { %1043 = vmatpush.bf16.msrb.mxu1 %v1563_v57  ;;  %1063 = vmatpush.bf16.msrb.mxu3 %v1787_v11  ;;  %v1500_v53 = vld [vmem:[%s3376_s0 + $0x28] sm:$0xf0]  ;;  %v2144_v57 = vld [vmem:[%s3376_s0 + $0x1d4] sm:$0xf]  ;;  %v1826_v61 = vld [vmem:[%s3376_s0 + $0x290] sm:$0xf] }
  0x41   :  { %v1735_v60 = vor.u32 %v2144_v57, %v1732_v58  ;;  %v1503_v0 = vor.u32 %v2087_v52, %v1500_v53  ;;  %v2175_v11 = vld [vmem:[%s3376_s0 + $0x2cc] sm:$0xf]  ;;  %v2192_v52 = vld [vmem:[%s3376_s0 + $0x354] sm:$0xf]  ;;  %v2172_v63 = vld [vmem:[%s3376_s0 + $0x2ac] sm:$0xf0] }
  0x42   :  { %1013 = vmatmul.bf16.gmra.mxu2 %v2637_v51  ;;  %1099 = vmatpush.bf16.msra.mxu0 %v1599_v20  ;;  %v1852_v12 = vld [vmem:[%s3376_s0 + $0x2e8] sm:$0xf0]  ;;  %v1922_v20 = vld [vmem:[%s3376_s0 + $0x350] sm:$0xf]  ;;  %v1924_v53 = vld [vmem:[%s3376_s0 + $0x370] sm:$0xf0] }
  0x43   :  { %1154 = vmatpush.bf16.msrb.mxu2 %v1667_v10  ;;  %v2204_v10 = vld [vmem:[%s3376_s0 + $0x3ac] sm:$0xf0]  ;;  %v2167_v13 = vld [vmem:[%s3376_s0 + $0x28c] sm:$0xf]  ;;  %v1855_v17 = vor.u32 %v2175_v11, %v1852_v12  ;;  %v1927_v57 = vor.u32 %v2192_v52, %v1924_v53  ;;  %v2104_v59 = vld [vmem:[%s3376_s0 + $0x94] sm:$0xf] }
  0x44   :  { %1044 = vmatpush.bf16.msrb.mxu1 %v1531_v5  ;;  %1064 = vmatpush.bf16.msrb.mxu3 %v1755_v26  ;;  %v1506_v5 = vld [vmem:[%s3376_s0 + $0x10] sm:$0xf]  ;;  %v1820_v14 = vld [vmem:[%s3376_s0 + $0x2a8] sm:$0xf0]  ;;  %v1955_v16 = vor.u32 %v2204_v10, %v1954_v9  ;;  %v1892_v1 = vld [vmem:[%s3376_s0 + $0x330] sm:$0xf0] }
  0x45   :  { %v1507_v15 = vor.u32 %v2092_v8, %v1506_v5  ;;  %v1823_v33 = vor.u32 %v2167_v13, %v1820_v14  ;;  %v1788_v37 = vld [vmem:[%s3376_s0 + $0x268] sm:$0xf0]  ;;  %v2220_v4 = vld [vmem:[%s3376_s0 + $0x42c] sm:$0xf0]  ;;  %v2096_v8 = vld [vmem:[%s3376_s0 + $0x54] sm:$0xf] }
  0x46   :  { %1100 = vmatpush.bf16.msra.mxu0 %v1567_v36  ;;  %v2159_v36 = vld [vmem:[%s3376_s0 + $0x24c] sm:$0xf]  ;;  %v1540_v9 = vld [vmem:[%s3376_s0 + $0x70] sm:$0xf0]  ;;  %v1794_v10 = vld [vmem:[%s3376_s0 + $0x250] sm:$0xf] }
  0x47   :  { %1155 = vmatpush.bf16.msrb.mxu2 %v1635_v25  ;;  %v1988_v25 = vld [vmem:[%s3376_s0 + $0x3f0] sm:$0xf0]  ;;  %v1756_v41 = vld [vmem:[%s3376_s0 + $0x228] sm:$0xf0]  ;;  %v1791_v43 = vor.u32 %v2159_v36, %v1788_v37  ;;  %v2164_v12 = vld [vmem:[%s3376_s0 + $0x26c] sm:$0xf0] }
  0x48   :  { %1045 = vmatpush.bf16.msrb.mxu1 %v1499_v22  ;;  %1139 = vmatpush.bf16.msra.mxu3 %v2047_v30  ;;  %v1671_v22 = vor.u32 %v2128_v18, %v1668_v19  ;;  %v1991_v26 = vor.u32 %v2208_v24, %v1988_v25  ;;  %v1923_v30 = vor.u32 %v2196_v23, %v1922_v20  ;;  %v2176_v13 = vld [vmem:[%s3376_s0 + $0x2d4] sm:$0xf]  ;;  %v1762_v23 = vld [vmem:[%s3376_s0 + $0x210] sm:$0xf]  ;;  %v1738_v34 = vld [vmem:[%s3376_s0 + $0x1d8] sm:$0xf] }
  0x49   :  { %2066 = vmatmul.msk.bf16.vlgmr.msrb.gmra.mxu0 %vm917_vm0, %v2325_v29  ;;  %1065 = vmatmul.bf16.vlgmr.msrb.gmra.mxu3 %v2512_v54  ;;  %v1860_v14 = vld [vmem:[%s3376_s0 + $0x2f0] sm:$0xf0]  ;;  %v2156_v24 = vld [vmem:[%s3376_s0 + $0x22c] sm:$0xf0]  ;;  %v2149_v35 = vld [vmem:[%s3376_s0 + $0x1f4] sm:$0xf0] }
  0x4a   :  { %1101 = vmatpush.bf16.msra.mxu0 %v1535_v47  ;;  %v1858_v47 = vld [vmem:[%s3376_s0 + $0x2d0] sm:$0xf]  ;;  %v2088_v18 = vld [vmem:[%s3376_s0 + $0x14] sm:$0xf]  ;;  %v1739_v37 = vor.u32 %v2149_v35, %v1738_v34  ;;  %v1674_v52 = vld [vmem:[%s3376_s0 + $0x158] sm:$0xf] }
  0x4b   :  { %1156 = vmatpush.bf16.msrb.mxu2 %v1603_v39  ;;  %1046 = vmatmul.bf16.vlgmr.msrb.gmra.mxu1 %v2504_v50  ;;  %v1959_v39 = vor.u32 %v2200_v31, %v1956_v32  ;;  %v1859_v58 = vor.u32 %v2180_v49, %v1858_v47  ;;  %v2168_v19 = vld [vmem:[%s3376_s0 + $0x294] sm:$0xf]  ;;  %v2197_v49 = vld [vmem:[%s3376_s0 + $0x374] sm:$0xf0]  ;;  %v2145_v34 = vld [vmem:[%s3376_s0 + $0x1dc] sm:$0xf] }
  0x4c   :  { %1114 = vmatpush.bf16.msra.mxu1 %v1983_v27  ;;  %1140 = vmatpush.bf16.msra.mxu3 %v2015_v46  ;;  %v2120_v27 = vld [vmem:[%s3376_s0 + $0x114] sm:$0xf]  ;;  %v1740_v35 = vld [vmem:[%s3376_s0 + $0x1f8] sm:$0xf0] }
  0x4d   :  { %v1639_v38 = vor.u32 %v2120_v27, %v1636_v28  ;;  %v1604_v46 = vld [vmem:[%s3376_s0 + $0xf0] sm:$0xf0]  ;;  %v1763_v27 = vor.u32 %v2156_v24, %v1762_v23  ;;  %v1994_v28 = vld [vmem:[%s3376_s0 + $0x3d8] sm:$0xf] }
  0x4e   :  { %1102 = vmatpush.bf16.msra.mxu0 %v1503_v0  ;;  %v1607_v48 = vor.u32 %v2112_v45, %v1604_v46  ;;  %v2184_v0 = vld [vmem:[%s3376_s0 + $0x314] sm:$0xf]  ;;  %v1770_v24 = vld [vmem:[%s3376_s0 + $0x218] sm:$0xf] }
  0x4f   :  { %1157 = vmatpush.bf16.msrb.mxu2 %v1571_v55  ;;  %v2050_v55 = vld [vmem:[%s3376_s0 + $0x450] sm:$0xf]  ;;  %v1828_v20 = vld [vmem:[%s3376_s0 + $0x2b0] sm:$0xf0] }
  0x50   :  { %1115 = vmatpush.bf16.msra.mxu1 %v1951_v40  ;;  %1209 = vmatpush.bf16.msrb.mxu3 %v1735_v60  ;;  %v2151_v40 = vld [vmem:[%s3376_s0 + $0x20c] sm:$0xf]  ;;  %v1572_v60 = vld [vmem:[%s3376_s0 + $0xb0] sm:$0xf0]  ;;  %v1831_v25 = vor.u32 %v2168_v19, %v1828_v20  ;;  %v1546_v19 = vld [vmem:[%s3376_s0 + $0x58] sm:$0xf] }
  0x51   :  { %v1759_v62 = vor.u32 %v2151_v40, %v1756_v41  ;;  %v1575_v5 = vor.u32 %v2104_v59, %v1572_v60  ;;  %v2160_v31 = vld [vmem:[%s3376_s0 + $0x254] sm:$0xf]  ;;  %v1642_v59 = vld [vmem:[%s3376_s0 + $0x118] sm:$0xf] }
  0x52   :  { %1171 = vmatpush.bf16.msrb.mxu0 %v1987_v3  ;;  %2068 = vmatmul.msk.bf16.vlgmr.msra.gmra.mxu2 %vm917_vm0, %v2325_v29  ;;  %v2018_v3 = vld [vmem:[%s3376_s0 + $0x410] sm:$0xf]  ;;  %v2152_v40 = vld [vmem:[%s3376_s0 + $0x214] sm:$0xf] }
  0x53   :  { %1158 = vmatpush.bf16.msrb.mxu2 %v1539_v2  ;;  %v2019_v11 = vor.u32 %v2220_v4, %v2018_v3  ;;  %v1764_v41 = vld [vmem:[%s3376_s0 + $0x230] sm:$0xf0]  ;;  %v2181_v3 = vld [vmem:[%s3376_s0 + $0x2f4] sm:$0xf0] }
  0x54   :  { %1116 = vmatpush.bf16.msra.mxu1 %v1919_v56  ;;  %1210 = vmatpush.bf16.msrb.mxu3 %v1703_v7  ;;  %v2228_v56 = vld [vmem:[%s3376_s0 + $0x46c] sm:$0xf0]  ;;  %v1827_v7 = vor.u32 %v2172_v63, %v1826_v61  ;;  %v1767_v47 = vor.u32 %v2152_v40, %v1764_v41  ;;  %v2125_v61 = vld [vmem:[%s3376_s0 + $0x134] sm:$0xf0]  ;;  %v1996_v40 = vld [vmem:[%s3376_s0 + $0x3f8] sm:$0xf0] }
  0x55   :  { %v2051_v2 = vor.u32 %v2228_v56, %v2050_v55  ;;  %v2133_v55 = vld [vmem:[%s3376_s0 + $0x174] sm:$0xf0] }
  0x56   :  { %1172 = vmatpush.bf16.msrb.mxu0 %v1955_v16  ;;  %v1863_v16 = vor.u32 %v2176_v13, %v1860_v14  ;;  %v1675_v56 = vor.u32 %v2133_v55, %v1674_v52  ;;  %v2229_v63 = vld [vmem:[%s3376_s0 + $0x474] sm:$0xf0] }
  0x57   :  { %1159 = vmatpush.bf16.msrb.mxu2 %v1507_v15  ;;  %v1543_v15 = vor.u32 %v2096_v8, %v1540_v9  ;;  %v1610_v4 = vld [vmem:[%s3376_s0 + $0xd8] sm:$0xf]  ;;  %v2224_v8 = vld [vmem:[%s3376_s0 + $0x454] sm:$0xf] }
  0x58   :  { %1117 = vmatpush.bf16.msra.mxu1 %v1887_v6  ;;  %1211 = vmatpush.bf16.msrb.mxu3 %v1671_v22  ;;  %v1895_v6 = vor.u32 %v2184_v0, %v1892_v1  ;;  %v1508_v22 = vld [vmem:[%s3376_s0 + $0x30] sm:$0xf0]  ;;  %v1643_v0 = vor.u32 %v2125_v61, %v1642_v59  ;;  %v1578_v13 = vld [vmem:[%s3376_s0 + $0x98] sm:$0xf] }
  0x59   :  { %2067 = vmatmul.msk.bf16.gmra.mxu0 %vm917_vm0, %v2446_v21  ;;  %1070 = vmatmul.bf16.gmra.mxu3 %v2637_v51  ;;  %v2052_v9 = vld [vmem:[%s3376_s0 + $0x470] sm:$0xf0]  ;;  %v2109_v14 = vld [vmem:[%s3376_s0 + $0xb4] sm:$0xf0] }
  0x5a   :  { %1173 = vmatpush.bf16.msrb.mxu0 %v1923_v30  ;;  %v2213_v30 = vld [vmem:[%s3376_s0 + $0x3f4] sm:$0xf0] }
  0x5b   :  { %1228 = vmatpush.bf16.msra.mxu2 %v1991_v26  ;;  %1051 = vmatmul.bf16.gmra.mxu1 %v2626_v44  ;;  %v1511_v26 = vor.u32 %v2088_v18, %v1508_v22  ;;  %v1995_v32 = vor.u32 %v2213_v30, %v1994_v28  ;;  %v2165_v18 = vld [vmem:[%s3376_s0 + $0x274] sm:$0xf0]  ;;  %v2020_v28 = vld [vmem:[%s3376_s0 + $0x430] sm:$0xf0] }
  0x5c   :  { %1118 = vmatpush.bf16.msra.mxu1 %v1855_v17  ;;  %1212 = vmatpush.bf16.msrb.mxu3 %v1639_v38  ;;  %v1795_v17 = vor.u32 %v2164_v12, %v1794_v10  ;;  %v1962_v38 = vld [vmem:[%s3376_s0 + $0x398] sm:$0xf] }
  0x5d   :  { %v1834_v10 = vld [vmem:[%s3376_s0 + $0x298] sm:$0xf] }
  0x5e   :  { %1174 = vmatpush.bf16.msrb.mxu0 %v1891_v42  ;;  %v1706_v42 = vld [vmem:[%s3376_s0 + $0x198] sm:$0xf] }
  0x5f   :  { %1229 = vmatpush.bf16.msra.mxu2 %v1959_v39  ;;  %v2205_v39 = vld [vmem:[%s3376_s0 + $0x3b4] sm:$0xf0] }
  0x60   :  { %1119 = vmatpush.bf16.msra.mxu1 %v1823_v33  ;;  %1213 = vmatpush.bf16.msrb.mxu3 %v1607_v48  ;;  %v1796_v33 = vld [vmem:[%s3376_s0 + $0x270] sm:$0xf0]  ;;  %v1963_v45 = vor.u32 %v2205_v39, %v1962_v38  ;;  %v1930_v48 = vld [vmem:[%s3376_s0 + $0x358] sm:$0xf]  ;;  %v1743_v39 = vor.u32 %v2145_v34, %v1740_v35  ;;  %v1404_v34 = vld [vmem:[%s3378_s2] sm:$0xff] }
  0x61   :  { %v1799_v36 = vor.u32 %v2160_v31, %v1796_v33  ;;  %v1931_v53 = vor.u32 %v2197_v49, %v1930_v48  ;;  %v2173_v12 = vld [vmem:[%s3376_s0 + $0x2b4] sm:$0xf0]  ;;  %v1708_v48 = vld [vmem:[%s3376_s0 + $0x1b8] sm:$0xf0] }
  0x62   :  { %1175 = vmatpush.bf16.msrb.mxu0 %v1859_v58  ;;  %2069 = vmatmul.msk.bf16.gmra.mxu2 %vm917_vm0, %v2446_v21  ;;  %v2189_v58 = vld [vmem:[%s3376_s0 + $0x334] sm:$0xf0]  ;;  %v2201_v49 = vld [vmem:[%s3376_s0 + $0x39c] sm:$0xf] }
  0x63   :  { %1230 = vmatpush.bf16.msra.mxu2 %v1927_v57  ;;  %v1898_v57 = vld [vmem:[%s3376_s0 + $0x318] sm:$0xf] }
  0x64   :  { %1120 = vmatpush.bf16.msra.mxu1 %v1791_v43  ;;  %1214 = vmatpush.bf16.msrb.mxu3 %v1575_v5  ;;  %v2141_v43 = vld [vmem:[%s3376_s0 + $0x1b4] sm:$0xf0]  ;;  %v1899_v60 = vor.u32 %v2189_v58, %v1898_v57  ;;  %v1676_v57 = vld [vmem:[%s3376_s0 + $0x178] sm:$0xf0] }
  0x65   :  { %v1707_v46 = vor.u32 %v2141_v43, %v1706_v42  ;;  %v2101_v22 = vld [vmem:[%s3376_s0 + $0x74] sm:$0xf0]  ;;  %v2225_v42 = vld [vmem:[%s3376_s0 + $0x45c] sm:$0xf] }
  0x66   :  { %1176 = vmatpush.bf16.msrb.mxu0 %v1827_v7  ;;  %v1547_v23 = vor.u32 %v2101_v22, %v1546_v19  ;;  %v1514_v30 = vld [vmem:[%s3376_s0 + $0x18] sm:$0xf]  ;;  %v2060_v43 = vld [vmem:[%s3376_s0 + $0x478] sm:$0xf0] }
  0x67   :  { %1231 = vmatpush.bf16.msra.mxu2 %v1895_v6  ;;  %v2117_v6 = vld [vmem:[%s3376_s0 + $0xf4] sm:$0xf0]  ;;  %v2193_v58 = vld [vmem:[%s3376_s0 + $0x35c] sm:$0xf] }
  0x68   :  { %1121 = vmatpush.bf16.msra.mxu1 %v1759_v62  ;;  %1215 = vmatpush.bf16.msrb.mxu3 %v1543_v15  ;;  %v2058_v62 = vld [vmem:[%s3376_s0 + $0x458] sm:$0xf]  ;;  %v1611_v7 = vor.u32 %v2117_v6, %v1610_v4  ;;  %v1835_v15 = vor.u32 %v2173_v12, %v1834_v10  ;;  %v1612_v6 = vld [vmem:[%s3376_s0 + $0xf8] sm:$0xf0] }
  0x69   :  { %1103 = vmatmul.bf16.vlgmr.msra.gmra.mxu0 %v2504_v50  ;;  %2070 = vmatmul.msk.bf16.vlgmr.msra.gmra.mxu3 %vm917_vm0, %v2325_v29  ;;  %v2059_v1 = vor.u32 %v2229_v63, %v2058_v62  ;;  %v2093_v31 = vld [vmem:[%s3376_s0 + $0x34] sm:$0xf0]  ;;  %v2121_v63 = vld [vmem:[%s3376_s0 + $0x11c] sm:$0xf] }
  0x6a   :  { %1177 = vmatpush.bf16.msrb.mxu0 %v1795_v17  ;;  %v1802_v17 = vld [vmem:[%s3376_s0 + $0x258] sm:$0xf]  ;;  %v1515_v33 = vor.u32 %v2093_v31, %v1514_v30  ;;  %v2217_v10 = vld [vmem:[%s3376_s0 + $0x41c] sm:$0xf] }
  0x6b   :  { %1232 = vmatpush.bf16.msra.mxu2 %v1863_v16  ;;  %1122 = vmatmul.bf16.vlgmr.msra.gmra.mxu1 %v2512_v54  ;;  %v1579_v16 = vor.u32 %v2109_v14, %v1578_v13  ;;  %v1803_v20 = vor.u32 %v2165_v18, %v1802_v17  ;;  %v2221_v38 = vld [vmem:[%s3376_s0 + $0x434] sm:$0xf0]  ;;  %v2169_v17 = vld [vmem:[%s3376_s0 + $0x29c] sm:$0xf] }
  0x6c   :  { %1196 = vmatpush.bf16.msrb.mxu1 %v2051_v2  ;;  %1216 = vmatpush.bf16.msrb.mxu3 %v1511_v26  ;;  %v1866_v2 = vld [vmem:[%s3376_s0 + $0x2d8] sm:$0xf]  ;;  %v2216_v26 = vld [vmem:[%s3376_s0 + $0x414] sm:$0xf]  ;;  %v1836_v19 = vld [vmem:[%s3376_s0 + $0x2b8] sm:$0xf0] }
  0x6d   :  { %v1867_v5 = vor.u32 %v2181_v3, %v1866_v2  ;;  %v1900_v3 = vld [vmem:[%s3376_s0 + $0x338] sm:$0xf0] }
  0x6e   :  { %1178 = vmatpush.bf16.msrb.mxu0 %v1763_v27  ;;  %v2097_v22 = vld [vmem:[%s3376_s0 + $0x5c] sm:$0xf] }
  0x6f   :  { %1233 = vmatpush.bf16.msra.mxu2 %v1831_v25  ;;  %v2157_v25 = vld [vmem:[%s3376_s0 + $0x234] sm:$0xf0]  ;;  %v2089_v30 = vld [vmem:[%s3376_s0 + $0x1c] sm:$0xf] }
  0x70   :  { %1197 = vmatpush.bf16.msrb.mxu1 %v2019_v11  ;;  %1285 = vmatpush.bf16.msra.mxu3 %v1995_v32  ;;  %v2055_v11 = vor.u32 %v2224_v8, %v2052_v9  ;;  %v1771_v27 = vor.u32 %v2157_v25, %v1770_v24  ;;  %v2023_v32 = vor.u32 %v2216_v26, %v2020_v28  ;;  %v1868_v9 = vld [vmem:[%s3376_s0 + $0x2f8] sm:$0xf0] }
  0x71   :  { %v2161_v24 = vld [vmem:[%s3376_s0 + $0x25c] sm:$0xf] }
  0x72   :  { %1160 = vmatmul.bf16.vlgmr.msrb.gmra.mxu2 %v2504_v50  ;;  %1253 = vmatpush.bf16.msra.mxu0 %v2055_v11  ;;  %v2028_v11 = vld [vmem:[%s3376_s0 + $0x438] sm:$0xf0] }
  0x73   :  { %1234 = vmatpush.bf16.msra.mxu2 %v1799_v36  ;;  %v2209_v36 = vld [vmem:[%s3376_s0 + $0x3dc] sm:$0xf]  ;;  %v2031_v13 = vor.u32 %v2217_v10, %v2028_v11 }
  0x74   :  { %1266 = vmatpush.bf16.msra.mxu1 %v1739_v37  ;;  %1286 = vmatpush.bf16.msra.mxu3 %v1963_v45  ;;  %v2026_v37 = vld [vmem:[%s3376_s0 + $0x418] sm:$0xf]  ;;  %v1999_v45 = vor.u32 %v2209_v36, %v1996_v40  ;;  %v1804_v26 = vld [vmem:[%s3376_s0 + $0x278] sm:$0xf0] }
  0x75   :  { %v2027_v41 = vor.u32 %v2221_v38, %v2026_v37  ;;  %v1516_v31 = vld [vmem:[%s3376_s0 + $0x38] sm:$0xf0]  ;;  %v2241_v38 = vmov 0  }
  0x76   :  { %1254 = vmatpush.bf16.msra.mxu0 %v2023_v32  ;;  %v2153_v32 = vld [vmem:[%s3376_s0 + $0x21c] sm:$0xf]  ;;  %v1519_v35 = vor.u32 %v2089_v30, %v1516_v31  ;;  %2239 = vset.pattern.permute.xlu0 %v2241_v38 }
  0x77   :  { %1235 = vmatpush.bf16.msra.mxu2 %v1767_v47  ;;  %v2137_v47 = vld [vmem:[%s3376_s0 + $0x19c] sm:$0xf]  ;;  %1410 = vperm.xlu0 %2239, %v1404_v34  }
  0x78   :  { %1267 = vmatpush.bf16.msra.mxu1 %v1707_v46  ;;  %1287 = vmatpush.bf16.msra.mxu3 %v1931_v53  ;;  %v2063_v46 = vor.u32 %v2225_v42, %v2060_v43  ;;  %v1711_v52 = vor.u32 %v2137_v47, %v1708_v48  ;;  %v1964_v53 = vld [vmem:[%s3376_s0 + $0x3b8] sm:$0xf0]  ;;  %v1405_v47 = vld [vmem:[%s3378_s2 + $0x8] sm:$0xff] }
  0x79   :  { %1108 = vmatmul.bf16.gmra.mxu0 %v2626_v44  ;;  %2071 = vmatmul.msk.bf16.gmra.mxu3 %vm917_vm0, %v2446_v21  ;;  %v1967_v55 = vor.u32 %v2201_v49, %v1964_v53  ;;  %v1772_v36 = vld [vmem:[%s3376_s0 + $0x238] sm:$0xf0] }
  0x7a   :  { %2240 = vset.pattern.permute.xlu1 %v2241_v38 }
  0x7b   :  { %1127 = vmatmul.bf16.gmra.mxu1 %v2637_v51  ;;  %1310 = vmatpush.bf16.msrb.mxu2 %v2059_v1  ;;  %v2185_v1 = vld [vmem:[%s3376_s0 + $0x31c] sm:$0xf] }
  0x7c   :  { %1268 = vmatpush.bf16.msra.mxu1 %v1675_v56  ;;  %1288 = vmatpush.bf16.msra.mxu3 %v1899_v60  ;;  %v2129_v56 = vld [vmem:[%s3376_s0 + $0x15c] sm:$0xf]  ;;  %v1903_v4 = vor.u32 %v2185_v1, %v1900_v3 }
  0x7d   :  { %v1679_v59 = vor.u32 %v2129_v56, %v1676_v57  ;;  %v1932_v60 = vld [vmem:[%s3376_s0 + $0x378] sm:$0xf0] }
  0x7e   :  { %v1935_v61 = vor.u32 %v2193_v58, %v1932_v60  ;;  %v1406_v58 = vld [vmem:[%s3378_s2 + $0x10] sm:$0xff] }
  0x7f   :  { %1311 = vmatpush.bf16.msrb.mxu2 %v2027_v41  ;;  %1415 = vperm.xlu0 %2239, %v1405_v47  }
  0x80   :  { %1269 = vmatpush.bf16.msra.mxu1 %v1643_v0  ;;  %1289 = vmatpush.bf16.msra.mxu3 %v1867_v5  ;;  %v1644_v0 = vld [vmem:[%s3376_s0 + $0x138] sm:$0xf0] }
  0x81   :  { %v1647_v2 = vor.u32 %v2121_v63, %v1644_v0  ;;  %v2113_v5 = vld [vmem:[%s3376_s0 + $0xdc] sm:$0xf]  ;;  %1420 = vperm.xlu1 %2240, %v1406_v58  }
  0x82   :  { %1165 = vmatmul.bf16.gmra.mxu2 %v2626_v44  ;;  %v1615_v8 = vor.u32 %v2113_v5, %v1612_v6 }
  0x84   :  { %1270 = vmatpush.bf16.msra.mxu1 %v1611_v7  ;;  %1290 = vmatpush.bf16.msra.mxu3 %v1835_v15  ;;  %v2177_v7 = vld [vmem:[%s3376_s0 + $0x2dc] sm:$0xf] }
  0x85   :  { %v1871_v12 = vor.u32 %v2177_v7, %v1868_v9  ;;  %v2105_v15 = vld [vmem:[%s3376_s0 + $0x9c] sm:$0xf] }
  0x88   :  { %1271 = vmatpush.bf16.msra.mxu1 %v1579_v16  ;;  %1291 = vmatpush.bf16.msra.mxu3 %v1803_v20  ;;  %v1580_v16 = vld [vmem:[%s3376_s0 + $0xb8] sm:$0xf0]  ;;  %v1839_v20 = vor.u32 %v2169_v17, %v1836_v19 }
  0x89   :  { %1179 = vmatmul.bf16.vlgmr.msrb.gmra.mxu0 %v2512_v54  ;;  %1217 = vmatmul.bf16.vlgmr.msrb.gmra.mxu3 %v2504_v50  ;;  %v1583_v18 = vor.u32 %v2105_v15, %v1580_v16 }
  0x8a   :  { %1323 = vmatpush.bf16.msrb.mxu0 %v1743_v39 }
  0x8b   :  { %2072 = vmatmul.msk.bf16.vlgmr.msrb.gmra.mxu1 %vm917_vm0, %v2325_v29 }
  0x8c   :  { %1272 = vmatpush.bf16.msra.mxu1 %v1547_v23  ;;  %1292 = vmatpush.bf16.msra.mxu3 %v1771_v27  ;;  %v1548_v23 = vld [vmem:[%s3376_s0 + $0x78] sm:$0xf0]  ;;  %v1807_v27 = vor.u32 %v2161_v24, %v1804_v26 }
  0x8d   :  { %v1551_v25 = vor.u32 %v2097_v22, %v1548_v23 }
  0x8e   :  { %1324 = vmatpush.bf16.msrb.mxu0 %v1711_v52 }
  0x90   :  { %1273 = vmatpush.bf16.msra.mxu1 %v1515_v33  ;;  %1367 = vmatpush.bf16.msrb.mxu3 %v2063_v46 }
  0x92   :  { %1236 = vmatmul.bf16.vlgmr.msra.gmra.mxu2 %v2512_v54  ;;  %1325 = vmatpush.bf16.msrb.mxu0 %v1679_v59 }
  0x93   :  { %2230 = vmatpush.bf16.msra.mxu2 %v1743_v39  ;;  %v1775_v39 = vor.u32 %v2153_v32, %v1772_v36 }
  0x94   :  { %1342 = vmatpush.bf16.msrb.mxu1 %v1999_v45  ;;  %1368 = vmatpush.bf16.msrb.mxu3 %v2031_v13 }
  0x95   :  { %v3147_v62 = vpop.f32.mrf.mxu2 }
  0x96   :  { %1326 = vmatpush.bf16.msrb.mxu0 %v1647_v2 }
  0x97   :  { %2231 = vmatpush.bf16.msra.mxu2 %v1711_v52 }
  0x98   :  { %1343 = vmatpush.bf16.msrb.mxu1 %v1967_v55 }
  0x99   :  { %1184 = vmatmul.bf16.gmra.mxu0 %v2637_v51  ;;  %1222 = vmatmul.bf16.gmra.mxu3 %v2626_v44 }
  0x9a   :  { %1327 = vmatpush.bf16.msrb.mxu0 %v1615_v8 }
  0x9b   :  { %2073 = vmatmul.msk.bf16.gmra.mxu1 %vm917_vm0, %v2446_v21  ;;  %2232 = vmatpush.bf16.msra.mxu2 %v1679_v59 }
  0x9c   :  { %1344 = vmatpush.bf16.msrb.mxu1 %v1935_v61 }
  0x9d   :  { %v973_v14 = vpop.f32.mrf.mxu2 }
  0x9e   :  { %1328 = vmatpush.bf16.msrb.mxu0 %v1583_v18 }
  0x9f   :  { %2233 = vmatpush.bf16.msra.mxu2 %v1647_v2  ;;  %v1407_v2 = vld [vmem:[%s3378_s2 + $0x18] sm:$0xff] }
  0xa0   :  { %1345 = vmatpush.bf16.msrb.mxu1 %v1903_v4  ;;  %1425 = vperm.xlu1 %2240, %v1407_v2  }
  0xa2   :  { %1241 = vmatmul.bf16.gmra.mxu2 %v2637_v51  ;;  %1329 = vmatpush.bf16.msrb.mxu0 %v1551_v25 }
  0xa3   :  { %2234 = vmatpush.bf16.msra.mxu2 %v1615_v8 }
  0xa4   :  { %1346 = vmatpush.bf16.msrb.mxu1 %v1871_v12 }
  0xa5   :  { %v976_v28 = vpop.f32.mrf.mxu2 }
  0xa6   :  { %v933_v33 = vpop.f32.mrf.mxu0  ;;  %1330 = vmatpush.bf16.msrb.mxu0 %v1519_v35 }
  0xa7   :  { %2235 = vmatpush.bf16.msra.mxu2 %v1583_v18 }
  0xa8   :  { %1347 = vmatpush.bf16.msrb.mxu1 %v1839_v20  ;;  %v952_v37 = vpop.f32.mrf.mxu1 }
  0xa9   :  { %v953_v40 = vadd.f32 %v952_v37, %v933_v33  ;;  %2074 = vmatmul.msk.bf16.vlgmr.msra.gmra.mxu0 %vm917_vm0, %v2325_v29  ;;  %1293 = vmatmul.bf16.vlgmr.msra.gmra.mxu3 %v2512_v54 }
  0xab   :  { %v3226_v41 = vadd.f32 %v3147_v62, %v953_v40  ;;  %1274 = vmatmul.bf16.vlgmr.msra.gmra.mxu1 %v2504_v50  ;;  %2236 = vmatpush.bf16.msra.mxu2 %v1551_v25 }
  0xac   :  { %1348 = vmatpush.bf16.msrb.mxu1 %v1807_v27  ;;  %v990_v43 = vpop.f32.mrf.mxu3 }
  0xad   :  { %v978_v42 = vpop.f32.mrf.mxu2 }
  0xae   :  { %v935_v45 = vpop.f32.mrf.mxu0 }
  0xaf   :  { %2237 = vmatpush.bf16.msra.mxu2 %v1519_v35 }
  0xb0   :  { %1349 = vmatpush.bf16.msrb.mxu1 %v1775_v39  ;;  %v954_v46 = vpop.f32.mrf.mxu1 }
  0xb1   :  { %v955_v48 = vadd.f32 %v954_v46, %v935_v45 }
  0xb2   :  { %2076 = vmatmul.msk.bf16.vlgmr.msrb.gmra.mxu2 %vm917_vm0, %v2325_v29 }
  0xb3   :  { %v3233_v49 = vadd.f32 %v973_v14, %v955_v48 }
  0xb4   :  { %v992_v53 = vpop.f32.mrf.mxu3 }
  0xb5   :  { %v1009_v52 = vpop.f32.mrf.mxu2 }
  0xb6   :  { %v1010_v55 = vadd.f32 %v1009_v52, %v990_v43  ;;  %v938_v56 = vpop.f32.mrf.mxu0 }
  0xb8   :  { %v957_v57 = vpop.f32.mrf.mxu1 }
  0xb9   :  { %v958_v59 = vadd.f32 %v957_v57, %v938_v56  ;;  %2075 = vmatmul.msk.bf16.gmra.mxu0 %vm917_vm0, %v2446_v21  ;;  %1298 = vmatmul.bf16.gmra.mxu3 %v2637_v51 }
  0xbb   :  { %v3242_v60 = vadd.f32 %v976_v28, %v958_v59  ;;  %1279 = vmatmul.bf16.gmra.mxu1 %v2626_v44 }
  0xbc   :  { %v995_v62 = vpop.f32.mrf.mxu3 }
  0xbd   :  { %v1011_v61 = vpop.f32.mrf.mxu2 }
  0xbe   :  { %v1012_v63 = vadd.f32 %v1011_v61, %v992_v53  ;;  %v940_v0 = vpop.f32.mrf.mxu0 }
  0xc0   :  { %v959_v1 = vpop.f32.mrf.mxu1 }
  0xc1   :  { %v960_v3 = vadd.f32 %v959_v1, %v940_v0 }
  0xc2   :  { %2077 = vmatmul.msk.bf16.gmra.mxu2 %vm917_vm0, %v2446_v21 }
  0xc3   :  { %v3249_v4 = vadd.f32 %v978_v42, %v960_v3 }
  0xc4   :  { %v997_v6 = vpop.f32.mrf.mxu3 }
  0xc5   :  { %v1014_v5 = vpop.f32.mrf.mxu2 }
  0xc6   :  { %v1015_v7 = vadd.f32 %v1014_v5, %v995_v62  ;;  %v1028_v8 = vpop.f32.mrf.mxu0 }
  0xc7   :  { %v3253_v9 = vadd.f32 %v1028_v8, %v1010_v55 }
  0xc8   :  { %v1047_v10 = vpop.f32.mrf.mxu1 }
  0xc9   :  { %1331 = vmatmul.bf16.vlgmr.msrb.gmra.mxu0 %v2504_v50  ;;  %2078 = vmatmul.msk.bf16.vlgmr.msrb.gmra.mxu3 %vm917_vm0, %v2325_v29 }
  0xcb   :  { %1350 = vmatmul.bf16.vlgmr.msrb.gmra.mxu1 %v2512_v54 }
  0xcc   :  { %v1066_v13 = vpop.f32.mrf.mxu3 }
  0xcd   :  { %v1016_v11 = vpop.f32.mrf.mxu2  ;;  %v1067_v15 = vadd.f32 %v1066_v13, %v1047_v10 }
  0xce   :  { %v1017_v12 = vadd.f32 %v1016_v11, %v997_v6  ;;  %v1030_v14 = vpop.f32.mrf.mxu0 }
  0xcf   :  { %v3259_v16 = vadd.f32 %v1030_v14, %v1012_v63 }
  0xd0   :  { %v1049_v17 = vpop.f32.mrf.mxu1 }
  0xd2   :  { %1336 = vmatmul.bf16.vlgmr.msra.gmra.mxu2 %v2626_v44 }
  0xd4   :  { %v1068_v19 = vpop.f32.mrf.mxu3 }
  0xd5   :  { %v1085_v18 = vpop.f32.mrf.mxu2  ;;  %v1069_v22 = vadd.f32 %v1068_v19, %v1049_v17 }
  0xd6   :  { %v3262_v20 = vadd.f32 %v1085_v18, %v1067_v15  ;;  %v1033_v50 = vpop.f32.mrf.mxu0 }
  0xd7   :  { %v3264_v54 = vadd.f32 %v1033_v50, %v1015_v7 }
  0xd8   :  { %v1052_v23 = vpop.f32.mrf.mxu1  ;;  %v1380_v29 = vmax.f32 %v3226_v41, %v3262_v20 }
  0xd9   :  { %2079 = vmatmul.msk.bf16.gmra.mxu3 %vm917_vm0, %v2446_v21 }
  0xdb   :  { %1355 = vmatmul.bf16.gmra.mxu1 %v2637_v51 }
  0xdc   :  { %v1071_v25 = vpop.f32.mrf.mxu3 }
  0xdd   :  { %v1087_v24 = vpop.f32.mrf.mxu2  ;;  %v1072_v27 = vadd.f32 %v1071_v25, %v1052_v23 }
  0xde   :  { %v3271_v44 = vadd.f32 %v1087_v24, %v1069_v22  ;;  %v1035_v26 = vpop.f32.mrf.mxu0 }
  0xdf   :  { %v3273_v28 = vadd.f32 %v1035_v26, %v1017_v12 }
  0xe0   :  { %v1054_v30 = vpop.f32.mrf.mxu1  ;;  %v1382_v31 = vmax.f32 %v3233_v49, %v3271_v44 }
  0xe4   :  { %v1073_v33 = vpop.f32.mrf.mxu3 }
  0xe5   :  { %v1090_v32 = vpop.f32.mrf.mxu2  ;;  %v1074_v35 = vadd.f32 %v1073_v33, %v1054_v30 }
  0xe6   :  { %v3277_v34 = vadd.f32 %v1090_v32, %v1072_v27  ;;  %v1104_v51 = vpop.f32.mrf.mxu0 }
  0xe8   :  { %v1123_v36 = vpop.f32.mrf.mxu1  ;;  %v1384_v21 = vmax.f32 %v3242_v60, %v3277_v34 }
  0xe9   :  { %v1124_v37 = vadd.f32 %v1123_v36, %v1104_v51 }
  0xec   :  { %v1142_v40 = vpop.f32.mrf.mxu3 }
  0xed   :  { %v1092_v38 = vpop.f32.mrf.mxu2  ;;  %v3283_v43 = vadd.f32 %v1142_v40, %v1124_v37 }
  0xee   :  { %v3281_v39 = vadd.f32 %v1092_v38, %v1074_v35  ;;  %v1106_v42 = vpop.f32.mrf.mxu0 }
  0xef   :  { %v1381_v48 = vmax.f32 %v3253_v9, %v3283_v43 }
  0xf0   :  { %v1125_v45 = vpop.f32.mrf.mxu1  ;;  %v1386_v46 = vmax.f32 %v3249_v4, %v3281_v39 }
  0xf1   :  { %v1126_v47 = vadd.f32 %v1125_v45, %v1106_v42  ;;  %v1411_v45 = vpop.permute.xlu0 %1410 }
  0xf3   :  { %v1421_v49 = vpop.permute.xlu1 %1420 }
  0xf4   :  { %v1144_v53 = vpop.f32.mrf.mxu3 }
  0xf5   :  { %v1161_v52 = vpop.f32.mrf.mxu2  ;;  %v3289_v56 = vadd.f32 %v1144_v53, %v1126_v47 }
  0xf6   :  { %v1109_v55 = vpop.f32.mrf.mxu0 }
  0xf7   :  { %v1383_v59 = vmax.f32 %v3259_v16, %v3289_v56 }
  0xf8   :  { %v1128_v57 = vpop.f32.mrf.mxu1 }
  0xf9   :  { %v1129_v58 = vadd.f32 %v1128_v57, %v1109_v55 }
  0xfc   :  { %v1147_v62 = vpop.f32.mrf.mxu3 }
  0xfd   :  { %v1163_v61 = vpop.f32.mrf.mxu2  ;;  %v3293_v0 = vadd.f32 %v1147_v62, %v1129_v58 }
  0xfe   :  { %v1111_v63 = vpop.f32.mrf.mxu0 }
  0xff   :  { %v1385_v3 = vmax.f32 %v3264_v54, %v3293_v0 }
 0x100   :  { %v1130_v1 = vpop.f32.mrf.mxu1 }
 0x101   :  { %v1131_v2 = vadd.f32 %v1130_v1, %v1111_v63 }
 0x104   :  { %v1149_v6 = vpop.f32.mrf.mxu3 }
 0x105   :  { %v1166_v5 = vpop.f32.mrf.mxu2  ;;  %v3297_v8 = vadd.f32 %v1149_v6, %v1131_v2 }
 0x106   :  { %v1180_v7 = vpop.f32.mrf.mxu0 }
 0x107   :  { %v1387_v11 = vmax.f32 %v3273_v28, %v3297_v8  ;;  %v1181_v51 = vadd.f32 %v1180_v7, %v1161_v52 }
 0x108   :  { %v1199_v10 = vpop.f32.mrf.mxu1 }
 0x109   :  { %v1200_v38 = vadd.f32 %v1199_v10, %v1181_v51 }
 0x10b   :  { %v1388_v47 = vmax.f32 %v1380_v29, %v1200_v38 }
 0x10c   :  { %v1218_v13 = vpop.f32.mrf.mxu3 }
 0x10d   :  { %v1168_v12 = vpop.f32.mrf.mxu2 }
 0x10e   :  { %v1182_v14 = vpop.f32.mrf.mxu0 }
 0x10f   :  { %v1183_v53 = vadd.f32 %v1182_v14, %v1163_v61  ;;  %v1416_v14 = vpop.permute.xlu0 %1415 }
 0x110   :  { %v1201_v15 = vpop.f32.mrf.mxu1 }
 0x111   :  { %v1202_v52 = vadd.f32 %v1201_v15, %v1183_v53 }
 0x113   :  { %v1390_v10 = vmax.f32 %v1382_v31, %v1202_v52 }
 0x114   :  { %v3301_v18 = vpop.f32.mrf.mxu3 }
 0x115   :  { %v1237_v17 = vpop.f32.mrf.mxu2 }
 0x116   :  { %v1185_v19 = vpop.f32.mrf.mxu0 }
 0x118   :  { %v1204_v50 = vpop.f32.mrf.mxu1 }
 0x11c   :  { %v3305_v23 = vpop.f32.mrf.mxu3 }
 0x11d   :  { %v3303_v22 = vpop.f32.mrf.mxu2 }
 0x11e   :  { %v1187_v24 = vpop.f32.mrf.mxu0 }
 0x11f   :  { %v1188_v31 = vadd.f32 %v1187_v24, %v1168_v12 }
 0x120   :  { %v1206_v25 = vpop.f32.mrf.mxu1 }
 0x124   :  { %v3309_v27 = vpop.f32.mrf.mxu3 }
 0x125   :  { %v3307_v26 = vpop.f32.mrf.mxu2 }
 0x126   :  { %v1256_v30 = vpop.f32.mrf.mxu0 }
 0x128   :  { %v1275_v32 = vpop.f32.mrf.mxu1 }
 0x12c   :  { %v1294_v35 = vpop.f32.mrf.mxu3 }
 0x12d   :  { %v3311_v33 = vpop.f32.mrf.mxu2  ;;  %v1295_v40 = vadd.f32 %v1294_v35, %v1275_v32  ;;  %v1186_v32 = vadd.f32 %v1185_v19, %v1166_v5 }
 0x12e   :  { %v3313_v36 = vpop.f32.mrf.mxu0 }
 0x12f   :  { %v1205_v35 = vadd.f32 %v1204_v50, %v1186_v32 }
 0x130   :  { %v1277_v37 = vpop.f32.mrf.mxu1 }
 0x131   :  { %v1392_v44 = vmax.f32 %v1384_v21, %v1205_v35 }
 0x134   :  { %v1296_v55 = vpop.f32.mrf.mxu3 }
 0x135   :  { %v1313_v42 = vpop.f32.mrf.mxu2  ;;  %v1297_v2 = vadd.f32 %v1296_v55, %v1277_v37 }
 0x136   :  { %v1314_v57 = vadd.f32 %v1313_v42, %v1295_v40  ;;  %v3318_v58 = vpop.f32.mrf.mxu0 }
 0x138   :  { %v1280_v62 = vpop.f32.mrf.mxu1  ;;  %v1396_v63 = vmax.f32 %v1388_v47, %v1314_v57  ;;  %v1238_v57 = vadd.f32 %v1237_v17, %v1218_v13  ;;  %v1426_v17 = vpop.permute.xlu1 %1425 }
 0x13a   :  { %v1428_v1 = vadd.f32 %v1411_v45, %v1396_v63  ;;  %v1257_v52 = vadd.f32 %v1256_v30, %v1238_v57  ;;  %v1240_v30 = vadd.f32 %v3303_v22, %v3301_v18  ;;  %v1243_v22 = vadd.f32 %v3307_v26, %v3305_v23 }
 0x13b   :  { %v1245_v23 = vadd.f32 %v3311_v33, %v3309_v27 }
 0x13c   :  { %v1436_v6 = vmul.f32 0.01, %v1428_v1  ;;  %v1299_v41 = vpop.f32.mrf.mxu3  ;;  %v1259_v32 = vadd.f32 %v3313_v36, %v1240_v30 }
 0x13d   :  { %v1315_v7 = vpop.f32.mrf.mxu2  ;;  %v1300_v38 = vadd.f32 %v1299_v41, %v1280_v62  ;;  %v1207_v62 = vadd.f32 %v1206_v25, %v1188_v31 }
 0x13e   :  { %v1444_v51 = vmax.f32 %v1428_v1, %v1436_v6  ;;  %v1316_v20 = vadd.f32 %v1315_v7, %v1297_v2  ;;  %v3323_v29 = vpop.f32.mrf.mxu0  ;;  %v1389_v7 = vmax.f32 %v1381_v48, %v1257_v52 }
 0x13f   :  { %v1394_v34 = vmax.f32 %v1386_v46, %v1207_v62 }
 0x140   :  { %v1282_v61 = vpop.f32.mrf.mxu1  ;;  %1452 = vst [vmem:[%s3379_s3] sm:$0xff] %v1444_v51  ;;  %v1398_v15 = vmax.f32 %v1390_v10, %v1316_v20 }
 0x142   :  { %v1430_v37 = vadd.f32 %v1416_v14, %v1398_v15 }
 0x144   :  { %v1438_v40 = vmul.f32 0.01, %v1430_v37  ;;  %v1301_v19 = vpop.f32.mrf.mxu3 }
 0x145   :  { %v1318_v42 = vpop.f32.mrf.mxu2  ;;  %v1302_v2 = vadd.f32 %v1301_v19, %v1282_v61  ;;  %v1391_v61 = vmax.f32 %v1383_v59, %v1259_v32 }
 0x146   :  { %v1446_v5 = vmax.f32 %v1430_v37, %v1438_v40  ;;  %v1319_v47 = vadd.f32 %v1318_v42, %v1300_v38  ;;  %v1332_v50 = vpop.f32.mrf.mxu0  ;;  %v1262_v37 = vadd.f32 %v3318_v58, %v1243_v22  ;;  %v1264_v58 = vadd.f32 %v3323_v29, %v1245_v23 }
 0x148   :  { %v1351_v53 = vpop.f32.mrf.mxu1  ;;  %1454 = vst [vmem:[%s3379_s3 + $0x10] sm:$0xff] %v1446_v5  ;;  %v1400_v55 = vmax.f32 %v1392_v44, %v1319_v47  ;;  %v1393_v40 = vmax.f32 %v1385_v3, %v1262_v37  ;;  %v1395_v54 = vmax.f32 %v1387_v11, %v1264_v58 }
 0x149   :  { %v1352_v1 = vadd.f32 %v1351_v53, %v1332_v50 }
 0x14a   :  { %v1432_v63 = vadd.f32 %v1421_v49, %v1400_v55 }
 0x14c   :  { %v1440_v6 = vmul.f32 0.01, %v1432_v63  ;;  %v1370_v24 = vpop.f32.mrf.mxu3 }
 0x14d   :  { %v1320_v60 = vpop.f32.mrf.mxu2  ;;  %v1371_v10 = vadd.f32 %v1370_v24, %v1352_v1 }
 0x14e   :  { %v1448_v21 = vmax.f32 %v1432_v63, %v1440_v6  ;;  %v1321_v12 = vadd.f32 %v1320_v60, %v1302_v2  ;;  %v1334_v39 = vpop.f32.mrf.mxu0 }
 0x14f   :  { %v1397_v4 = vmax.f32 %v1389_v7, %v1371_v10 }
 0x150   :  { %v1353_v13 = vpop.f32.mrf.mxu1  ;;  %1456 = vst [vmem:[%s3379_s3 + $0x20] sm:$0xff] %v1448_v21  ;;  %v1402_v25 = vmax.f32 %v1394_v34, %v1321_v12 }
 0x151   :  { %v1429_v51 = vadd.f32 %v1411_v45, %v1397_v4  ;;  %v1354_v43 = vadd.f32 %v1353_v13, %v1334_v39 }
 0x152   :  { %v1434_v46 = vadd.f32 %v1426_v17, %v1402_v25 }
 0x153   :  { %v1437_v9 = vmul.f32 0.01, %v1429_v51 }
 0x154   :  { %v1442_v41 = vmul.f32 0.01, %v1434_v46  ;;  %v1372_v20 = vpop.f32.mrf.mxu3 }
 0x155   :  { %v1445_v15 = vmax.f32 %v1429_v51, %v1437_v9  ;;  %v1373_v35 = vadd.f32 %v1372_v20, %v1354_v43  ;;  %v1337_v45 = vpop.f32.mrf.mxu2 }
 0x156   :  { %v1450_v48 = vmax.f32 %v1434_v46, %v1442_v41 }
 0x157   :  { %1453 = vst [vmem:[%s3379_s3 + $0x8] sm:$0xff] %v1445_v15  ;;  %v1399_v36 = vmax.f32 %v1391_v61, %v1373_v35 }
 0x158   :  { %1458 = vst [vmem:[%s3379_s3 + $0x30] sm:$0xff] %v1450_v48  ;;  %v1356_v18 = vpop.f32.mrf.mxu1 }
 0x159   :  { %v1431_v16 = vadd.f32 %v1416_v14, %v1399_v36  ;;  %v1357_v56 = vadd.f32 %v1356_v18, %v1337_v45 }
 0x15b   :  { %v1439_v59 = vmul.f32 0.01, %v1431_v16 }
 0x15c   :  { %v1375_v38 = vpop.f32.mrf.mxu3 }
 0x15d   :  { %v1447_v42 = vmax.f32 %v1431_v16, %v1439_v59  ;;  %v1376_v44 = vadd.f32 %v1375_v38, %v1357_v56  ;;  %v1339_v5 = vpop.f32.mrf.mxu2 }
 0x15f   :  { %1455 = vst [vmem:[%s3379_s3 + $0x18] sm:$0xff] %v1447_v42  ;;  %v1401_v26 = vmax.f32 %v1393_v40, %v1376_v44 }
 0x160   :  { %v1358_v31 = vpop.f32.mrf.mxu1 }
 0x161   :  { %v1433_v14 = vadd.f32 %v1421_v49, %v1401_v26  ;;  %v1359_v47 = vadd.f32 %v1358_v31, %v1339_v5 }
 0x163   :  { %v1441_v19 = vmul.f32 0.01, %v1433_v14 }
 0x164   :  { %v1377_v53 = vpop.f32.mrf.mxu3 }
 0x165   :  { %v1449_v0 = vmax.f32 %v1433_v14, %v1441_v19  ;;  %v1378_v3 = vadd.f32 %v1377_v53, %v1359_v47 }
 0x167   :  { %1457 = vst [vmem:[%s3379_s3 + $0x28] sm:$0xff] %v1449_v0  ;;  %v1403_v27 = vmax.f32 %v1395_v54, %v1378_v3 }
 0x169   :  { %v1435_v33 = vadd.f32 %v1426_v17, %v1403_v27 }
 0x16b   :  { %v1443_v55 = vmul.f32 0.01, %v1435_v33 }
 0x16d   :  { %v1451_v50 = vmax.f32 %v1435_v33, %v1443_v55 }
 0x16f   :  { %1459 = vst [vmem:[%s3379_s3 + $0x38] sm:$0xff] %v1451_v50 }

// kernel: convblock_forward.6
= control target key start
LH: loop header
LB: loop body
LE: loop exit
PB: predicated region body
PF: predicated region fallthrough
CT: control target
= control target key end

     0   :  { %vm485_vm0 = vcmask 261120   ;;  %s1760_s0 = inlined_call_operand.vmem [shape: bf16[288,512], index: 0, kind: input, shape index: {}]   ;;  %s1761_s1 = inlined_call_operand.vmem [shape: bf16[32,288], index: 1, kind: input, shape index: {}]   ;;  %s1762_s2 = inlined_call_operand.vmem [shape: f32[32,1], index: 2, kind: input, shape index: {}]   ;;  %s1763_s3 = inlined_call_operand.vmem [shape: f32[32,128], index: 3, kind: output, shape index: {}]  }
   0x1   :  { %v914_v0 = vld [vmem:[%s1760_s0 + $0xe0] sm:$0xf]  ;;  %v1132_v1 = vld [vmem:[%s1760_s0 + $0xec] sm:$0xf0]  ;;  %v1130_v9 = vld [vmem:[%s1760_s0 + $0xe4] sm:$0xf] }
   0x2   :  { %v1042_v2 = vld [vmem:[%s1760_s0 + $0x1e0] sm:$0xf]  ;;  %v915_v3 = vor.u32 %v1132_v1, %v914_v0  ;;  %v1164_v4 = vld [vmem:[%s1760_s0 + $0x1ec] sm:$0xf0]  ;;  %v916_v10 = vld [vmem:[%s1760_s0 + $0xf0] sm:$0xf0] }
   0x3   :  { %v1074_v5 = vld [vmem:[%s1760_s0 + $0x220] sm:$0xf]  ;;  %v1172_v6 = vld [vmem:[%s1760_s0 + $0x22c] sm:$0xf0]  ;;  %v1043_v7 = vor.u32 %v1164_v4, %v1042_v2  ;;  %v919_v12 = vor.u32 %v1130_v9, %v916_v10  ;;  %v1126_v20 = vld [vmem:[%s1760_s0 + $0xc4] sm:$0xf] }
   0x4   :  { %v1075_v8 = vor.u32 %v1172_v6, %v1074_v5  ;;  %v898_v11 = vld [vmem:[%s1760_s0 + $0xc0] sm:$0xf]  ;;  %492 = vmatpush.bf16.msra.mxu0 %v915_v3  ;;  %v1128_v13 = vld [vmem:[%s1760_s0 + $0xcc] sm:$0xf0]  ;;  %v900_v22 = vld [vmem:[%s1760_s0 + $0xd0] sm:$0xf0] }
   0x5   :  { %v1026_v14 = vld [vmem:[%s1760_s0 + $0x1c0] sm:$0xf]  ;;  %v1160_v15 = vld [vmem:[%s1760_s0 + $0x1cc] sm:$0xf0]  ;;  %511 = vmatpush.bf16.msra.mxu1 %v1043_v7  ;;  %v899_v16 = vor.u32 %v1128_v13, %v898_v11  ;;  %549 = vmatpush.bf16.msra.mxu3 %v919_v12  ;;  %v786_v23 = vld [vmem:[%s1761_s1 + $0x8] sm:$0xf]  ;;  %v903_v25 = vor.u32 %v1126_v20, %v900_v22 }
   0x6   :  { %536 = vmatpush.bf16.msra.mxu2 %v1075_v8  ;;  %v1027_v17 = vor.u32 %v1160_v15, %v1026_v14  ;;  %v1058_v18 = vld [vmem:[%s1760_s0 + $0x200] sm:$0xf]  ;;  %v1168_v19 = vld [vmem:[%s1760_s0 + $0x20c] sm:$0xf0]  ;;  %v1098_v24 = vld [vmem:[%s1761_s1 + $0x10] sm:$0xf0] }
   0x7   :  { %v1059_v21 = vor.u32 %v1168_v19, %v1058_v18  ;;  %v882_v26 = vld [vmem:[%s1760_s0 + $0xa0] sm:$0xf]  ;;  %v1124_v27 = vld [vmem:[%s1760_s0 + $0xac] sm:$0xf0]  ;;  %v1269_v29 = vor.u32 %v1098_v24, %v786_v23  ;;  %v1122_v32 = vld [vmem:[%s1760_s0 + $0xa4] sm:$0xf] }
   0x8   :  { %v1010_v28 = vld [vmem:[%s1760_s0 + $0x1a0] sm:$0xf]  ;;  %493 = vmatpush.bf16.msra.mxu0 %v899_v16  ;;  %v883_v30 = vor.u32 %v1124_v27, %v882_v26  ;;  %v1156_v31 = vld [vmem:[%s1760_s0 + $0x1ac] sm:$0xf0]  ;;  %v884_v33 = vld [vmem:[%s1760_s0 + $0xb0] sm:$0xf0] }
   0x9   :  { %512 = vmatpush.bf16.msra.mxu1 %v1027_v17  ;;  %v1011_v34 = vor.u32 %v1156_v31, %v1010_v28  ;;  %v1162_v35 = vld [vmem:[%s1760_s0 + $0x1e4] sm:$0xf]  ;;  %v1044_v36 = vld [vmem:[%s1760_s0 + $0x1f0] sm:$0xf0]  ;;  %v866_v37 = vld [vmem:[%s1760_s0 + $0x80] sm:$0xf]  ;;  %550 = vmatpush.bf16.msra.mxu3 %v903_v25  ;;  %v887_v38 = vor.u32 %v1122_v32, %v884_v33 }
   0xa   :  { %537 = vmatpush.bf16.msra.mxu2 %v1059_v21  ;;  %v1047_v39 = vor.u32 %v1162_v35, %v1044_v36  ;;  %v1120_v40 = vld [vmem:[%s1760_s0 + $0x8c] sm:$0xf0]  ;;  %v994_v41 = vld [vmem:[%s1760_s0 + $0x180] sm:$0xf]  ;;  %v1118_v43 = vld [vmem:[%s1760_s0 + $0x84] sm:$0xf] }
   0xb   :  { %v1152_v42 = vld [vmem:[%s1760_s0 + $0x18c] sm:$0xf0]  ;;  %v868_v44 = vld [vmem:[%s1760_s0 + $0x90] sm:$0xf0]  ;;  %v1158_v45 = vld [vmem:[%s1760_s0 + $0x1c4] sm:$0xf]  ;;  %v867_v46 = vor.u32 %v1120_v40, %v866_v37 }
   0xc   :  { %494 = vmatpush.bf16.msra.mxu0 %v883_v30  ;;  %v1028_v47 = vld [vmem:[%s1760_s0 + $0x1d0] sm:$0xf0]  ;;  %v995_v48 = vor.u32 %v1152_v42, %v994_v41  ;;  %v850_v50 = vld [vmem:[%s1760_s0 + $0x60] sm:$0xf]  ;;  %v1116_v51 = vld [vmem:[%s1760_s0 + $0x6c] sm:$0xf0]  ;;  %v871_v53 = vor.u32 %v1118_v43, %v868_v44 }
   0xd   :  { %1088 = vmatmul.msk.bf16.vlgmr.msra.gmra.mxu2 %vm485_vm0, %v1269_v29  ;;  %513 = vmatpush.bf16.msra.mxu1 %v1011_v34  ;;  %v1031_v49 = vor.u32 %v1158_v45, %v1028_v47  ;;  %v978_v52 = vld [vmem:[%s1760_s0 + $0x160] sm:$0xf]  ;;  %v1148_v54 = vld [vmem:[%s1760_s0 + $0x16c] sm:$0xf0]  ;;  %v1154_v55 = vld [vmem:[%s1760_s0 + $0x1a4] sm:$0xf]  ;;  %v851_v59 = vor.u32 %v1116_v51, %v850_v50 }
   0xe   :  { %568 = vmatpush.bf16.msrb.mxu2 %v1047_v39  ;;  %551 = vmatpush.bf16.msra.mxu3 %v887_v38  ;;  %v1012_v56 = vld [vmem:[%s1760_s0 + $0x1b0] sm:$0xf0]  ;;  %v1114_v57 = vld [vmem:[%s1760_s0 + $0x64] sm:$0xf]  ;;  %v979_v60 = vor.u32 %v1148_v54, %v978_v52  ;;  %v834_v62 = vld [vmem:[%s1760_s0 + $0x40] sm:$0xf] }
   0xf   :  { %v852_v58 = vld [vmem:[%s1760_s0 + $0x70] sm:$0xf0]  ;;  %v1015_v61 = vor.u32 %v1154_v55, %v1012_v56  ;;  %v1112_v63 = vld [vmem:[%s1760_s0 + $0x4c] sm:$0xf0]  ;;  %v962_v0 = vld [vmem:[%s1760_s0 + $0x140] sm:$0xf] }
  0x10   :  { %495 = vmatpush.bf16.msra.mxu0 %v867_v46  ;;  %v855_v1 = vor.u32 %v1114_v57, %v852_v58  ;;  %v1144_v2 = vld [vmem:[%s1760_s0 + $0x14c] sm:$0xf0]  ;;  %v1150_v3 = vld [vmem:[%s1760_s0 + $0x184] sm:$0xf]  ;;  %v996_v4 = vld [vmem:[%s1760_s0 + $0x190] sm:$0xf0]  ;;  %v835_v7 = vor.u32 %v1112_v63, %v834_v62 }
  0x11   :  { %514 = vmatpush.bf16.msra.mxu1 %v995_v48  ;;  %v1110_v5 = vld [vmem:[%s1760_s0 + $0x44] sm:$0xf]  ;;  %v836_v6 = vld [vmem:[%s1760_s0 + $0x50] sm:$0xf0]  ;;  %v798_v8 = vld [vmem:[%s1761_s1 + $0x20] sm:$0xf]  ;;  %v963_v10 = vor.u32 %v1144_v2, %v962_v0  ;;  %v999_v11 = vor.u32 %v1150_v3, %v996_v4 }
  0x12   :  { %569 = vmatpush.bf16.msrb.mxu2 %v1031_v49  ;;  %552 = vmatpush.bf16.msra.mxu3 %v871_v53  ;;  %v1101_v9 = vld [vmem:[%s1761_s1 + $0x28] sm:$0xf0]  ;;  %v818_v12 = vld [vmem:[%s1760_s0 + $0x20] sm:$0xf]  ;;  %v1108_v13 = vld [vmem:[%s1760_s0 + $0x2c] sm:$0xf0]  ;;  %v839_v15 = vor.u32 %v1110_v5, %v836_v6 }
  0x13   :  { %v946_v14 = vld [vmem:[%s1760_s0 + $0x120] sm:$0xf]  ;;  %v1140_v16 = vld [vmem:[%s1760_s0 + $0x12c] sm:$0xf0]  ;;  %v1146_v17 = vld [vmem:[%s1760_s0 + $0x164] sm:$0xf]  ;;  %v1390_v21 = vor.u32 %v1101_v9, %v798_v8  ;;  %v819_v22 = vor.u32 %v1108_v13, %v818_v12 }
  0x14   :  { %496 = vmatpush.bf16.msra.mxu0 %v851_v59  ;;  %v980_v18 = vld [vmem:[%s1760_s0 + $0x170] sm:$0xf0]  ;;  %v1106_v19 = vld [vmem:[%s1760_s0 + $0x24] sm:$0xf]  ;;  %v802_v23 = vld [vmem:[%s1760_s0] sm:$0xf]  ;;  %v947_v25 = vor.u32 %v1140_v16, %v946_v14 }
  0x15   :  { %515 = vmatpush.bf16.msra.mxu1 %v979_v60  ;;  %v820_v20 = vld [vmem:[%s1760_s0 + $0x30] sm:$0xf0]  ;;  %v1104_v24 = vld [vmem:[%s1760_s0 + $0xc] sm:$0xf0]  ;;  %v983_v26 = vor.u32 %v1146_v17, %v980_v18  ;;  %v930_v27 = vld [vmem:[%s1760_s0 + $0x100] sm:$0xf] }
  0x16   :  { %570 = vmatpush.bf16.msrb.mxu2 %v1015_v61  ;;  %553 = vmatpush.bf16.msra.mxu3 %v855_v1  ;;  %v1136_v28 = vld [vmem:[%s1760_s0 + $0x10c] sm:$0xf0]  ;;  %v1102_v30 = vld [vmem:[%s1760_s0 + $0x4] sm:$0xf]  ;;  %v823_v31 = vor.u32 %v1106_v19, %v820_v20  ;;  %v804_v32 = vld [vmem:[%s1760_s0 + $0x10] sm:$0xf0]  ;;  %v803_v38 = vor.u32 %v1104_v24, %v802_v23 }
  0x17   :  { %v1142_v33 = vld [vmem:[%s1760_s0 + $0x144] sm:$0xf]  ;;  %v964_v34 = vld [vmem:[%s1760_s0 + $0x150] sm:$0xf0]  ;;  %v778_v35 = vld [vmem:[%s1761_s1] sm:$0xf]  ;;  %v931_v42 = vor.u32 %v1136_v28, %v930_v27  ;;  %v807_v46 = vor.u32 %v1102_v30, %v804_v32 }
  0x18   :  { %497 = vmatpush.bf16.msra.mxu0 %v835_v7  ;;  %v922_v36 = vld [vmem:[%s1760_s0 + $0xe8] sm:$0xf]  ;;  %v1133_v37 = vld [vmem:[%s1760_s0 + $0xf4] sm:$0xf0]  ;;  %v1097_v39 = vld [vmem:[%s1761_s1 + $0x8] sm:$0xf0]  ;;  %v967_v43 = vor.u32 %v1142_v33, %v964_v34 }
  0x19   :  { %516 = vmatpush.bf16.msra.mxu1 %v963_v10  ;;  %v1050_v40 = vld [vmem:[%s1760_s0 + $0x1e8] sm:$0xf]  ;;  %v1165_v41 = vld [vmem:[%s1760_s0 + $0x1f4] sm:$0xf0]  ;;  %v1096_v44 = vld [vmem:[%s1761_s1 + $0x4] sm:$0xf]  ;;  %v923_v49 = vor.u32 %v1133_v37, %v922_v36  ;;  %v1448_v50 = vor.u32 %v1097_v39, %v778_v35 }
  0x1a   :  { %571 = vmatpush.bf16.msrb.mxu2 %v999_v11  ;;  %554 = vmatpush.bf16.msra.mxu3 %v839_v15  ;;  %v780_v45 = vld [vmem:[%s1761_s1 + $0xc] sm:$0xf0]  ;;  %v1138_v47 = vld [vmem:[%s1760_s0 + $0x124] sm:$0xf]  ;;  %v948_v48 = vld [vmem:[%s1760_s0 + $0x130] sm:$0xf0]  ;;  %v1051_v51 = vor.u32 %v1165_v41, %v1050_v40 }
  0x1b   :  { %v906_v52 = vld [vmem:[%s1760_s0 + $0xc8] sm:$0xf]  ;;  %v1129_v53 = vld [vmem:[%s1760_s0 + $0xd4] sm:$0xf0]  ;;  %v1456_v54 = vor.u32 %v1096_v44, %v780_v45  ;;  %v951_v57 = vor.u32 %v1138_v47, %v948_v48  ;;  %v1134_v58 = vld [vmem:[%s1760_s0 + $0x104] sm:$0xf] }
  0x1c   :  { %498 = vmatpush.bf16.msra.mxu0 %v819_v22  ;;  %v1034_v55 = vld [vmem:[%s1760_s0 + $0x1c8] sm:$0xf]  ;;  %v1161_v56 = vld [vmem:[%s1760_s0 + $0x1d4] sm:$0xf0]  ;;  %v932_v59 = vld [vmem:[%s1760_s0 + $0x110] sm:$0xf0]  ;;  %v907_v60 = vor.u32 %v1129_v53, %v906_v52 }
  0x1d   :  { %1089 = vmatmul.msk.bf16.gmra.mxu2 %vm485_vm0, %v1390_v21  ;;  %517 = vmatpush.bf16.msra.mxu1 %v947_v25  ;;  %v890_v61 = vld [vmem:[%s1760_s0 + $0xa8] sm:$0xf]  ;;  %v1125_v62 = vld [vmem:[%s1760_s0 + $0xb4] sm:$0xf0]  ;;  %v1035_v0 = vor.u32 %v1161_v56, %v1034_v55  ;;  %v1170_v2 = vld [vmem:[%s1760_s0 + $0x224] sm:$0xf]  ;;  %v935_v7 = vor.u32 %v1134_v58, %v932_v59 }
  0x1e   :  { %572 = vmatpush.bf16.msrb.mxu2 %v983_v26  ;;  %555 = vmatpush.bf16.msra.mxu3 %v823_v31  ;;  %v1082_v63 = vld [vmem:[%s1760_s0 + $0x228] sm:$0xf]  ;;  %v1173_v1 = vld [vmem:[%s1760_s0 + $0x234] sm:$0xf0]  ;;  %v1076_v3 = vld [vmem:[%s1760_s0 + $0x230] sm:$0xf0]  ;;  %v891_v8 = vor.u32 %v1125_v62, %v890_v61 }
  0x1f   :  { %v1018_v4 = vld [vmem:[%s1760_s0 + $0x1a8] sm:$0xf]  ;;  %v1157_v5 = vld [vmem:[%s1760_s0 + $0x1b4] sm:$0xf0]  ;;  %v1079_v6 = vor.u32 %v1170_v2, %v1076_v3  ;;  %v1083_v11 = vor.u32 %v1173_v1, %v1082_v63  ;;  %v1166_v14 = vld [vmem:[%s1760_s0 + $0x204] sm:$0xf] }
  0x20   :  { %499 = vmatpush.bf16.msra.mxu0 %v803_v38  ;;  %v1002_v9 = vld [vmem:[%s1760_s0 + $0x188] sm:$0xf]  ;;  %v1019_v12 = vor.u32 %v1157_v5, %v1018_v4  ;;  %v1121_v13 = vld [vmem:[%s1760_s0 + $0x94] sm:$0xf0]  ;;  %v1060_v15 = vld [vmem:[%s1760_s0 + $0x210] sm:$0xf0] }
  0x21   :  { %518 = vmatpush.bf16.msra.mxu1 %v931_v42  ;;  %v874_v10 = vld [vmem:[%s1760_s0 + $0x88] sm:$0xf]  ;;  %v1153_v16 = vld [vmem:[%s1760_s0 + $0x194] sm:$0xf0]  ;;  %v1063_v17 = vor.u32 %v1166_v14, %v1060_v15  ;;  %v1131_v20 = vld [vmem:[%s1760_s0 + $0xec] sm:$0xf] }
  0x22   :  { %573 = vmatpush.bf16.msrb.mxu2 %v967_v43  ;;  %556 = vmatpush.bf16.msra.mxu3 %v807_v46  ;;  %v1066_v18 = vld [vmem:[%s1760_s0 + $0x208] sm:$0xf]  ;;  %v1169_v19 = vld [vmem:[%s1760_s0 + $0x214] sm:$0xf0]  ;;  %v875_v22 = vor.u32 %v1121_v13, %v874_v10  ;;  %v924_v26 = vld [vmem:[%s1760_s0 + $0xf8] sm:$0xf0]  ;;  %v1003_v27 = vor.u32 %v1153_v16, %v1002_v9 }
  0x23   :  { %500 = vmatmul.bf16.vlgmr.msra.gmra.mxu0 %v1448_v50  ;;  %v790_v23 = vld [vmem:[%s1761_s1 + $0x18] sm:$0xf]  ;;  %v858_v24 = vld [vmem:[%s1760_s0 + $0x68] sm:$0xf]  ;;  %v1067_v25 = vor.u32 %v1169_v19, %v1066_v18  ;;  %v927_v30 = vor.u32 %v1131_v20, %v924_v26  ;;  %v1127_v31 = vld [vmem:[%s1760_s0 + $0xcc] sm:$0xf] }
  0x24   :  { %519 = vmatmul.bf16.vlgmr.msra.gmra.mxu1 %v1456_v54  ;;  %593 = vmatpush.bf16.msrb.mxu0 %v1079_v6  ;;  %v1117_v28 = vld [vmem:[%s1760_s0 + $0x74] sm:$0xf0]  ;;  %v908_v32 = vld [vmem:[%s1760_s0 + $0xd8] sm:$0xf0]  ;;  %v1100_v33 = vld [vmem:[%s1761_s1 + $0x20] sm:$0xf0] }
  0x25   :  { %606 = vmatpush.bf16.msrb.mxu1 %v923_v49  ;;  %557 = vmatmul.bf16.vlgmr.msra.gmra.mxu3 %v1448_v50  ;;  %v986_v34 = vld [vmem:[%s1760_s0 + $0x168] sm:$0xf]  ;;  %v1149_v35 = vld [vmem:[%s1760_s0 + $0x174] sm:$0xf0]  ;;  %v1099_v36 = vld [vmem:[%s1761_s1 + $0x1c] sm:$0xf]  ;;  %v911_v38 = vor.u32 %v1127_v31, %v908_v32  ;;  %v859_v39 = vor.u32 %v1117_v28, %v858_v24  ;;  %v1564_v42 = vor.u32 %v1100_v33, %v790_v23 }
  0x26   :  { %625 = vmatpush.bf16.msrb.mxu3 %v1051_v51  ;;  %574 = vmatpush.bf16.msrb.mxu2 %v951_v57  ;;  %v792_v37 = vld [vmem:[%s1761_s1 + $0x24] sm:$0xf0]  ;;  %v1123_v40 = vld [vmem:[%s1760_s0 + $0xac] sm:$0xf]  ;;  %v892_v41 = vld [vmem:[%s1760_s0 + $0xb8] sm:$0xf0]  ;;  %v987_v43 = vor.u32 %v1149_v35, %v986_v34 }
  0x27   :  { %v842_v44 = vld [vmem:[%s1760_s0 + $0x48] sm:$0xf]  ;;  %v1113_v45 = vld [vmem:[%s1760_s0 + $0x54] sm:$0xf0]  ;;  %v1572_v46 = vor.u32 %v1099_v36, %v792_v37  ;;  %v895_v49 = vor.u32 %v1123_v40, %v892_v41  ;;  %v1119_v52 = vld [vmem:[%s1760_s0 + $0x8c] sm:$0xf] }
  0x28   :  { %594 = vmatpush.bf16.msrb.mxu0 %v1063_v17  ;;  %v970_v47 = vld [vmem:[%s1760_s0 + $0x148] sm:$0xf]  ;;  %v1145_v48 = vld [vmem:[%s1760_s0 + $0x154] sm:$0xf0]  ;;  %v843_v51 = vor.u32 %v1113_v45, %v842_v44  ;;  %v876_v53 = vld [vmem:[%s1760_s0 + $0x98] sm:$0xf0] }
  0x29   :  { %607 = vmatpush.bf16.msrb.mxu1 %v907_v60  ;;  %v971_v55 = vor.u32 %v1145_v48, %v970_v47  ;;  %v826_v56 = vld [vmem:[%s1760_s0 + $0x28] sm:$0xf]  ;;  %v1109_v57 = vld [vmem:[%s1760_s0 + $0x34] sm:$0xf0]  ;;  %v879_v60 = vor.u32 %v1119_v52, %v876_v53  ;;  %v1115_v62 = vld [vmem:[%s1760_s0 + $0x6c] sm:$0xf] }
  0x2a   :  { %626 = vmatpush.bf16.msrb.mxu3 %v1035_v0  ;;  %575 = vmatpush.bf16.msrb.mxu2 %v935_v7  ;;  %v954_v58 = vld [vmem:[%s1760_s0 + $0x128] sm:$0xf]  ;;  %v1141_v59 = vld [vmem:[%s1760_s0 + $0x134] sm:$0xf0]  ;;  %v827_v61 = vor.u32 %v1109_v57, %v826_v56  ;;  %v860_v63 = vld [vmem:[%s1760_s0 + $0x78] sm:$0xf0] }
  0x2b   :  { %v955_v0 = vor.u32 %v1141_v59, %v954_v58  ;;  %v938_v1 = vld [vmem:[%s1760_s0 + $0x108] sm:$0xf]  ;;  %v1105_v3 = vld [vmem:[%s1760_s0 + $0x14] sm:$0xf0]  ;;  %v1163_v5 = vld [vmem:[%s1760_s0 + $0x1ec] sm:$0xf]  ;;  %v863_v9 = vor.u32 %v1115_v62, %v860_v63 }
  0x2c   :  { %663 = vmatpush.bf16.msra.mxu0 %v927_v30  ;;  %v810_v2 = vld [vmem:[%s1760_s0 + $0x8] sm:$0xf]  ;;  %v1137_v4 = vld [vmem:[%s1760_s0 + $0x114] sm:$0xf0]  ;;  %v1052_v6 = vld [vmem:[%s1760_s0 + $0x1f8] sm:$0xf0] }
  0x2d   :  { %608 = vmatpush.bf16.msrb.mxu1 %v891_v8  ;;  %576 = vmatmul.bf16.vlgmr.msrb.gmra.mxu2 %v1456_v54  ;;  %v1171_v7 = vld [vmem:[%s1760_s0 + $0x22c] sm:$0xf]  ;;  %v1084_v8 = vld [vmem:[%s1760_s0 + $0x238] sm:$0xf0]  ;;  %v811_v10 = vor.u32 %v1105_v3, %v810_v2  ;;  %v939_v13 = vor.u32 %v1137_v4, %v938_v1  ;;  %v1055_v14 = vor.u32 %v1163_v5, %v1052_v6  ;;  %v734_v52 = vld [vmem:[%s1762_s2 + $0x10] sm:$0xff]  ;;  %v1185_v53 = vmov 0  }
  0x2e   :  { %650 = vmatpush.bf16.msra.mxu2 %v1083_v11  ;;  %627 = vmatpush.bf16.msrb.mxu3 %v1019_v12  ;;  %v1111_v11 = vld [vmem:[%s1760_s0 + $0x4c] sm:$0xf]  ;;  %v844_v12 = vld [vmem:[%s1760_s0 + $0x58] sm:$0xf0]  ;;  %v1087_v15 = vor.u32 %v1171_v7, %v1084_v8 }
  0x2f   :  { %v1159_v16 = vld [vmem:[%s1760_s0 + $0x1cc] sm:$0xf]  ;;  %v1036_v17 = vld [vmem:[%s1760_s0 + $0x1d8] sm:$0xf0]  ;;  %v847_v20 = vor.u32 %v1111_v11, %v844_v12  ;;  %1183 = vset.pattern.permute.xlu0 %v1185_v53  ;;  %1184 = vset.pattern.permute.xlu1 %v1185_v53 }
  0x30   :  { %664 = vmatpush.bf16.msra.mxu0 %v911_v38  ;;  %v1167_v18 = vld [vmem:[%s1760_s0 + $0x20c] sm:$0xf]  ;;  %v1068_v19 = vld [vmem:[%s1760_s0 + $0x218] sm:$0xf0]  ;;  %v1039_v24 = vor.u32 %v1159_v16, %v1036_v17  ;;  %748 = vperm.xlu1 %1184, %v734_v52  }
  0x31   :  { %609 = vmatpush.bf16.msrb.mxu1 %v875_v22  ;;  %v1107_v22 = vld [vmem:[%s1760_s0 + $0x2c] sm:$0xf]  ;;  %v828_v23 = vld [vmem:[%s1760_s0 + $0x38] sm:$0xf0] }
  0x32   :  { %651 = vmatpush.bf16.msra.mxu2 %v1067_v25  ;;  %628 = vmatpush.bf16.msrb.mxu3 %v1003_v27  ;;  %v1155_v25 = vld [vmem:[%s1760_s0 + $0x1ac] sm:$0xf]  ;;  %v1020_v26 = vld [vmem:[%s1760_s0 + $0x1b8] sm:$0xf0]  ;;  %v1071_v27 = vor.u32 %v1167_v18, %v1068_v19  ;;  %v831_v28 = vor.u32 %v1107_v22, %v828_v23 }
  0x33   :  { %505 = vmatmul.bf16.gmra.mxu0 %v1564_v42  ;;  %v812_v31 = vld [vmem:[%s1760_s0 + $0x18] sm:$0xf0]  ;;  %v1023_v32 = vor.u32 %v1155_v25, %v1020_v26  ;;  %v1151_v33 = vld [vmem:[%s1760_s0 + $0x18c] sm:$0xf] }
  0x34   :  { %524 = vmatmul.bf16.gmra.mxu1 %v1572_v46  ;;  %665 = vmatpush.bf16.msra.mxu0 %v895_v49  ;;  %v1004_v34 = vld [vmem:[%s1760_s0 + $0x198] sm:$0xf0]  ;;  %v1147_v37 = vld [vmem:[%s1760_s0 + $0x16c] sm:$0xf] }
  0x35   :  { %610 = vmatpush.bf16.msrb.mxu1 %v859_v39  ;;  %562 = vmatmul.bf16.gmra.mxu3 %v1564_v42  ;;  %v1007_v36 = vor.u32 %v1151_v33, %v1004_v34  ;;  %v1143_v40 = vld [vmem:[%s1760_s0 + $0x14c] sm:$0xf]  ;;  %v972_v41 = vld [vmem:[%s1760_s0 + $0x158] sm:$0xf0] }
  0x36   :  { %1174 = vmatpush.bf16.msrb.mxu2 %v927_v30  ;;  %629 = vmatpush.bf16.msrb.mxu3 %v987_v43  ;;  %v1103_v30 = vld [vmem:[%s1760_s0 + $0xc] sm:$0xf]  ;;  %v975_v43 = vor.u32 %v1143_v40, %v972_v41  ;;  %v956_v45 = vld [vmem:[%s1760_s0 + $0x138] sm:$0xf0] }
  0x37   :  { %v815_v35 = vor.u32 %v1103_v30, %v812_v31  ;;  %v1139_v44 = vld [vmem:[%s1760_s0 + $0x12c] sm:$0xf]  ;;  %v735_v57 = vld [vmem:[%s1762_s2 + $0x18] sm:$0xff] }
  0x38   :  { %666 = vmatpush.bf16.msra.mxu0 %v879_v60  ;;  %v959_v47 = vor.u32 %v1139_v44, %v956_v45  ;;  %v1135_v48 = vld [vmem:[%s1760_s0 + $0x10c] sm:$0xf]  ;;  %753 = vperm.xlu1 %1184, %v735_v57  }
  0x39   :  { %611 = vmatpush.bf16.msrb.mxu1 %v843_v51  ;;  %v732_v51 = vld [vmem:[%s1762_s2] sm:$0xff]  ;;  %v733_v56 = vld [vmem:[%s1762_s2 + $0x8] sm:$0xff] }
  0x3a   :  { %1175 = vmatpush.bf16.msrb.mxu2 %v911_v38  ;;  %630 = vmatpush.bf16.msrb.mxu3 %v971_v55  ;;  %v988_v38 = vld [vmem:[%s1760_s0 + $0x178] sm:$0xf0] }
  0x3b   :  { %v991_v39 = vor.u32 %v1147_v37, %v988_v38  ;;  %738 = vperm.xlu0 %1183, %v732_v51  }
  0x3c   :  { %667 = vmatpush.bf16.msra.mxu0 %v863_v9 }
  0x3d   :  { %612 = vmatpush.bf16.msrb.mxu1 %v827_v61  ;;  %581 = vmatmul.bf16.gmra.mxu2 %v1572_v46 }
  0x3e   :  { %1176 = vmatpush.bf16.msrb.mxu2 %v895_v49  ;;  %631 = vmatpush.bf16.msrb.mxu3 %v955_v0  ;;  %v940_v49 = vld [vmem:[%s1760_s0 + $0x118] sm:$0xf0] }
  0x3f   :  { %v943_v55 = vor.u32 %v1135_v48, %v940_v49 }
  0x40   :  { %668 = vmatpush.bf16.msra.mxu0 %v847_v20 }
  0x41   :  { %613 = vmatpush.bf16.msrb.mxu1 %v811_v10 }
  0x42   :  { %1177 = vmatpush.bf16.msrb.mxu2 %v879_v60  ;;  %632 = vmatpush.bf16.msrb.mxu3 %v939_v13 }
  0x43   :  { %1090 = vmatmul.msk.bf16.vlgmr.msrb.gmra.mxu0 %vm485_vm0, %v1269_v29  ;;  %743 = vperm.xlu0 %1183, %v733_v56  }
  0x44   :  { %614 = vmatmul.bf16.vlgmr.msrb.gmra.mxu1 %v1448_v50  ;;  %669 = vmatpush.bf16.msra.mxu0 %v831_v28 }
  0x45   :  { %682 = vmatpush.bf16.msra.mxu1 %v1055_v14  ;;  %633 = vmatmul.bf16.vlgmr.msrb.gmra.mxu3 %v1456_v54 }
  0x46   :  { %707 = vmatpush.bf16.msra.mxu3 %v1087_v15  ;;  %1178 = vmatpush.bf16.msrb.mxu2 %v863_v9 }
  0x48   :  { %670 = vmatpush.bf16.msra.mxu0 %v815_v35 }
  0x49   :  { %683 = vmatpush.bf16.msra.mxu1 %v1039_v24 }
  0x4a   :  { %708 = vmatpush.bf16.msra.mxu3 %v1071_v27  ;;  %1179 = vmatpush.bf16.msrb.mxu2 %v847_v20 }
  0x4d   :  { %684 = vmatpush.bf16.msra.mxu1 %v1023_v32  ;;  %1092 = vmatmul.msk.bf16.vlgmr.msra.gmra.mxu2 %vm485_vm0, %v1269_v29 }
  0x4e   :  { %1180 = vmatpush.bf16.msrb.mxu2 %v831_v28 }
  0x51   :  { %685 = vmatpush.bf16.msra.mxu1 %v1007_v36 }
  0x52   :  { %1181 = vmatpush.bf16.msrb.mxu2 %v815_v35 }
  0x53   :  { %1091 = vmatmul.msk.bf16.gmra.mxu0 %vm485_vm0, %v1390_v21 }
  0x54   :  { %619 = vmatmul.bf16.gmra.mxu1 %v1564_v42 }
  0x55   :  { %686 = vmatpush.bf16.msra.mxu1 %v991_v39  ;;  %638 = vmatmul.bf16.gmra.mxu3 %v1572_v46 }
  0x59   :  { %687 = vmatpush.bf16.msra.mxu1 %v975_v43 }
  0x5d   :  { %688 = vmatpush.bf16.msra.mxu1 %v959_v47  ;;  %1093 = vmatmul.msk.bf16.gmra.mxu2 %vm485_vm0, %v1390_v21 }
  0x61   :  { %689 = vmatpush.bf16.msra.mxu1 %v943_v55 }
  0x63   :  { %671 = vmatmul.bf16.vlgmr.msra.gmra.mxu0 %v1448_v50 }
  0x64   :  { %690 = vmatmul.bf16.vlgmr.msra.gmra.mxu1 %v1456_v54 }
  0x65   :  { %1094 = vmatmul.msk.bf16.vlgmr.msra.gmra.mxu3 %vm485_vm0, %v1269_v29 }
  0x6d   :  { %676 = vmatmul.bf16.vlgmr.msrb.gmra.mxu2 %v1564_v42 }
  0x74   :  { %695 = vmatmul.bf16.gmra.mxu1 %v1572_v46 }
  0x75   :  { %1095 = vmatmul.msk.bf16.gmra.mxu3 %vm485_vm0, %v1390_v21 }
  0x90   :  { %v539_v58 = vpop.f32.mrf.mxu2 }
  0x98   :  { %v541_v59 = vpop.f32.mrf.mxu2 }
  0xa0   :  { %v1730_v60 = vpop.f32.mrf.mxu2  ;;  %v501_v61 = vpop.f32.mrf.mxu0 }
  0xa1   :  { %v520_v62 = vpop.f32.mrf.mxu1 }
  0xa2   :  { %v521_v24 = vadd.f32 %v520_v62, %v501_v61 }
  0xa4   :  { %v540_v31 = vadd.f32 %v539_v58, %v521_v24 }
  0xa8   :  { %v1732_v63 = vpop.f32.mrf.mxu2  ;;  %v558_v50 = vpop.f32.mrf.mxu3 }
  0xa9   :  { %v503_v54 = vpop.f32.mrf.mxu0  ;;  %v522_v0 = vpop.f32.mrf.mxu1 }
  0xaa   :  { %v523_v37 = vadd.f32 %v522_v0, %v503_v54 }
  0xac   :  { %v542_v49 = vadd.f32 %v541_v59, %v523_v37 }
  0xad   :  { %v739_v36 = vpop.permute.xlu0 %738 }
  0xb0   :  { %v577_v1 = vpop.f32.mrf.mxu2  ;;  %v560_v29 = vpop.f32.mrf.mxu3 }
  0xb1   :  { %v506_v2 = vpop.f32.mrf.mxu0  ;;  %v525_v42 = vpop.f32.mrf.mxu1  ;;  %v578_v25 = vadd.f32 %v577_v1, %v558_v50 }
  0xb2   :  { %v526_v57 = vadd.f32 %v525_v42, %v506_v2 }
  0xb5   :  { %v744_v1 = vpop.permute.xlu0 %743 }
  0xb8   :  { %v579_v3 = vpop.f32.mrf.mxu2  ;;  %v563_v46 = vpop.f32.mrf.mxu3 }
  0xb9   :  { %v1734_v4 = vpop.f32.mrf.mxu0  ;;  %v1736_v21 = vpop.f32.mrf.mxu1  ;;  %v580_v38 = vadd.f32 %v579_v3, %v560_v29 }
  0xc0   :  { %v582_v5 = vpop.f32.mrf.mxu2  ;;  %v1738_v6 = vpop.f32.mrf.mxu3 }
  0xc1   :  { %v596_v7 = vpop.f32.mrf.mxu0  ;;  %v615_v8 = vpop.f32.mrf.mxu1  ;;  %v583_v61 = vadd.f32 %v582_v5, %v563_v46  ;;  %v528_v5 = vadd.f32 %v1736_v21, %v1734_v4 }
  0xc2   :  { %v597_v28 = vadd.f32 %v596_v7, %v578_v25 }
  0xc3   :  { %v547_v25 = vadd.f32 %v1732_v63, %v528_v5 }
  0xc4   :  { %v720_v34 = vmax.f32 %v540_v31, %v597_v28 }
  0xc8   :  { %v1740_v9 = vpop.f32.mrf.mxu2  ;;  %v634_v10 = vpop.f32.mrf.mxu3 }
  0xc9   :  { %v598_v11 = vpop.f32.mrf.mxu0  ;;  %v617_v12 = vpop.f32.mrf.mxu1  ;;  %v635_v30 = vadd.f32 %v634_v10, %v615_v8  ;;  %v545_v8 = vadd.f32 %v1730_v60, %v526_v57 }
  0xca   :  { %v599_v44 = vadd.f32 %v598_v11, %v580_v38 }
  0xcc   :  { %v721_v53 = vmax.f32 %v542_v49, %v599_v44 }
  0xd0   :  { %v653_v13 = vpop.f32.mrf.mxu2  ;;  %v636_v14 = vpop.f32.mrf.mxu3 }
  0xd1   :  { %v601_v15 = vpop.f32.mrf.mxu0  ;;  %v620_v16 = vpop.f32.mrf.mxu1  ;;  %v654_v32 = vadd.f32 %v653_v13, %v635_v30  ;;  %v637_v45 = vadd.f32 %v636_v14, %v617_v12  ;;  %v585_v13 = vadd.f32 %v1740_v9, %v1738_v6 }
  0xd2   :  { %v602_v29 = vadd.f32 %v601_v15, %v583_v61 }
  0xd3   :  { %v724_v39 = vmax.f32 %v720_v34, %v654_v32 }
  0xd4   :  { %v722_v42 = vmax.f32 %v545_v8, %v602_v29 }
  0xd8   :  { %v655_v17 = vpop.f32.mrf.mxu2  ;;  %v639_v18 = vpop.f32.mrf.mxu3 }
  0xd9   :  { %v603_v19 = vpop.f32.mrf.mxu0  ;;  %v622_v20 = vpop.f32.mrf.mxu1  ;;  %v656_v51 = vadd.f32 %v655_v17, %v637_v45  ;;  %v640_v3 = vadd.f32 %v639_v18, %v620_v16 }
  0xda   :  { %v749_v17 = vpop.permute.xlu1 %748  ;;  %v604_v18 = vadd.f32 %v603_v19, %v585_v13 }
  0xdb   :  { %v725_v62 = vmax.f32 %v721_v53, %v656_v51 }
  0xe0   :  { %v641_v22 = vpop.f32.mrf.mxu3  ;;  %v658_v23 = vpop.f32.mrf.mxu2 }
  0xe1   :  { %v691_v26 = vpop.f32.mrf.mxu1  ;;  %v672_v27 = vpop.f32.mrf.mxu0  ;;  %v659_v10 = vadd.f32 %v658_v23, %v640_v3  ;;  %v642_v24 = vadd.f32 %v641_v22, %v622_v20 }
  0xe2   :  { %v692_v33 = vadd.f32 %v691_v26, %v672_v27  ;;  %v723_v27 = vmax.f32 %v547_v25, %v604_v18  ;;  %v754_v20 = vpop.permute.xlu1 %753 }
  0xe3   :  { %v726_v14 = vmax.f32 %v722_v42, %v659_v10 }
  0xe8   :  { %v710_v35 = vpop.f32.mrf.mxu3  ;;  %v660_v43 = vpop.f32.mrf.mxu2 }
  0xe9   :  { %v711_v40 = vadd.f32 %v710_v35, %v692_v33  ;;  %v693_v41 = vpop.f32.mrf.mxu1  ;;  %v674_v48 = vpop.f32.mrf.mxu0  ;;  %v661_v26 = vadd.f32 %v660_v43, %v642_v24 }
  0xea   :  { %v694_v55 = vadd.f32 %v693_v41, %v674_v48 }
  0xeb   :  { %v728_v47 = vmax.f32 %v724_v39, %v711_v40  ;;  %v727_v30 = vmax.f32 %v723_v27, %v661_v26 }
  0xed   :  { %v756_v52 = vadd.f32 %v739_v36, %v728_v47 }
  0xef   :  { %v760_v56 = vmul.f32 0.01, %v756_v52 }
  0xf0   :  { %v712_v58 = vpop.f32.mrf.mxu3  ;;  %v677_v7 = vpop.f32.mrf.mxu2 }
  0xf1   :  { %v764_v50 = vmax.f32 %v756_v52, %v760_v56  ;;  %v713_v54 = vadd.f32 %v712_v58, %v694_v55  ;;  %v696_v0 = vpop.f32.mrf.mxu1 }
  0xf2   :  { %v697_v11 = vadd.f32 %v696_v0, %v677_v7 }
  0xf3   :  { %768 = vst [vmem:[%s1763_s3] sm:$0xff] %v764_v50  ;;  %v729_v59 = vmax.f32 %v725_v62, %v713_v54 }
  0xf5   :  { %v757_v2 = vadd.f32 %v744_v1, %v729_v59 }
  0xf7   :  { %v761_v46 = vmul.f32 0.01, %v757_v2 }
  0xf8   :  { %v715_v12 = vpop.f32.mrf.mxu3  ;;  %v679_v21 = vpop.f32.mrf.mxu2 }
  0xf9   :  { %v765_v15 = vmax.f32 %v757_v2, %v761_v46  ;;  %v716_v16 = vadd.f32 %v715_v12, %v697_v11  ;;  %v698_v23 = vpop.f32.mrf.mxu1 }
  0xfa   :  { %v699_v6 = vadd.f32 %v698_v23, %v679_v21 }
  0xfb   :  { %769 = vst [vmem:[%s1763_s3 + $0x8] sm:$0xff] %v765_v15  ;;  %v730_v60 = vmax.f32 %v726_v14, %v716_v16 }
  0xfd   :  { %v758_v4 = vadd.f32 %v749_v17, %v730_v60 }
  0xff   :  { %v762_v28 = vmul.f32 0.01, %v758_v4 }
 0x100   :  { %v717_v9 = vpop.f32.mrf.mxu3 }
 0x101   :  { %v766_v31 = vmax.f32 %v758_v4, %v762_v28  ;;  %v718_v32 = vadd.f32 %v717_v9, %v699_v6 }
 0x103   :  { %770 = vst [vmem:[%s1763_s3 + $0x10] sm:$0xff] %v766_v31  ;;  %v731_v19 = vmax.f32 %v727_v30, %v718_v32 }
 0x105   :  { %v759_v22 = vadd.f32 %v754_v20, %v731_v19 }
 0x107   :  { %v763_v33 = vmul.f32 0.01, %v759_v22 }
 0x109   :  { %v767_v34 = vmax.f32 %v759_v22, %v763_v33 }
 0x10b   :  { %771 = vst [vmem:[%s1763_s3 + $0x18] sm:$0xff] %v767_v34 }

</bundles_post_ra>
